<compile_context>
chip_gen: v5e
topology: v5e:2x2
jax: 0.10.0
libtpu: 0.0.40
codegen_flags: <defaults>
</compile_context>

<pallas_src>
import functools

import jax
import jax.numpy as jnp
from jax.experimental import pallas as pl
from jax.experimental.pallas import tpu as pltpu


def lska_kernel(x_ref, w0h_ref, b0h_ref, w0v_ref, b0v_ref,
                wsh_ref, bsh_ref, wsv_ref, bsv_ref, w1t_ref, b1_ref,
                o_ref, pad_ref, *, pad0, dil0, pads, dils, ph, pw, th):
    _, H, W, C = o_ref.shape
    Hp, Wp, _ = pad_ref.shape
    cdt = pad_ref.dtype                    # bf16 scratch / storage dtype

    # Zero only the halo bands.  The interior is fully overwritten before each
    # conv and the convs never write the halos, so they stay zero.  Done every
    # invocation so megacore grid splitting is safe.
    pad_ref[0:ph, :, :] = jnp.zeros((ph, Wp, C), cdt)
    pad_ref[ph + H:Hp, :, :] = jnp.zeros((Hp - ph - H, Wp, C), cdt)
    pad_ref[ph:ph + H, 0:pw, :] = jnp.zeros((H, pw, C), cdt)
    pad_ref[ph:ph + H, pw + W:Wp, :] = jnp.zeros((H, Wp - pw - W, C), cdt)

    # Seed the interior with x (bf16, no copy of x kept live).
    pad_ref[ph:ph + H, pw:pw + W, :] = x_ref[0].astype(cdt)

    def conv_w(w_ref_, b_ref_, pad, dil):
        # Depthwise conv along W (sublane axis), symmetric zero padding,
        # dilation `dil`.  Reads shifted windows from the scratch, accumulates
        # in f32, writes the result back into the scratch interior (bf16).
        k = w_ref_.shape[0]
        w = w_ref_[...].astype(jnp.float32)          # (k, C) — tiny
        b = b_ref_[...].astype(jnp.float32)          # (1, C)
        s = 0 * dil - pad                             # static Python offsets
        acc = (w[0][None, None, :] *
               pad_ref[ph:ph + H, pw + s:pw + s + W, :].astype(jnp.float32)
               + b[0][None, None, :])
        for i in range(1, k):
            s = i * dil - pad
            tap = pad_ref[ph:ph + H, pw + s:pw + s + W, :].astype(jnp.float32)
            acc = acc + w[i][None, None, :] * tap
        pad_ref[ph:ph + H, pw:pw + W, :] = acc.astype(cdt)

    def conv_h(w_ref_, b_ref_, pad, dil):
        # Depthwise conv along H (major axis => shifted whole-slab reads).
        k = w_ref_.shape[0]
        w = w_ref_[...].astype(jnp.float32)
        b = b_ref_[...].astype(jnp.float32)
        s = 0 * dil - pad
        acc = (w[0][None, None, :] *
               pad_ref[ph + s:ph + s + H, pw:pw + W, :].astype(jnp.float32)
               + b[0][None, None, :])
        for i in range(1, k):
            s = i * dil - pad
            tap = pad_ref[ph + s:ph + s + H, pw:pw + W, :].astype(jnp.float32)
            acc = acc + w[i][None, None, :] * tap
        pad_ref[ph:ph + H, pw:pw + W, :] = acc.astype(cdt)

    conv_w(w0h_ref, b0h_ref, pad0, dil0)        # conv0h
    conv_h(w0v_ref, b0v_ref, pad0, dil0)        # conv0v
    conv_w(wsh_ref, bsh_ref, pads, dils)        # conv_spatial_h
    conv_h(wsv_ref, bsv_ref, pads, dils)        # conv_spatial_v

    # 1x1 conv over channels on the MXU (bf16 operands, f32 accumulation),
    # fused with the bias add and the elementwise x-multiply, chunked over H
    # rows so only a (th*W, C) f32 slab is live per chunk.
    w1 = w1t_ref[...]                            # (C, C) bf16, no cast
    b1 = b1_ref[...].astype(jnp.float32)         # (1, C)
    for r0 in range(0, H, th):                   # static Python loop
        rows = min(th, H - r0)
        a = pad_ref[ph + r0:ph + r0 + rows, pw:pw + W, :].reshape(rows * W, C)
        y = jnp.dot(a, w1, preferred_element_type=jnp.float32) + b1
        xk = x_ref[0, r0:r0 + rows].reshape(rows * W, C).astype(jnp.float32)
        o_ref[0, r0:r0 + rows] = (xk * y).reshape(rows, W, C).astype(o_ref.dtype)


def lska_pallas(x_nhwc, params, *, pad0, dil0, pads, dils):
    N, H, W, C = x_nhwc.shape
    w0h, b0h, w0v, b0v, wsh, bsh, wsv, bsv, w1t, b1 = params
    k0 = w0h.shape[0]
    ks = wsh.shape[0]

    # The shift-MAC implements PyTorch's symmetric zero padding, which needs
    # 2*pad == (k-1)*dil (true for every LSKA k_size config).
    assert 2 * pad0 == (k0 - 1) * dil0, "conv0h/v padding must be symmetric"
    assert 2 * pads == (ks - 1) * dils, "conv_spatial padding must be symmetric"
    # Perf note: keep W a multiple of 16 and C a multiple of 128 for packed
    # bf16 sublane / lane-dense layouts (masked stores otherwise).

    max_pad = max(pad0, pads)
    ph = max_pad                             # halo rows (major axis)
    pw = ((max_pad + 15) // 16) * 16         # halo cols, bf16 sublane packing
    Hp = H + 2 * ph
    Wp = W + 2 * pw

    # Row-chunk size for the matmul/multiply epilogue.
    th = H if H * W <= 2048 else max(1, 2048 // W)

    # bf16 at the pallas_call boundary: activations, output and the CxC weight.
    x_bf = x_nhwc.astype(jnp.bfloat16)
    w1t_bf = w1t.astype(jnp.bfloat16)

    # Size the VMEM request from actual buffers (cap well below v7x's 64 MiB).
    bb = 2                                                   # bf16 bytes
    block_bytes = H * W * C * bb                             # one x / out block
    scratch_bytes = Hp * Wp * C * bb
    weight_bytes = (2 * k0 + 2 * ks + 5) * C * 4 + C * C * bb
    live_f32 = H * W * C * 4 + 2 * th * W * C * 4            # acc + mm chunk
    est = scratch_bytes + 4 * block_bytes + 2 * weight_bytes + live_f32
    vmem_limit = int(min(48 << 20, max(8 << 20, 2 * est)))

    kern = functools.partial(lska_kernel, pad0=pad0, dil0=dil0,
                             pads=pads, dils=dils, ph=ph, pw=pw, th=th)

    full = lambda shp: pl.BlockSpec(shp, lambda n: (0,) * len(shp))
    return pl.pallas_call(
        kern,
        out_shape=jax.ShapeDtypeStruct((N, H, W, C), jnp.bfloat16),
        grid=(N,),
        in_specs=[
            pl.BlockSpec((1, H, W, C), lambda n: (n, 0, 0, 0)),
            full((k0, C)), full((1, C)),   # conv0h w, b          (f32, tiny)
            full((k0, C)), full((1, C)),   # conv0v w, b
            full((ks, C)), full((1, C)),   # conv_spatial_h w, b
            full((ks, C)), full((1, C)),   # conv_spatial_v w, b
            full((C, C)), full((1, C)),    # conv1 w^T (Cin,Cout) bf16, bias f32
        ],
        out_specs=pl.BlockSpec((1, H, W, C), lambda n: (n, 0, 0, 0)),
        scratch_shapes=[pltpu.VMEM((Hp, Wp, C), jnp.bfloat16)],
        compiler_params=pltpu.CompilerParams(
            dimension_semantics=("parallel",),
            vmem_limit_bytes=vmem_limit),
    )(x_bf, w0h, b0h, w0v, b0v, wsh, bsh, wsv, bsv, w1t_bf, b1)


# ----------------------------- pure-JAX reference -----------------------------
def _ref_dw_w(x, w, b, pad, dil):
    N, H, W, C = x.shape
    k = w.shape[0]
    xp = jnp.pad(x, ((0, 0), (0, 0), (pad, pad), (0, 0)))
    acc = jnp.zeros_like(x)
    for i in range(k):
        acc = acc + w[i][None, None, None, :] * xp[:, :, i * dil:i * dil + W, :]
    return acc + b[0][None, None, None, :]


def _ref_dw_h(x, w, b, pad, dil):
    N, H, W, C = x.shape
    k = w.shape[0]
    xp = jnp.pad(x, ((0, 0), (pad, pad), (0, 0), (0, 0)))
    acc = jnp.zeros_like(x)
    for i in range(k):
        acc = acc + w[i][None, None, None, :] * xp[:, i * dil:i * dil + H, :, :]
    return acc + b[0][None, None, None, :]


def lska_ref(x, params, *, pad0, dil0, pads, dils):
    # Mirrors the kernel's dtype path (bf16 scratch between conv stages and
    # bf16 MXU operands) so the comparison is tight; pure-f32 PyTorch math
    # differs from this by ~bf16 rounding only.
    w0h, b0h, w0v, b0v, wsh, bsh, wsv, bsv, w1t, b1 = params
    q = lambda a: a.astype(jnp.bfloat16).astype(jnp.float32)
    a = q(_ref_dw_w(x, w0h, b0h, pad0, dil0))
    a = q(_ref_dw_h(a, w0v, b0v, pad0, dil0))
    a = q(_ref_dw_w(a, wsh, bsh, pads, dils))
    a = q(_ref_dw_h(a, wsv, bsv, pads, dils))
    N, H, W, C = a.shape
    y = jnp.dot(a.astype(jnp.bfloat16).reshape(-1, C),
                w1t.astype(jnp.bfloat16),
                preferred_element_type=jnp.float32).reshape(N, H, W, C)
    a = y + b1[0][None, None, None, :]
    return x * a


if __name__ == "__main__":
    # k_size = 11 configuration (what SPPF_LSKA instantiates):
    #   conv0h (1,3) pad 1 dil 1 ; conv0v (3,1) pad 1 dil 1
    #   conv_spatial_h (1,5) pad 4 dil 2 ; conv_spatial_v (5,1) pad 4 dil 2
    k0, pad0, dil0 = 3, 1, 1
    ks, pads, dils = 5, 4, 2

    N, H, W, C = 2, 16, 16, 128   # NHWC; C multiple of 128, W multiple of 16
    key = jax.random.PRNGKey(0)
    keys = jax.random.split(key, 12)

    x_f32 = jax.random.normal(keys[0], (N, H, W, C), jnp.float32)

    def rn(k, shp, scale=0.2):
        return scale * jax.random.normal(k, shp, jnp.float32)

    params = (
        rn(keys[1], (k0, C)), rn(keys[2], (1, C)),    # conv0h
        rn(keys[3], (k0, C)), rn(keys[4], (1, C)),    # conv0v
        rn(keys[5], (ks, C)), rn(keys[6], (1, C)),    # conv_spatial_h
        rn(keys[7], (ks, C)), rn(keys[8], (1, C)),    # conv_spatial_v
        rn(keys[9], (C, C)),  rn(keys[10], (1, C)),   # conv1 w^T, bias
    )

    out = lska_pallas(x_f32, params, pad0=pad0, dil0=dil0,
                      pads=pads, dils=dils)
    out = jax.block_until_ready(out)

    # Reference consumes the same bf16-quantized x / conv1 weight the kernel saw.
    x_q = x_f32.astype(jnp.bfloat16).astype(jnp.float32)
    params_ref = params[:8] + (params[8].astype(jnp.bfloat16), params[9])
    ref = lska_ref(x_q, params_ref, pad0=pad0, dil0=dil0,
                   pads=pads, dils=dils)
    assert jnp.allclose(out.astype(jnp.float32), ref,
                        atol=3e-2, rtol=3e-2), "mismatch vs reference"

    # Back to NCHW to match PyTorch's output convention (glue only).
    _ = jnp.transpose(out, (0, 3, 1, 2))
    print("KERNEL_OK")
</pallas_src>

<mosaic_0001>
module attributes {stable_mosaic.version = 11 : i64} {
  func.func @lska_kernel(%arg0: i32, %arg1: memref<1x16x16x128xbf16, #tpu.memory_space<vmem>>, %arg2: memref<3x128xf32, #tpu.memory_space<vmem>>, %arg3: memref<1x128xf32, #tpu.memory_space<vmem>>, %arg4: memref<3x128xf32, #tpu.memory_space<vmem>>, %arg5: memref<1x128xf32, #tpu.memory_space<vmem>>, %arg6: memref<5x128xf32, #tpu.memory_space<vmem>>, %arg7: memref<1x128xf32, #tpu.memory_space<vmem>>, %arg8: memref<5x128xf32, #tpu.memory_space<vmem>>, %arg9: memref<1x128xf32, #tpu.memory_space<vmem>>, %arg10: memref<128x128xbf16, #tpu.memory_space<vmem>>, %arg11: memref<1x128xf32, #tpu.memory_space<vmem>>, %arg12: memref<1x16x16x128xbf16, #tpu.memory_space<vmem>>, %arg13: memref<24x48x128xbf16, #tpu.memory_space<vmem>>) attributes {dimension_semantics = [#tpu.dimension_semantics<parallel>], iteration_bounds = array<i64: 2>, scalar_prefetch = 0 : i64, scratch_operands = 1 : i64, tpu.core_type = #tpu.core_type<tc>, window_params = [{transform_indices = @transform_0, window_bounds = array<i64: 1, 16, 16, 128>}, {pipeline_mode = #tpu.pipeline_mode<synchronous>, transform_indices = @transform_1, window_bounds = array<i64: 3, 128>}, {pipeline_mode = #tpu.pipeline_mode<synchronous>, transform_indices = @transform_2, window_bounds = array<i64: 1, 128>}, {pipeline_mode = #tpu.pipeline_mode<synchronous>, transform_indices = @transform_3, window_bounds = array<i64: 3, 128>}, {pipeline_mode = #tpu.pipeline_mode<synchronous>, transform_indices = @transform_4, window_bounds = array<i64: 1, 128>}, {pipeline_mode = #tpu.pipeline_mode<synchronous>, transform_indices = @transform_5, window_bounds = array<i64: 5, 128>}, {pipeline_mode = #tpu.pipeline_mode<synchronous>, transform_indices = @transform_6, window_bounds = array<i64: 1, 128>}, {pipeline_mode = #tpu.pipeline_mode<synchronous>, transform_indices = @transform_7, window_bounds = array<i64: 5, 128>}, {pipeline_mode = #tpu.pipeline_mode<synchronous>, transform_indices = @transform_8, window_bounds = array<i64: 1, 128>}, {pipeline_mode = #tpu.pipeline_mode<synchronous>, transform_indices = @transform_9, window_bounds = array<i64: 128, 128>}, {pipeline_mode = #tpu.pipeline_mode<synchronous>, transform_indices = @transform_10, window_bounds = array<i64: 1, 128>}, {transform_indices = @transform_11, window_bounds = array<i64: 1, 16, 16, 128>}]} {
    %cst = arith.constant 0.000000e+00 : bf16
    %0 = vector.broadcast %cst : bf16 to vector<4x48x128xbf16>
    %c0 = arith.constant 0 : index
    %c0_0 = arith.constant 0 : index
    %c0_1 = arith.constant 0 : index
    %1 = vector.load %arg13[%c0, %c0_0, %c0_1] : memref<24x48x128xbf16, #tpu.memory_space<vmem>>, vector<4x48x128xbf16>
    tpu.vector_store %arg13[%c0, %c0_0, %c0_1], %0 {strides = array<i32>} : memref<24x48x128xbf16, #tpu.memory_space<vmem>>, vector<4x48x128xbf16>,
    %cst_2 = arith.constant 0.000000e+00 : bf16
    %2 = vector.broadcast %cst_2 : bf16 to vector<4x48x128xbf16>
    %c20 = arith.constant 20 : index
    %c0_3 = arith.constant 0 : index
    %c0_4 = arith.constant 0 : index
    %3 = vector.load %arg13[%c20, %c0_3, %c0_4] : memref<24x48x128xbf16, #tpu.memory_space<vmem>>, vector<4x48x128xbf16>
    tpu.vector_store %arg13[%c20, %c0_3, %c0_4], %2 {strides = array<i32>} : memref<24x48x128xbf16, #tpu.memory_space<vmem>>, vector<4x48x128xbf16>,
    %cst_5 = arith.constant 0.000000e+00 : bf16
    %4 = vector.broadcast %cst_5 : bf16 to vector<16x16x128xbf16>
    %c4 = arith.constant 4 : index
    %c0_6 = arith.constant 0 : index
    %c0_7 = arith.constant 0 : index
    %5 = vector.load %arg13[%c4, %c0_6, %c0_7] : memref<24x48x128xbf16, #tpu.memory_space<vmem>>, vector<16x16x128xbf16>
    tpu.vector_store %arg13[%c4, %c0_6, %c0_7], %4 {strides = array<i32>} : memref<24x48x128xbf16, #tpu.memory_space<vmem>>, vector<16x16x128xbf16>,
    %cst_8 = arith.constant 0.000000e+00 : bf16
    %6 = vector.broadcast %cst_8 : bf16 to vector<16x16x128xbf16>
    %c4_9 = arith.constant 4 : index
    %c32 = arith.constant 32 : index
    %c0_10 = arith.constant 0 : index
    %7 = vector.load %arg13[%c4_9, %c32, %c0_10] : memref<24x48x128xbf16, #tpu.memory_space<vmem>>, vector<16x16x128xbf16>
    tpu.vector_store %arg13[%c4_9, %c32, %c0_10], %6 {strides = array<i32>} : memref<24x48x128xbf16, #tpu.memory_space<vmem>>, vector<16x16x128xbf16>,
    %c0_11 = arith.constant 0 : index
    %c0_12 = arith.constant 0 : index
    %c0_13 = arith.constant 0 : index
    %c0_14 = arith.constant 0 : index
    %8 = vector.load %arg1[%c0_11, %c0_12, %c0_13, %c0_14] : memref<1x16x16x128xbf16, #tpu.memory_space<vmem>>, vector<1x16x16x128xbf16>
    %9 = vector.shape_cast %8 : vector<1x16x16x128xbf16> to vector<16x16x128xbf16>
    %c4_15 = arith.constant 4 : index
    %c16 = arith.constant 16 : index
    %c0_16 = arith.constant 0 : index
    %10 = vector.load %arg13[%c4_15, %c16, %c0_16] : memref<24x48x128xbf16, #tpu.memory_space<vmem>>, vector<16x16x128xbf16>
    tpu.vector_store %arg13[%c4_15, %c16, %c0_16], %9 {strides = array<i32>} : memref<24x48x128xbf16, #tpu.memory_space<vmem>>, vector<16x16x128xbf16>,
    %c0_17 = arith.constant 0 : index
    %c0_18 = arith.constant 0 : index
    %11 = vector.load %arg2[%c0_17, %c0_18] : memref<3x128xf32, #tpu.memory_space<vmem>>, vector<3x128xf32>
    %c0_19 = arith.constant 0 : index
    %c0_20 = arith.constant 0 : index
    %12 = vector.load %arg3[%c0_19, %c0_20] : memref<1x128xf32, #tpu.memory_space<vmem>>, vector<1x128xf32>
    %13 = vector.extract_strided_slice %11 {offsets = [0, 0], sizes = [1, 128], strides = [1, 1]} : vector<3x128xf32> to vector<1x128xf32>
    %14 = vector.shape_cast %13 : vector<1x128xf32> to vector<128xf32>
    %15 = vector.shape_cast %14 : vector<128xf32> to vector<1x1x128xf32>
    %c4_21 = arith.constant 4 : index
    %c15 = arith.constant 15 : index
    %c0_22 = arith.constant 0 : index
    %16 = vector.load %arg13[%c4_21, %c15, %c0_22] : memref<24x48x128xbf16, #tpu.memory_space<vmem>>, vector<16x16x128xbf16>
    %17 = arith.extf %16 : vector<16x16x128xbf16> to vector<16x16x128xf32>
    %18 = vector.broadcast %15 : vector<1x1x128xf32> to vector<16x16x128xf32>
    %19 = arith.mulf %18, %17 : vector<16x16x128xf32>
    %20 = vector.shape_cast %12 : vector<1x128xf32> to vector<128xf32>
    %21 = vector.shape_cast %20 : vector<128xf32> to vector<1x1x128xf32>
    %22 = vector.broadcast %21 : vector<1x1x128xf32> to vector<16x16x128xf32>
    %23 = arith.addf %19, %22 : vector<16x16x128xf32>
    %c4_23 = arith.constant 4 : index
    %c16_24 = arith.constant 16 : index
    %c0_25 = arith.constant 0 : index
    %24 = vector.load %arg13[%c4_23, %c16_24, %c0_25] : memref<24x48x128xbf16, #tpu.memory_space<vmem>>, vector<16x16x128xbf16>
    %25 = arith.extf %24 : vector<16x16x128xbf16> to vector<16x16x128xf32>
    %26 = vector.extract_strided_slice %11 {offsets = [1, 0], sizes = [1, 128], strides = [1, 1]} : vector<3x128xf32> to vector<1x128xf32>
    %27 = vector.shape_cast %26 : vector<1x128xf32> to vector<128xf32>
    %28 = vector.shape_cast %27 : vector<128xf32> to vector<1x1x128xf32>
    %29 = vector.broadcast %28 : vector<1x1x128xf32> to vector<16x16x128xf32>
    %30 = arith.mulf %29, %25 : vector<16x16x128xf32>
    %31 = arith.addf %23, %30 : vector<16x16x128xf32>
    %c4_26 = arith.constant 4 : index
    %c17 = arith.constant 17 : index
    %c0_27 = arith.constant 0 : index
    %32 = vector.load %arg13[%c4_26, %c17, %c0_27] : memref<24x48x128xbf16, #tpu.memory_space<vmem>>, vector<16x16x128xbf16>
    %33 = arith.extf %32 : vector<16x16x128xbf16> to vector<16x16x128xf32>
    %34 = vector.extract_strided_slice %11 {offsets = [2, 0], sizes = [1, 128], strides = [1, 1]} : vector<3x128xf32> to vector<1x128xf32>
    %35 = vector.shape_cast %34 : vector<1x128xf32> to vector<128xf32>
    %36 = vector.shape_cast %35 : vector<128xf32> to vector<1x1x128xf32>
    %37 = vector.broadcast %36 : vector<1x1x128xf32> to vector<16x16x128xf32>
    %38 = arith.mulf %37, %33 : vector<16x16x128xf32>
    %39 = arith.addf %31, %38 : vector<16x16x128xf32>
    %40 = arith.truncf %39 : vector<16x16x128xf32> to vector<16x16x128xbf16>
    %c4_28 = arith.constant 4 : index
    %c16_29 = arith.constant 16 : index
    %c0_30 = arith.constant 0 : index
    %41 = vector.load %arg13[%c4_28, %c16_29, %c0_30] : memref<24x48x128xbf16, #tpu.memory_space<vmem>>, vector<16x16x128xbf16>
    tpu.vector_store %arg13[%c4_28, %c16_29, %c0_30], %40 {strides = array<i32>} : memref<24x48x128xbf16, #tpu.memory_space<vmem>>, vector<16x16x128xbf16>,
    %c0_31 = arith.constant 0 : index
    %c0_32 = arith.constant 0 : index
    %42 = vector.load %arg4[%c0_31, %c0_32] : memref<3x128xf32, #tpu.memory_space<vmem>>, vector<3x128xf32>
    %c0_33 = arith.constant 0 : index
    %c0_34 = arith.constant 0 : index
    %43 = vector.load %arg5[%c0_33, %c0_34] : memref<1x128xf32, #tpu.memory_space<vmem>>, vector<1x128xf32>
    %44 = vector.extract_strided_slice %42 {offsets = [0, 0], sizes = [1, 128], strides = [1, 1]} : vector<3x128xf32> to vector<1x128xf32>
    %45 = vector.shape_cast %44 : vector<1x128xf32> to vector<128xf32>
    %46 = vector.shape_cast %45 : vector<128xf32> to vector<1x1x128xf32>
    %c3 = arith.constant 3 : index
    %c16_35 = arith.constant 16 : index
    %c0_36 = arith.constant 0 : index
    %47 = vector.load %arg13[%c3, %c16_35, %c0_36] : memref<24x48x128xbf16, #tpu.memory_space<vmem>>, vector<16x16x128xbf16>
    %48 = arith.extf %47 : vector<16x16x128xbf16> to vector<16x16x128xf32>
    %49 = vector.broadcast %46 : vector<1x1x128xf32> to vector<16x16x128xf32>
    %50 = arith.mulf %49, %48 : vector<16x16x128xf32>
    %51 = vector.shape_cast %43 : vector<1x128xf32> to vector<128xf32>
    %52 = vector.shape_cast %51 : vector<128xf32> to vector<1x1x128xf32>
    %53 = vector.broadcast %52 : vector<1x1x128xf32> to vector<16x16x128xf32>
    %54 = arith.addf %50, %53 : vector<16x16x128xf32>
    %c4_37 = arith.constant 4 : index
    %c16_38 = arith.constant 16 : index
    %c0_39 = arith.constant 0 : index
    %55 = vector.load %arg13[%c4_37, %c16_38, %c0_39] : memref<24x48x128xbf16, #tpu.memory_space<vmem>>, vector<16x16x128xbf16>
    %56 = arith.extf %55 : vector<16x16x128xbf16> to vector<16x16x128xf32>
    %57 = vector.extract_strided_slice %42 {offsets = [1, 0], sizes = [1, 128], strides = [1, 1]} : vector<3x128xf32> to vector<1x128xf32>
    %58 = vector.shape_cast %57 : vector<1x128xf32> to vector<128xf32>
    %59 = vector.shape_cast %58 : vector<128xf32> to vector<1x1x128xf32>
    %60 = vector.broadcast %59 : vector<1x1x128xf32> to vector<16x16x128xf32>
    %61 = arith.mulf %60, %56 : vector<16x16x128xf32>
    %62 = arith.addf %54, %61 : vector<16x16x128xf32>
    %c5 = arith.constant 5 : index
    %c16_40 = arith.constant 16 : index
    %c0_41 = arith.constant 0 : index
    %63 = vector.load %arg13[%c5, %c16_40, %c0_41] : memref<24x48x128xbf16, #tpu.memory_space<vmem>>, vector<16x16x128xbf16>
    %64 = arith.extf %63 : vector<16x16x128xbf16> to vector<16x16x128xf32>
    %65 = vector.extract_strided_slice %42 {offsets = [2, 0], sizes = [1, 128], strides = [1, 1]} : vector<3x128xf32> to vector<1x128xf32>
    %66 = vector.shape_cast %65 : vector<1x128xf32> to vector<128xf32>
    %67 = vector.shape_cast %66 : vector<128xf32> to vector<1x1x128xf32>
    %68 = vector.broadcast %67 : vector<1x1x128xf32> to vector<16x16x128xf32>
    %69 = arith.mulf %68, %64 : vector<16x16x128xf32>
    %70 = arith.addf %62, %69 : vector<16x16x128xf32>
    %71 = arith.truncf %70 : vector<16x16x128xf32> to vector<16x16x128xbf16>
    %c4_42 = arith.constant 4 : index
    %c16_43 = arith.constant 16 : index
    %c0_44 = arith.constant 0 : index
    %72 = vector.load %arg13[%c4_42, %c16_43, %c0_44] : memref<24x48x128xbf16, #tpu.memory_space<vmem>>, vector<16x16x128xbf16>
    tpu.vector_store %arg13[%c4_42, %c16_43, %c0_44], %71 {strides = array<i32>} : memref<24x48x128xbf16, #tpu.memory_space<vmem>>, vector<16x16x128xbf16>,
    %c0_45 = arith.constant 0 : index
    %c0_46 = arith.constant 0 : index
    %73 = vector.load %arg6[%c0_45, %c0_46] : memref<5x128xf32, #tpu.memory_space<vmem>>, vector<5x128xf32>
    %c0_47 = arith.constant 0 : index
    %c0_48 = arith.constant 0 : index
    %74 = vector.load %arg7[%c0_47, %c0_48] : memref<1x128xf32, #tpu.memory_space<vmem>>, vector<1x128xf32>
    %75 = vector.extract_strided_slice %73 {offsets = [0, 0], sizes = [1, 128], strides = [1, 1]} : vector<5x128xf32> to vector<1x128xf32>
    %76 = vector.shape_cast %75 : vector<1x128xf32> to vector<128xf32>
    %77 = vector.shape_cast %76 : vector<128xf32> to vector<1x1x128xf32>
    %c4_49 = arith.constant 4 : index
    %c12 = arith.constant 12 : index
    %c0_50 = arith.constant 0 : index
    %78 = vector.load %arg13[%c4_49, %c12, %c0_50] : memref<24x48x128xbf16, #tpu.memory_space<vmem>>, vector<16x16x128xbf16>
    %79 = arith.extf %78 : vector<16x16x128xbf16> to vector<16x16x128xf32>
    %80 = vector.broadcast %77 : vector<1x1x128xf32> to vector<16x16x128xf32>
    %81 = arith.mulf %80, %79 : vector<16x16x128xf32>
    %82 = vector.shape_cast %74 : vector<1x128xf32> to vector<128xf32>
    %83 = vector.shape_cast %82 : vector<128xf32> to vector<1x1x128xf32>
    %84 = vector.broadcast %83 : vector<1x1x128xf32> to vector<16x16x128xf32>
    %85 = arith.addf %81, %84 : vector<16x16x128xf32>
    %c4_51 = arith.constant 4 : index
    %c14 = arith.constant 14 : index
    %c0_52 = arith.constant 0 : index
    %86 = vector.load %arg13[%c4_51, %c14, %c0_52] : memref<24x48x128xbf16, #tpu.memory_space<vmem>>, vector<16x16x128xbf16>
    %87 = arith.extf %86 : vector<16x16x128xbf16> to vector<16x16x128xf32>
    %88 = vector.extract_strided_slice %73 {offsets = [1, 0], sizes = [1, 128], strides = [1, 1]} : vector<5x128xf32> to vector<1x128xf32>
    %89 = vector.shape_cast %88 : vector<1x128xf32> to vector<128xf32>
    %90 = vector.shape_cast %89 : vector<128xf32> to vector<1x1x128xf32>
    %91 = vector.broadcast %90 : vector<1x1x128xf32> to vector<16x16x128xf32>
    %92 = arith.mulf %91, %87 : vector<16x16x128xf32>
    %93 = arith.addf %85, %92 : vector<16x16x128xf32>
    %c4_53 = arith.constant 4 : index
    %c16_54 = arith.constant 16 : index
    %c0_55 = arith.constant 0 : index
    %94 = vector.load %arg13[%c4_53, %c16_54, %c0_55] : memref<24x48x128xbf16, #tpu.memory_space<vmem>>, vector<16x16x128xbf16>
    %95 = arith.extf %94 : vector<16x16x128xbf16> to vector<16x16x128xf32>
    %96 = vector.extract_strided_slice %73 {offsets = [2, 0], sizes = [1, 128], strides = [1, 1]} : vector<5x128xf32> to vector<1x128xf32>
    %97 = vector.shape_cast %96 : vector<1x128xf32> to vector<128xf32>
    %98 = vector.shape_cast %97 : vector<128xf32> to vector<1x1x128xf32>
    %99 = vector.broadcast %98 : vector<1x1x128xf32> to vector<16x16x128xf32>
    %100 = arith.mulf %99, %95 : vector<16x16x128xf32>
    %101 = arith.addf %93, %100 : vector<16x16x128xf32>
    %c4_56 = arith.constant 4 : index
    %c18 = arith.constant 18 : index
    %c0_57 = arith.constant 0 : index
    %102 = vector.load %arg13[%c4_56, %c18, %c0_57] : memref<24x48x128xbf16, #tpu.memory_space<vmem>>, vector<16x16x128xbf16>
    %103 = arith.extf %102 : vector<16x16x128xbf16> to vector<16x16x128xf32>
    %104 = vector.extract_strided_slice %73 {offsets = [3, 0], sizes = [1, 128], strides = [1, 1]} : vector<5x128xf32> to vector<1x128xf32>
    %105 = vector.shape_cast %104 : vector<1x128xf32> to vector<128xf32>
    %106 = vector.shape_cast %105 : vector<128xf32> to vector<1x1x128xf32>
    %107 = vector.broadcast %106 : vector<1x1x128xf32> to vector<16x16x128xf32>
    %108 = arith.mulf %107, %103 : vector<16x16x128xf32>
    %109 = arith.addf %101, %108 : vector<16x16x128xf32>
    %c4_58 = arith.constant 4 : index
    %c20_59 = arith.constant 20 : index
    %c0_60 = arith.constant 0 : index
    %110 = vector.load %arg13[%c4_58, %c20_59, %c0_60] : memref<24x48x128xbf16, #tpu.memory_space<vmem>>, vector<16x16x128xbf16>
    %111 = arith.extf %110 : vector<16x16x128xbf16> to vector<16x16x128xf32>
    %112 = vector.extract_strided_slice %73 {offsets = [4, 0], sizes = [1, 128], strides = [1, 1]} : vector<5x128xf32> to vector<1x128xf32>
    %113 = vector.shape_cast %112 : vector<1x128xf32> to vector<128xf32>
    %114 = vector.shape_cast %113 : vector<128xf32> to vector<1x1x128xf32>
    %115 = vector.broadcast %114 : vector<1x1x128xf32> to vector<16x16x128xf32>
    %116 = arith.mulf %115, %111 : vector<16x16x128xf32>
    %117 = arith.addf %109, %116 : vector<16x16x128xf32>
    %118 = arith.truncf %117 : vector<16x16x128xf32> to vector<16x16x128xbf16>
    %c4_61 = arith.constant 4 : index
    %c16_62 = arith.constant 16 : index
    %c0_63 = arith.constant 0 : index
    %119 = vector.load %arg13[%c4_61, %c16_62, %c0_63] : memref<24x48x128xbf16, #tpu.memory_space<vmem>>, vector<16x16x128xbf16>
    tpu.vector_store %arg13[%c4_61, %c16_62, %c0_63], %118 {strides = array<i32>} : memref<24x48x128xbf16, #tpu.memory_space<vmem>>, vector<16x16x128xbf16>,
    %c0_64 = arith.constant 0 : index
    %c0_65 = arith.constant 0 : index
    %120 = vector.load %arg8[%c0_64, %c0_65] : memref<5x128xf32, #tpu.memory_space<vmem>>, vector<5x128xf32>
    %c0_66 = arith.constant 0 : index
    %c0_67 = arith.constant 0 : index
    %121 = vector.load %arg9[%c0_66, %c0_67] : memref<1x128xf32, #tpu.memory_space<vmem>>, vector<1x128xf32>
    %122 = vector.extract_strided_slice %120 {offsets = [0, 0], sizes = [1, 128], strides = [1, 1]} : vector<5x128xf32> to vector<1x128xf32>
    %123 = vector.shape_cast %122 : vector<1x128xf32> to vector<128xf32>
    %124 = vector.shape_cast %123 : vector<128xf32> to vector<1x1x128xf32>
    %c0_68 = arith.constant 0 : index
    %c16_69 = arith.constant 16 : index
    %c0_70 = arith.constant 0 : index
    %125 = vector.load %arg13[%c0_68, %c16_69, %c0_70] : memref<24x48x128xbf16, #tpu.memory_space<vmem>>, vector<16x16x128xbf16>
    %126 = arith.extf %125 : vector<16x16x128xbf16> to vector<16x16x128xf32>
    %127 = vector.broadcast %124 : vector<1x1x128xf32> to vector<16x16x128xf32>
    %128 = arith.mulf %127, %126 : vector<16x16x128xf32>
    %129 = vector.shape_cast %121 : vector<1x128xf32> to vector<128xf32>
    %130 = vector.shape_cast %129 : vector<128xf32> to vector<1x1x128xf32>
    %131 = vector.broadcast %130 : vector<1x1x128xf32> to vector<16x16x128xf32>
    %132 = arith.addf %128, %131 : vector<16x16x128xf32>
    %c2 = arith.constant 2 : index
    %c16_71 = arith.constant 16 : index
    %c0_72 = arith.constant 0 : index
    %133 = vector.load %arg13[%c2, %c16_71, %c0_72] : memref<24x48x128xbf16, #tpu.memory_space<vmem>>, vector<16x16x128xbf16>
    %134 = arith.extf %133 : vector<16x16x128xbf16> to vector<16x16x128xf32>
    %135 = vector.extract_strided_slice %120 {offsets = [1, 0], sizes = [1, 128], strides = [1, 1]} : vector<5x128xf32> to vector<1x128xf32>
    %136 = vector.shape_cast %135 : vector<1x128xf32> to vector<128xf32>
    %137 = vector.shape_cast %136 : vector<128xf32> to vector<1x1x128xf32>
    %138 = vector.broadcast %137 : vector<1x1x128xf32> to vector<16x16x128xf32>
    %139 = arith.mulf %138, %134 : vector<16x16x128xf32>
    %140 = arith.addf %132, %139 : vector<16x16x128xf32>
    %c4_73 = arith.constant 4 : index
    %c16_74 = arith.constant 16 : index
    %c0_75 = arith.constant 0 : index
    %141 = vector.load %arg13[%c4_73, %c16_74, %c0_75] : memref<24x48x128xbf16, #tpu.memory_space<vmem>>, vector<16x16x128xbf16>
    %142 = arith.extf %141 : vector<16x16x128xbf16> to vector<16x16x128xf32>
    %143 = vector.extract_strided_slice %120 {offsets = [2, 0], sizes = [1, 128], strides = [1, 1]} : vector<5x128xf32> to vector<1x128xf32>
    %144 = vector.shape_cast %143 : vector<1x128xf32> to vector<128xf32>
    %145 = vector.shape_cast %144 : vector<128xf32> to vector<1x1x128xf32>
    %146 = vector.broadcast %145 : vector<1x1x128xf32> to vector<16x16x128xf32>
    %147 = arith.mulf %146, %142 : vector<16x16x128xf32>
    %148 = arith.addf %140, %147 : vector<16x16x128xf32>
    %c6 = arith.constant 6 : index
    %c16_76 = arith.constant 16 : index
    %c0_77 = arith.constant 0 : index
    %149 = vector.load %arg13[%c6, %c16_76, %c0_77] : memref<24x48x128xbf16, #tpu.memory_space<vmem>>, vector<16x16x128xbf16>
    %150 = arith.extf %149 : vector<16x16x128xbf16> to vector<16x16x128xf32>
    %151 = vector.extract_strided_slice %120 {offsets = [3, 0], sizes = [1, 128], strides = [1, 1]} : vector<5x128xf32> to vector<1x128xf32>
    %152 = vector.shape_cast %151 : vector<1x128xf32> to vector<128xf32>
    %153 = vector.shape_cast %152 : vector<128xf32> to vector<1x1x128xf32>
    %154 = vector.broadcast %153 : vector<1x1x128xf32> to vector<16x16x128xf32>
    %155 = arith.mulf %154, %150 : vector<16x16x128xf32>
    %156 = arith.addf %148, %155 : vector<16x16x128xf32>
    %c8 = arith.constant 8 : index
    %c16_78 = arith.constant 16 : index
    %c0_79 = arith.constant 0 : index
    %157 = vector.load %arg13[%c8, %c16_78, %c0_79] : memref<24x48x128xbf16, #tpu.memory_space<vmem>>, vector<16x16x128xbf16>
    %158 = arith.extf %157 : vector<16x16x128xbf16> to vector<16x16x128xf32>
    %159 = vector.extract_strided_slice %120 {offsets = [4, 0], sizes = [1, 128], strides = [1, 1]} : vector<5x128xf32> to vector<1x128xf32>
    %160 = vector.shape_cast %159 : vector<1x128xf32> to vector<128xf32>
    %161 = vector.shape_cast %160 : vector<128xf32> to vector<1x1x128xf32>
    %162 = vector.broadcast %161 : vector<1x1x128xf32> to vector<16x16x128xf32>
    %163 = arith.mulf %162, %158 : vector<16x16x128xf32>
    %164 = arith.addf %156, %163 : vector<16x16x128xf32>
    %165 = arith.truncf %164 : vector<16x16x128xf32> to vector<16x16x128xbf16>
    %c4_80 = arith.constant 4 : index
    %c16_81 = arith.constant 16 : index
    %c0_82 = arith.constant 0 : index
    %166 = vector.load %arg13[%c4_80, %c16_81, %c0_82] : memref<24x48x128xbf16, #tpu.memory_space<vmem>>, vector<16x16x128xbf16>
    tpu.vector_store %arg13[%c4_80, %c16_81, %c0_82], %165 {strides = array<i32>} : memref<24x48x128xbf16, #tpu.memory_space<vmem>>, vector<16x16x128xbf16>,
    %c0_83 = arith.constant 0 : index
    %c0_84 = arith.constant 0 : index
    %167 = vector.load %arg10[%c0_83, %c0_84] : memref<128x128xbf16, #tpu.memory_space<vmem>>, vector<128x128xbf16>
    %c0_85 = arith.constant 0 : index
    %c0_86 = arith.constant 0 : index
    %168 = vector.load %arg11[%c0_85, %c0_86] : memref<1x128xf32, #tpu.memory_space<vmem>>, vector<1x128xf32>
    %c4_87 = arith.constant 4 : index
    %c16_88 = arith.constant 16 : index
    %c0_89 = arith.constant 0 : index
    %169 = vector.load %arg13[%c4_87, %c16_88, %c0_89] : memref<24x48x128xbf16, #tpu.memory_space<vmem>>, vector<16x16x128xbf16>
    %170 = vector.shape_cast %169 : vector<16x16x128xbf16> to vector<256x128xbf16>
    %cst_90 = arith.constant dense<0.000000e+00> : vector<256x128xf32>
    %171 = tpu.matmul %170, %167, %cst_90 {dimension_numbers = #tpu.dot_dimension_numbers<[1], [0], [0], [1], [0, 0, 1, 1], [], []>} : vector<256x128xbf16>, vector<128x128xbf16>, vector<256x128xf32> -> vector<256x128xf32>
    %172 = vector.broadcast %168 : vector<1x128xf32> to vector<256x128xf32>
    %173 = arith.addf %171, %172 : vector<256x128xf32>
    %c0_91 = arith.constant 0 : index
    %c0_92 = arith.constant 0 : index
    %c0_93 = arith.constant 0 : index
    %c0_94 = arith.constant 0 : index
    %174 = vector.load %arg1[%c0_91, %c0_92, %c0_93, %c0_94] : memref<1x16x16x128xbf16, #tpu.memory_space<vmem>>, vector<1x16x16x128xbf16>
    %175 = vector.shape_cast %174 : vector<1x16x16x128xbf16> to vector<16x16x128xbf16>
    %176 = vector.shape_cast %175 : vector<16x16x128xbf16> to vector<256x128xbf16>
    %177 = arith.extf %176 : vector<256x128xbf16> to vector<256x128xf32>
    %178 = arith.mulf %177, %173 : vector<256x128xf32>
    %179 = vector.shape_cast %178 : vector<256x128xf32> to vector<16x16x128xf32>
    %180 = arith.truncf %179 : vector<16x16x128xf32> to vector<16x16x128xbf16>
    %c0_95 = arith.constant 0 : index
    %c0_96 = arith.constant 0 : index
    %c0_97 = arith.constant 0 : index
    %c0_98 = arith.constant 0 : index
    %181 = vector.load %arg12[%c0_95, %c0_96, %c0_97, %c0_98] : memref<1x16x16x128xbf16, #tpu.memory_space<vmem>>, vector<1x16x16x128xbf16>
    %182 = vector.shape_cast %181 : vector<1x16x16x128xbf16> to vector<16x16x128xbf16>
    %183 = vector.shape_cast %180 : vector<16x16x128xbf16> to vector<1x16x16x128xbf16>
    tpu.vector_store %arg12[%c0_95, %c0_96, %c0_97, %c0_98], %183 {strides = array<i32>} : memref<1x16x16x128xbf16, #tpu.memory_space<vmem>>, vector<1x16x16x128xbf16>,
    return
  }
  func.func @transform_0(%arg0: i32) -> (i32, i32, i32, i32) {
    %c0_i32 = arith.constant 0 : i32
    %c0_i32_0 = arith.constant 0 : i32
    %c0_i32_1 = arith.constant 0 : i32
    %c0_i32_2 = arith.constant 0 : i32
    return %arg0, %c0_i32, %c0_i32_0, %c0_i32_1 : i32, i32, i32, i32
  }
  func.func @transform_1(%arg0: i32) -> (i32, i32) {
    %c0_i32 = arith.constant 0 : i32
    %c0_i32_0 = arith.constant 0 : i32
    %c0_i32_1 = arith.constant 0 : i32
    return %c0_i32, %c0_i32_0 : i32, i32
  }
  func.func @transform_2(%arg0: i32) -> (i32, i32) {
    %c0_i32 = arith.constant 0 : i32
    %c0_i32_0 = arith.constant 0 : i32
    %c0_i32_1 = arith.constant 0 : i32
    return %c0_i32, %c0_i32_0 : i32, i32
  }
  func.func @transform_3(%arg0: i32) -> (i32, i32) {
    %c0_i32 = arith.constant 0 : i32
    %c0_i32_0 = arith.constant 0 : i32
    %c0_i32_1 = arith.constant 0 : i32
    return %c0_i32, %c0_i32_0 : i32, i32
  }
  func.func @transform_4(%arg0: i32) -> (i32, i32) {
    %c0_i32 = arith.constant 0 : i32
    %c0_i32_0 = arith.constant 0 : i32
    %c0_i32_1 = arith.constant 0 : i32
    return %c0_i32, %c0_i32_0 : i32, i32
  }
  func.func @transform_5(%arg0: i32) -> (i32, i32) {
    %c0_i32 = arith.constant 0 : i32
    %c0_i32_0 = arith.constant 0 : i32
    %c0_i32_1 = arith.constant 0 : i32
    return %c0_i32, %c0_i32_0 : i32, i32
  }
  func.func @transform_6(%arg0: i32) -> (i32, i32) {
    %c0_i32 = arith.constant 0 : i32
    %c0_i32_0 = arith.constant 0 : i32
    %c0_i32_1 = arith.constant 0 : i32
    return %c0_i32, %c0_i32_0 : i32, i32
  }
  func.func @transform_7(%arg0: i32) -> (i32, i32) {
    %c0_i32 = arith.constant 0 : i32
    %c0_i32_0 = arith.constant 0 : i32
    %c0_i32_1 = arith.constant 0 : i32
    return %c0_i32, %c0_i32_0 : i32, i32
  }
  func.func @transform_8(%arg0: i32) -> (i32, i32) {
    %c0_i32 = arith.constant 0 : i32
    %c0_i32_0 = arith.constant 0 : i32
    %c0_i32_1 = arith.constant 0 : i32
    return %c0_i32, %c0_i32_0 : i32, i32
  }
  func.func @transform_9(%arg0: i32) -> (i32, i32) {
    %c0_i32 = arith.constant 0 : i32
    %c0_i32_0 = arith.constant 0 : i32
    %c0_i32_1 = arith.constant 0 : i32
    return %c0_i32, %c0_i32_0 : i32, i32
  }
  func.func @transform_10(%arg0: i32) -> (i32, i32) {
    %c0_i32 = arith.constant 0 : i32
    %c0_i32_0 = arith.constant 0 : i32
    %c0_i32_1 = arith.constant 0 : i32
    return %c0_i32, %c0_i32_0 : i32, i32
  }
  func.func @transform_11(%arg0: i32) -> (i32, i32, i32, i32) {
    %c0_i32 = arith.constant 0 : i32
    %c0_i32_0 = arith.constant 0 : i32
    %c0_i32_1 = arith.constant 0 : i32
    %c0_i32_2 = arith.constant 0 : i32
    return %arg0, %c0_i32, %c0_i32_0, %c0_i32_1 : i32, i32, i32, i32
  }
}

</mosaic_0001>

<bundles_post_ra>
// kernel: tpu_custom_call.1
= control target key start
LH: loop header
LB: loop body
LE: loop exit
PB: predicated region body
PF: predicated region fallthrough
CT: control target
= control target key end

     0   :  { %s9868_s0 = inlined_call_operand.hbm [shape: bf16[2,16,16,128], index: 0, kind: input, shape index: {}]   ;;  %s9869_s1 = inlined_call_operand.hbm [shape: f32[3,128], index: 1, kind: input, shape index: {}]   ;;  %s9870_s2 = inlined_call_operand.vmem [shape: f32[1,128], index: 2, kind: input, shape index: {}]   ;;  %s9871_s3 = inlined_call_operand.hbm [shape: f32[3,128], index: 3, kind: input, shape index: {}]   ;;  %s9872_s4 = inlined_call_operand.vmem [shape: f32[1,128], index: 4, kind: input, shape index: {}]   ;;  %s9873_s5 = inlined_call_operand.hbm [shape: f32[5,128], index: 5, kind: input, shape index: {}]   ;;  %s9874_s6 = inlined_call_operand.vmem [shape: f32[1,128], index: 6, kind: input, shape index: {}]   ;;  %s9875_s7 = inlined_call_operand.hbm [shape: f32[5,128], index: 7, kind: input, shape index: {}]   ;;  %s9876_s8 = inlined_call_operand.vmem [shape: f32[1,128], index: 8, kind: input, shape index: {}]   ;;  %s9877_s9 = inlined_call_operand.hbm [shape: bf16[128,128], index: 9, kind: input, shape index: {}]   ;;  %s9878_s10 = inlined_call_operand.vmem [shape: f32[1,128], index: 10, kind: input, shape index: {}]   ;;  %s9879_s11 = inlined_call_operand.hbm [shape: bf16[2,16,16,128], index: 11, kind: output, shape index: {}]  }
   0x1   :  { %10000 = sst [smem:[#allocation69_spill]] %s9869_s1 }
   0x2   :  { %10001 = sst [smem:[#allocation70_spill]] %s9871_s3 }
   0x3   :  { %10002 = sst [smem:[#allocation71_spill]] %s9873_s5 }
   0x4   :  { %10003 = sst [smem:[#allocation72_spill]] %s9875_s7 }
   0x5   :  { %10004 = sst [smem:[#allocation73_spill]] %s9877_s9 }
   0x6   :  { %16 = vsyncpa [#allocation4], 0 }
   0x7   :  { %18 = vsyncpa [#allocation4 + $0x1], 0 }
   0x8   :  { %19 = vsyncpa [#allocation7], 0 }
   0x9   :  { %20 = vsyncpa [#allocation10], 0 }
   0xa   :  { %21 = vsyncpa [#allocation13], 0 }
   0xb   :  { %22 = vsyncpa [#allocation5], 0 }
   0xc   :  { %24 = vsyncpa [#allocation5 + $0x1], 0  ;;  %s6883_s17 = smov 0   ;;  %s6885_s18 = smov 0  }
   0xd   :  { %s6887_s19 = smov 0   ;;  %s6889_s20 = smov 0  }
   0xe LB: > { %s10005_s1 = sld [smem:[#allocation69_spill]]  ;;  %s6907_s24 = sadd.s32 4294967295, %s6811_s20   ;;  %s6811_s20 = sphi %s6889_s20, %s10286_s20   ;;  %s6807_s19 = sphi %s6887_s19, %s10285_s19   ;;  %s6803_s18 = sphi %s6885_s18, %s10284_s18   ;;  %s6799_s17 = sphi %s6883_s17, %s10283_s17  }
   0xf   : > { %p5151_p0 = scmp.ge.s32.totalorder %s6811_s20, 1  ;;  %p51_p1 = scmp.eq.s32.totalorder %s6907_s24, 0 }
  0x10   : > { %p297_p2 = scmp.lt.s32.totalorder %s6811_s20, 3  ;;  %s6813_s26 = smov [#allocation6]  }
  0x11   : > { %s311_s27 = sshll.u32 %s6813_s26, 4  ;;  %s10007_s5 = sld [smem:[#allocation71_spill]]  ;;  %s312_s27 = int_to_ptr.vmem [resolvable:$true] %s311_s27 }
  0x12   : > { %p6912_p3 = pnand %p5151_p0, %p297_p2  ;;  %s6814_s13 = smov [#allocation9]  }
  0x13   : > { %s341_s14 = sshll.u32 %s6814_s13, 4  ;;  %s10009_s3 = sld [smem:[#allocation70_spill]]  ;;  %s342_s14 = int_to_ptr.vmem [resolvable:$true] %s341_s14 }
  0x14   : > { %s309_s23 = sshll.u32 %s10005_s1, 4  ;;  %p6462_p5 = pneg %p6912_p3  ;;  %s310_s23 = int_to_ptr.hbm [resolvable:$true] %s309_s23 }
  0x15   : > { %s10010_s7 = sld [smem:[#allocation72_spill]]  ;;  %s6815_s29 = smov [#allocation8]  }
  0x16   : > { %p6924_p6 = pnand %p6462_p5, %p51_p1  ;;  %s326_s1 = sshll.u32 %s6815_s29, 4  ;;  %s327_s1 = int_to_ptr.vmem [resolvable:$true] %s326_s1 }
  0x17   : > { %s339_s30 = sshll.u32 %s10007_s5, 4  ;;  %s6816_s13 = smov [#allocation11]   ;;  %s340_s30 = int_to_ptr.hbm [resolvable:$true] %s339_s30 }
  0x18   : > { %6465 = dma.hbm_to_vmem [thread:$0]  (!%p6924_p6), %s310_s23, 64, %s312_s27, [#allocation7]  }
  0x19   : > { %s324_s21 = sshll.u32 %s10009_s3, 4  ;;  %s356_s23 = sshll.u32 %s6816_s13, 4  ;;  %s325_s21 = int_to_ptr.hbm [resolvable:$true] %s324_s21  ;;  %s357_s23 = int_to_ptr.vmem [resolvable:$true] %s356_s23 }
  0x1a   : > { %6471 = dma.hbm_to_vmem [thread:$0]  (!%p6924_p6), %s340_s30, 128, %s342_s14, [#allocation10]  }
  0x1b   : > { %s354_s28 = sshll.u32 %s10010_s7, 4  ;;  %s10011_s9 = sld [smem:[#allocation73_spill]]  ;;  %s355_s28 = int_to_ptr.hbm [resolvable:$true] %s354_s28 }
  0x1c   : > { %6468 = dma.hbm_to_vmem [thread:$0]  (!%p6924_p6), %s325_s21, 64, %s327_s1, [#allocation7]  }
  0x1d   : > { %6474 = dma.hbm_to_vmem [thread:$0]  (!%p6924_p6), %s355_s28, 128, %s357_s23, [#allocation10]  }
  0x1e   : > { %s6817_s15 = smov [#allocation12]   ;;  %s9880_s16 = smov 64  }
  0x1f   : > { %s370_s1 = sshll.u32 %s6817_s15, 4  ;;  %s9881_s21 = smov 4   ;;  %s371_s1 = int_to_ptr.vmem [resolvable:$true] %s370_s1 }
  0x20   : > { %s5150_s22 = sadd.s32 4294967294, %s6811_s20   ;;  %s6952_s26 = sadd.s32 1, %s6811_s20  }
  0x21   : > { %s368_s14 = sshll.u32 %s10011_s9, 4  ;;  %s37_s29 = sadd.s32 1, %s6807_s19  ;;  %s369_s14 = int_to_ptr.hbm [resolvable:$true] %s368_s14 }
  0x22   : > { %6477 = dma.hbm_to_vmem [thread:$0]  (!%p6924_p6), %s369_s14, 1024, %s371_s1, [#allocation13], %s9880_s16, %s9880_s16, %s9881_s21  }
  0x23   : > { %s34_s28 = ssub.s32 %s6811_s20, %s6952_s26  ;;  %p44_p7 = scmp.ne.s32.totalorder %s6807_s19, %s6803_s18 }
  0x24   : > { %p35_p8 = scmp.eq.s32.totalorder %s34_s28, 0  ;;  %p45_p9 = scmp.eq.s32.totalorder %s6811_s20, 0 }
  0x25   : > { %p50_p10 = scmp.ne.s32.totalorder %s6803_s18, %s6799_s17  ;;  %p284_p11 = scmp.eq.s32.totalorder %s6907_s24, 1 }
  0x26   : > { %s6964_s13 = scalar_select %p35_p8, %s6807_s19, %s37_s29  }
  0x27   : > { %p6968_p12 = por %p51_p1, %p50_p10  ;;  %p6972_p13 = por %p284_p11, %p44_p7 }
  0x28   : > { %p290_p0 = scmp.eq.s32.totalorder %s5150_s22, 1  ;;  %p46_p2 = por %p45_p9, %p44_p7 }
  0x29   : > { %s387_s27 = sand.u32 1, %s6807_s19   ;;  %p6491_p6 = scmp.lt.s32.totalorder %s6811_s20, 2 }
  0x2a   : > { %p6977_p5 = por %p290_p0, %p50_p10  ;;  %s5158_s14 = sshll.u32 %s387_s27, 7 }
  0x2b   : > { %s5302_s15 = sshll.u32 %s6811_s20, 7  ;;  %s391_s21 = scalar_lea.vmem [#allocation3], %s5158_s14 }
  0x2c   : > { %s396_s28 = scalar_lea.hbm %s9868_s0, %s5302_s15  ;;  %s399_s3 = sshll.u32 %s391_s21, 4  ;;  %s400_s3 = int_to_ptr.vmem [resolvable:$true] %s399_s3 }
  0x2d   : > { %s397_s16 = sshll.u32 %s396_s28, 4  ;;  %p6986_p8 = pnand %p6491_p6, %p46_p2  ;;  %s398_s16 = int_to_ptr.hbm [resolvable:$true] %s397_s16 }
  0x2e   : > { %s388_s5 = scalar_lea.sflag [#allocation4], %s387_s27  ;;  %s6703_s7 = sshra.s32 %s398_s16, 4  ;;  %s6704_s7 = int_to_ptr.hbm [resolvable:$true] %s6703_s7 }
  0x2f   : > { %s6705_s9 = scalar_lea.hbm %s6704_s7, 128  ;;  %p6707_p9 = pneg %p6986_p8 }
  0x30   : > { %p6706_p7 = scmp.ne.s32.totalorder %s6704_s7, %s6705_s9  ;;  %s6710_s21 = scalar_lea.hbm %s9868_s0, 256 }
  0x31   : > { %p6711_p0 = scmp.lt.s32.totalorder %s6704_s7, %s9868_s0  ;;  %p6712_p2 = scmp.lt.s32.totalorder %s6710_s21, %s6705_s9 }
  0x32   : > { %p6708_p10 = pnand %p6707_p9, %p6706_p7 }
  0x33   : > { %p6713_p6 = por %p6712_p2, %p6711_p0 }
  0x34   : > { %p6709_p11 = pneg %p6708_p10 }
  0x36   : > { %p6714_p4 = pnand %p6713_p6, %p6709_p11 }
  0x38   : > { %6717 = shalt.err (!%p6714_p4)
}
  0x39   : > { %s10016_s27 = smov 4   ;;  %s10017_s28 = smov 64  }
  0x3a   : > { %6481 = dma.hbm_to_vmem [thread:$0]  (!%p6986_p8), %s398_s16, 2048, %s400_s3, %s388_s5, %s10017_s28, %s10017_s28, %s10016_s27  }
  0x3b   : > { %411 = sbr.rel (%p6912_p3) target bundleno = 924 (0x39c), region = 64 }
  0x40   : > { %s7006_s15 = sand.u32 1, %s6803_s18  }
  0x41   : > { %s5162_s7 = sshll.u32 %s7006_s15, 7  ;;  %s414_s9 = scalar_lea.sflag [#allocation4], %s7006_s15 }
  0x42   : > { %s7012_s1 = scalar_lea.vmem [#allocation3], %s5162_s7 }
  0x43   : > { %6778 = dma.done.wait (%p6968_p12), %s414_s9, 2048  }
  0x44   : > { %6780 = vsyncadd (%p6968_p12), %s414_s9, 4294965248 }
  0x45   : > { %6782 = dma.done.wait (%p51_p1), [#allocation7], 128  }
  0x46   : > { %6784 = vsyncadd (%p51_p1), [#allocation7], 4294967168 }
  0x47   : > { %6786 = dma.done.wait (%p51_p1), [#allocation10], 256  }
  0x48   : > { %6788 = vsyncadd (%p51_p1), [#allocation10], 4294967040 }
  0x49   : > { %6790 = dma.done.wait (%p51_p1), [#allocation13], 1024  }
  0x4a   : > { %6792 = vsyncadd (%p51_p1), [#allocation13], 4294966272  ;;  %v6820_v0 = vmov 0   ;;  %v5310_v1 = vld [vmem:[#allocation12 + $0x38] sm:$0xff]  ;;  %v5309_v2 = vld [vmem:[#allocation12 + $0x30] sm:$0xff]  ;;  %vm924_vm0 = vcmask 1046528  }
  0x4b   : > { %485 = vst [vmem:[#allocation2 + $0x8] sm:$0xf] %v6820_v0  ;;  %4764 = vmatpush.bf16.msra.mxu0 %v5310_v1  ;;  %6414 = vmatpush.bf16.msra.mxu1 %v5310_v1  ;;  %v5308_v3 = vld [vmem:[#allocation12 + $0x28] sm:$0xff]  ;;  %v5307_v4 = vld [vmem:[#allocation12 + $0x20] sm:$0xff]  ;;  %v5306_v5 = vld [vmem:[#allocation12 + $0x18] sm:$0xff]  ;;  %vm1198_vm1 = vcmask 1045504  }
  0x4c   : > { %486 = vst [vmem:[#allocation2 + $0xc] sm:$0xf] %v6820_v0  ;;  %6415 = vmatpush.bf16.msra.mxu2 %v5310_v1  ;;  %6416 = vmatpush.bf16.msra.mxu3 %v5310_v1  ;;  %v5305_v6 = vld [vmem:[#allocation12 + $0x10] sm:$0xff]  ;;  %v5304_v7 = vld [vmem:[#allocation12 + $0x8] sm:$0xff]  ;;  %v5303_v9 = vld [vmem:[#allocation12] sm:$0xff]  ;;  %vm2932_vm5 = vcmask 1043456  }
  0x4d   : > { %491 = vst [vmem:[#allocation2 + $0x20] sm:$0xf] %v6820_v0  ;;  %v7071_v12 = vld [vmem:[#allocation6] sm:$0x7]  ;;  %v599_v31 = vld [vmem:[%s7012_s1 + $0x8] sm:$0xff]   ;;  %v601_v33 = vld [vmem:[%s7012_s1 + $0x10] sm:$0xff]  }
  0x4e   : > { %492 = vst [vmem:[#allocation2 + $0x24] sm:$0xf] %v6820_v0  ;;  %v597_v26 = vld [vmem:[%s7012_s1] sm:$0xff]   ;;  %v7080_v30 = vperm.slane %v7071_v12, 0  ;;  %v603_v36 = vld [vmem:[%s7012_s1 + $0x18] sm:$0xff]   ;;  %v607_v46 = vld [vmem:[%s7012_s1 + $0x28] sm:$0xff]  }
  0x4f   : > { %497 = vst [vmem:[#allocation2 + $0x38] sm:$0xf] %v6820_v0  ;;  %4765 = vmatpush.bf16.msra.mxu0 %v5309_v2  ;;  %6417 = vmatpush.bf16.msra.mxu1 %v5309_v2  ;;  %v605_v41 = vld [vmem:[%s7012_s1 + $0x20] sm:$0xff]   ;;  %v609_v48 = vld [vmem:[%s7012_s1 + $0x30] sm:$0xff]   ;;  %v611_v49 = vld [vmem:[%s7012_s1 + $0x38] sm:$0xff]   ;;  %v7140_v63 = vperm.slane %v7071_v12, 1 }
  0x50   : > { %498 = vst [vmem:[#allocation2 + $0x3c] sm:$0xf] %v6820_v0  ;;  %6418 = vmatpush.bf16.msra.mxu2 %v5309_v2  ;;  %6419 = vmatpush.bf16.msra.mxu3 %v5309_v2  ;;  %v7100_v45 = vld [vmem:[%s9870_s2] ss:$0 sm:$0xff]  ;;  %v615_v53 = vld [vmem:[%s7012_s1 + $0x48] sm:$0xff]   ;;  %vm3238_vm6 = vcmask 1041408  }
  0x51   : > { %503 = vst [vmem:[#allocation2 + $0x50] sm:$0xf] %v6820_v0  ;;  %v613_v50 = vld [vmem:[%s7012_s1 + $0x40] sm:$0xff]   ;;  %vm1423_vm2 = vsmask.f32 256  ;;  %vm3673_vm7 = vcmask 1045508  }
  0x52   : > { %504 = vst [vmem:[#allocation2 + $0x54] sm:$0xf] %v6820_v0  ;;  %vm1424_vm3 = vsmask.f32 4368  ;;  %vm8274_vm8 = vmor %vm3238_vm6, %vm3673_vm7  ;;  %s9780_s25 = scalar_lea.vmem [#allocation14], %s5162_s7  ;;  %s5327_s7 = sshll.u32 %s6907_s24, 7 }
  0x53   : > { %510 = vst [vmem:[#allocation2 + $0x1e8] sm:$0xf] %v6820_v0  ;;  %4766 = vmatpush.bf16.msra.mxu0 %v5308_v3  ;;  %6420 = vmatpush.bf16.msra.mxu1 %v5308_v3  ;;  %vm7675_vm4 = vmor %vm1423_vm2, %vm1424_vm3  ;;  %s5025_s22 = scalar_lea.hbm %s9879_s11, %s5327_s7  ;;  %s5026_s21 = sshll.u32 %s9780_s25, 4  ;;  %s5027_s21 = int_to_ptr.vmem [resolvable:$true] %s5026_s21 }
  0x54   : > { %511 = vst [vmem:[#allocation2 + $0x1ec] sm:$0xf] %v6820_v0  ;;  %6421 = vmatpush.bf16.msra.mxu2 %v5308_v3  ;;  %6422 = vmatpush.bf16.msra.mxu3 %v5308_v3  ;;  %s5028_s14 = sshll.u32 %s5025_s22, 4  ;;  %s5014_s24 = scalar_lea.sflag [#allocation5], %s7006_s15  ;;  %s5029_s14 = int_to_ptr.hbm [resolvable:$true] %s5028_s14 }
  0x55   : > { %516 = vst [vmem:[#allocation2 + $0x200] sm:$0xf] %v6820_v0  ;;  %s6753_s9 = scalar_lea.hbm %s9879_s11, 256 }
  0x56   : > { %517 = vst [vmem:[#allocation2 + $0x204] sm:$0xf] %v6820_v0 }
  0x57   : > { %522 = vst [vmem:[#allocation2 + $0x218] sm:$0xf] %v6820_v0  ;;  %4767 = vmatpush.bf16.msra.mxu0 %v5307_v4  ;;  %6423 = vmatpush.bf16.msra.mxu1 %v5307_v4 }
  0x58   : > { %523 = vst [vmem:[#allocation2 + $0x21c] sm:$0xf] %v6820_v0  ;;  %6424 = vmatpush.bf16.msra.mxu2 %v5307_v4  ;;  %6425 = vmatpush.bf16.msra.mxu3 %v5307_v4 }
  0x59   : > { %528 = vst [vmem:[#allocation2 + $0x230] sm:$0xf] %v6820_v0 }
  0x5a   : > { %529 = vst [vmem:[#allocation2 + $0x234] sm:$0xf] %v6820_v0 }
  0x5b   : > { %534 = vst [vmem:[#allocation2 + $0x64] sm:$0xf] %v6820_v0  ;;  %4768 = vmatpush.bf16.msra.mxu0 %v5306_v5  ;;  %6426 = vmatpush.bf16.msra.mxu1 %v5306_v5 }
  0x5c   : > { %536 = vst [vmem:[#allocation2 + $0x7c] sm:$0xf] %v6820_v0  ;;  %6427 = vmatpush.bf16.msra.mxu2 %v5306_v5  ;;  %6428 = vmatpush.bf16.msra.mxu3 %v5306_v5 }
  0x5d   : > { %538 = vst [vmem:[#allocation2 + $0x94] sm:$0xf] %v6820_v0 }
  0x5e   : > { %540 = vst [vmem:[#allocation2 + $0xac] sm:$0xf] %v6820_v0 }
  0x5f   : > { %542 = vst [vmem:[#allocation2 + $0xc4] sm:$0xf] %v6820_v0  ;;  %4769 = vmatpush.bf16.msra.mxu0 %v5305_v6  ;;  %6429 = vmatpush.bf16.msra.mxu1 %v5305_v6 }
  0x60   : > { %544 = vst [vmem:[#allocation2 + $0xdc] sm:$0xf] %v6820_v0  ;;  %6430 = vmatpush.bf16.msra.mxu2 %v5305_v6  ;;  %6431 = vmatpush.bf16.msra.mxu3 %v5305_v6 }
  0x61   : > { %546 = vst [vmem:[#allocation2 + $0xf4] sm:$0xf] %v6820_v0 }
  0x62   : > { %548 = vst [vmem:[#allocation2 + $0x10c] sm:$0xf] %v6820_v0  ;;  %v663_v8 = vld [vmem:[#allocation2 + $0x64] sm:$0x8] }
  0x63   : > { %550 = vst [vmem:[#allocation2 + $0x124] sm:$0xf] %v6820_v0  ;;  %v666_v10 = vld [vmem:[#allocation2 + $0x7c] sm:$0x8]  ;;  %4770 = vmatpush.bf16.msra.mxu0 %v5304_v7  ;;  %6432 = vmatpush.bf16.msra.mxu1 %v5304_v7  ;;  %v711_v20 = vunpack.c.l.bf16 %v663_v8 }
  0x64   : > { %552 = vst [vmem:[#allocation2 + $0x13c] sm:$0xf] %v6820_v0  ;;  %v669_v11 = vld [vmem:[#allocation2 + $0x94] sm:$0x8]  ;;  %6433 = vmatpush.bf16.msra.mxu2 %v5304_v7  ;;  %6434 = vmatpush.bf16.msra.mxu3 %v5304_v7  ;;  %v714_v21 = vunpack.c.l.bf16 %v666_v10  ;;  %v7156_v7 = vperm.slane %v7071_v12, 2 }
  0x65   : > { %554 = vst [vmem:[#allocation2 + $0x154] sm:$0xf] %v6820_v0  ;;  %v672_v13 = vld [vmem:[#allocation2 + $0xac] sm:$0x8]  ;;  %v717_v22 = vunpack.c.l.bf16 %v669_v11  ;;  %v760_v34 = vmul.f32 %v7080_v30, %v711_v20 }
  0x66   : > { %556 = vst [vmem:[#allocation2 + $0x16c] sm:$0xf] %v6820_v0  ;;  %v675_v14 = vld [vmem:[#allocation2 + $0xc4] sm:$0x8]  ;;  %v720_v23 = vunpack.c.l.bf16 %v672_v13  ;;  %v763_v35 = vmul.f32 %v7080_v30, %v714_v21 }
  0x67   : > { %558 = vst [vmem:[#allocation2 + $0x184] sm:$0xf] %v6820_v0  ;;  %v678_v15 = vld [vmem:[#allocation2 + $0xdc] sm:$0x8]  ;;  %v723_v24 = vunpack.c.l.bf16 %v675_v14  ;;  %4771 = vmatpush.bf16.msra.mxu0 %v5303_v9  ;;  %6435 = vmatpush.bf16.msra.mxu1 %v5303_v9  ;;  %v766_v37 = vmul.f32 %v7080_v30, %v717_v22  ;;  %v7108_v51 = vadd.f32 %v7100_v45, %v760_v34 }
  0x68   : > { %560 = vst [vmem:[#allocation2 + $0x19c] sm:$0xf] %v6820_v0  ;;  %v681_v16 = vld [vmem:[#allocation2 + $0xf4] sm:$0x8]  ;;  %v726_v25 = vunpack.c.l.bf16 %v678_v15  ;;  %6436 = vmatpush.bf16.msra.mxu2 %v5303_v9  ;;  %6437 = vmatpush.bf16.msra.mxu3 %v5303_v9  ;;  %v769_v38 = vmul.f32 %v7080_v30, %v720_v23  ;;  %v7111_v52 = vadd.f32 %v7100_v45, %v763_v35 }
  0x69   : > { %562 = vst [vmem:[#allocation2 + $0x1b4] sm:$0xf] %v6820_v0  ;;  %v684_v17 = vld [vmem:[#allocation2 + $0x10c] sm:$0x8]  ;;  %v729_v27 = vunpack.c.l.bf16 %v681_v16  ;;  %v772_v39 = vmul.f32 %v7080_v30, %v723_v24  ;;  %v7115_v54 = vadd.f32 %v7100_v45, %v766_v37 }
  0x6a   : > { %564 = vst [vmem:[#allocation2 + $0x1cc] sm:$0xf] %v6820_v0  ;;  %v687_v18 = vld [vmem:[#allocation2 + $0x124] sm:$0x8]  ;;  %v732_v28 = vunpack.c.l.bf16 %v684_v17  ;;  %v775_v40 = vmul.f32 %v7080_v30, %v726_v25  ;;  %v7118_v55 = vadd.f32 %v7100_v45, %v769_v38 }
  0x6b   : > { %565 = vst [vmem:[#allocation2 + $0x70] sm:$0xf] %v6820_v0  ;;  %v690_v19 = vld [vmem:[#allocation2 + $0x13c] sm:$0x8]  ;;  %v735_v29 = vunpack.c.l.bf16 %v687_v18  ;;  %v778_v42 = vmul.f32 %v7080_v30, %v729_v27  ;;  %v7121_v56 = vadd.f32 %v7100_v45, %v772_v39 }
  0x6c   : > { %567 = vst [vmem:[#allocation2 + $0x88] sm:$0xf] %v6820_v0  ;;  %v738_v32 = vunpack.c.l.bf16 %v690_v19  ;;  %v781_v43 = vmul.f32 %v7080_v30, %v732_v28  ;;  %v7124_v57 = vadd.f32 %v7100_v45, %v775_v40 }
  0x6d   : > { %569 = vst [vmem:[#allocation2 + $0xa0] sm:$0xf] %v6820_v0  ;;  %v784_v44 = vmul.f32 %v7080_v30, %v735_v29  ;;  %v7131_v60 = vadd.f32 %v7100_v45, %v778_v42 }
  0x6e   : > { %571 = vst [vmem:[#allocation2 + $0xb8] sm:$0xf] %v6820_v0  ;;  %v787_v47 = vmul.f32 %v7080_v30, %v738_v32  ;;  %v7134_v61 = vadd.f32 %v7100_v45, %v781_v43 }
  0x6f   : > { %573 = vst [vmem:[#allocation2 + $0xd0] sm:$0xf] %v6820_v0  ;;  %v7137_v62 = vadd.f32 %v7100_v45, %v784_v44 }
  0x70   : > { %575 = vst [vmem:[#allocation2 + $0xe8] sm:$0xf] %v6820_v0  ;;  %v7147_v2 = vadd.f32 %v7100_v45, %v787_v47 }
  0x71   : > { %577 = vst [vmem:[#allocation2 + $0x100] sm:$0xf] %v6820_v0 }
  0x72   : > { %579 = vst [vmem:[#allocation2 + $0x118] sm:$0xf] %v6820_v0  ;;  %v7126_v58 = vld [vmem:[#allocation2 + $0x70] sm:$0x1] }
  0x73   : > { %581 = vst [vmem:[#allocation2 + $0x130] sm:$0xf] %v6820_v0  ;;  %v7128_v59 = vld [vmem:[#allocation2 + $0x88] sm:$0x1] }
  0x74   : > { %583 = vst [vmem:[#allocation2 + $0x148] sm:$0xf] %v6820_v0  ;;  %v7149_v3 = vld [vmem:[#allocation2 + $0xa0] sm:$0x1] }
  0x75   : > { %585 = vst [vmem:[#allocation2 + $0x160] sm:$0xf] %v6820_v0 }
  0x76   : > { %587 = vst [vmem:[#allocation2 + $0x178] sm:$0xf] %v6820_v0  ;;  %v7151_v4 = vld [vmem:[#allocation2 + $0xd0] sm:$0x1] }
  0x77   : > { %589 = vst [vmem:[#allocation2 + $0x190] sm:$0xf] %v6820_v0  ;;  %v7158_v9 = vld [vmem:[#allocation2 + $0xe8] sm:$0x1] }
  0x78   : > { %591 = vst [vmem:[#allocation2 + $0x1a8] sm:$0xf] %v6820_v0  ;;  %v7170_v18 = vld [vmem:[#allocation2 + $0x100] sm:$0x1] }
  0x79   : > { %10018 = vst [vmem:[#allocation20_spill] sm:$0xff] %v7080_v30  ;;  %v7144_v1 = vld [vmem:[#allocation2 + $0x118] sm:$0x1] }
  0x7a   : > { %593 = vst [vmem:[#allocation2 + $0x1c0] sm:$0xf] %v6820_v0  ;;  %v7160_v10 = vld [vmem:[#allocation2 + $0x130] sm:$0x1] }
  0x7b   : > { %595 = vst [vmem:[#allocation2 + $0x1d8] sm:$0xf] %v6820_v0  ;;  %v7142_v0 = vld [vmem:[#allocation2 + $0xb8] sm:$0x1]  ;;  %v7172_v19 = vld [vmem:[#allocation2 + $0x148] sm:$0x1] }
  0x7c   : > { %629 = vst [vmem:[#allocation2 + $0x68] sm:$0xff] %v597_v26  }
  0x7d   : > { %631 = vst [vmem:[#allocation2 + $0x80] sm:$0xff] %v599_v31  }
  0x7e   : > { %633 = vst [vmem:[#allocation2 + $0x98] sm:$0xff] %v601_v33  }
  0x7f   : > { %635 = vst [vmem:[#allocation2 + $0xb0] sm:$0xff] %v603_v36  }
  0x80   : > { %637 = vst [vmem:[#allocation2 + $0xc8] sm:$0xff] %v605_v41  }
  0x81   : > { %10019 = vst [vmem:[#allocation21_spill] sm:$0xff] %v7126_v58 }
  0x82   : > { %10020 = vst [vmem:[#allocation22_spill] sm:$0xff] %v7128_v59 }
  0x83   : > { %639 = vst [vmem:[#allocation2 + $0xe0] sm:$0xff] %v607_v46   ;;  %v6208_v8 = vld [vmem:[#allocation2 + $0x68] sm:$0xff]  }
  0x84   : > { %10021 = vst [vmem:[#allocation23_spill] sm:$0xff] %v7140_v63  ;;  %v7166_v16 = vunpack.c.l.bf16 %v6208_v8  ;;  %v7168_v17 = vunpack.c.h.bf16 %v6208_v8  ;;  %v6209_v12 = vld [vmem:[#allocation2 + $0x80] sm:$0xff]  }
  0x85   : > { %10022 = vst [vmem:[#allocation24_spill] sm:$0xff] %v7142_v0  ;;  %v7176_v22 = vunpack.c.l.bf16 %v6209_v12  ;;  %v7178_v23 = vunpack.c.h.bf16 %v6209_v12  ;;  %v6210_v24 = vld [vmem:[#allocation2 + $0x98] sm:$0xff]  }
  0x86   : > { %10023 = vst [vmem:[#allocation25_spill] sm:$0xff] %v7144_v1  ;;  %v7182_v27 = vunpack.c.l.bf16 %v6210_v24  ;;  %v7184_v28 = vunpack.c.h.bf16 %v6210_v24  ;;  %v6211_v29 = vld [vmem:[#allocation2 + $0xb0] sm:$0xff]   ;;  %v761_v31 = vmul.f32 %v7166_v16, %v7080_v30  ;;  %v762_v32 = vmul.f32 %v7168_v17, %v7080_v30 }
  0x87   : > { %641 = vst [vmem:[#allocation2 + $0xf8] sm:$0xff] %v609_v48   ;;  %v7190_v33 = vunpack.c.l.bf16 %v6211_v29  ;;  %v7192_v34 = vunpack.c.h.bf16 %v6211_v29  ;;  %v6212_v35 = vld [vmem:[#allocation2 + $0xc8] sm:$0xff]   ;;  %v764_v36 = vmul.f32 %v7176_v22, %v7080_v30  ;;  %v765_v37 = vmul.f32 %v7178_v23, %v7080_v30 }
  0x88   : > { %10024 = vst [vmem:[#allocation26_spill] sm:$0xff] %v7147_v2  ;;  %v7198_v38 = vunpack.c.l.bf16 %v6212_v35  ;;  %v7200_v39 = vunpack.c.h.bf16 %v6212_v35  ;;  %v767_v41 = vmul.f32 %v7182_v27, %v7080_v30  ;;  %v768_v42 = vmul.f32 %v7184_v28, %v7080_v30 }
  0x89   : > { %10025 = vst [vmem:[#allocation27_spill] sm:$0xff] %v7149_v3  ;;  %v770_v47 = vmul.f32 %v7190_v33, %v7080_v30  ;;  %v771_v48 = vmul.f32 %v7192_v34, %v7080_v30  ;;  %v7251_v5 = vadd.f32 %v7100_v45, %v761_v31  ;;  %v7261_v1 = vadd.f32 %v7100_v45, %v764_v36 }
  0x8a   : > { %10026 = vst [vmem:[#allocation28_spill] sm:$0xff] %v7151_v4  ;;  %v6213_v40 = vld [vmem:[#allocation2 + $0xe0] sm:$0xff]   ;;  %v773_v8 = vmul.f32 %v7198_v38, %v7080_v30  ;;  %v774_v12 = vmul.f32 %v7200_v39, %v7080_v30  ;;  %v7270_v31 = vadd.f32 %v7100_v45, %v768_v42  ;;  %v868_v0 = vmul.f32 %v7198_v38, %v7140_v63 }
  0x8b   : > { %10027 = vst [vmem:[#allocation29_spill] sm:$0xff] %v7156_v7  ;;  %v7206_v43 = vunpack.c.l.bf16 %v6213_v40  ;;  %v7208_v44 = vunpack.c.h.bf16 %v6213_v40  ;;  %v7276_v4 = vadd.f32 %v7100_v45, %v771_v48  ;;  %v869_v3 = vmul.f32 %v7200_v39, %v7140_v63 }
  0x8c   : > { %643 = vst [vmem:[#allocation2 + $0x110] sm:$0xff] %v611_v49   ;;  %v7282_v36 = vadd.f32 %v7100_v45, %v774_v12 }
  0x8d   : > { %10028 = vst [vmem:[#allocation30_spill] sm:$0xff] %v7158_v9  ;;  %v776_v40 = vmul.f32 %v7206_v43, %v7080_v30  ;;  %v777_v26 = vmul.f32 %v7208_v44, %v7080_v30  ;;  %v7267_v9 = vadd.f32 %v7100_v45, %v767_v41  ;;  %v870_v59 = vmul.f32 %v7206_v43, %v7140_v63 }
  0x8e   : > { %10029 = vst [vmem:[#allocation31_spill] sm:$0xff] %v7160_v10  ;;  %v6214_v46 = vld [vmem:[#allocation2 + $0xf8] sm:$0xff]  }
  0x8f   : > { %645 = vst [vmem:[#allocation2 + $0x128] sm:$0xff] %v613_v50   ;;  %v7214_v49 = vunpack.c.l.bf16 %v6214_v46  ;;  %v7216_v50 = vunpack.c.h.bf16 %v6214_v46  ;;  %v7288_v41 = vadd.f32 %v7100_v45, %v777_v26  ;;  %v940_v2 = vrot.slane %v870_v59, 1 }
  0x90   : > { %10030 = vst [vmem:[#allocation32_spill] sm:$0xff] %v7166_v16 }
  0x91   : > { %10031 = vst [vmem:[#allocation33_spill] sm:$0xff] %v7168_v17  ;;  %v779_v25 = vmul.f32 %v7214_v49, %v7080_v30  ;;  %v780_v20 = vmul.f32 %v7216_v50, %v7080_v30 }
  0x92   : > { %10032 = vst [vmem:[#allocation34_spill] sm:$0xff] %v7170_v18  ;;  %v7264_v18 = vadd.f32 %v7100_v45, %v765_v37  ;;  %v7285_v37 = vadd.f32 %v7100_v45, %v776_v40 }
  0x93   : > { %10033 = vst [vmem:[#allocation35_spill] sm:$0xff] %v7172_v19  ;;  %v7254_v19 = vadd.f32 %v7100_v45, %v762_v32  ;;  %v7273_v32 = vadd.f32 %v7100_v45, %v770_v47  ;;  %v7291_v42 = vadd.f32 %v7100_v45, %v779_v25  ;;  %v7294_v47 = vadd.f32 %v7100_v45, %v780_v20 }
  0x94   : > { %647 = vst [vmem:[#allocation2 + $0x140] sm:$0xff] %v615_v53   ;;  %v6215_v53 = vld [vmem:[#allocation2 + $0x110] sm:$0xff]   ;;  %v860_v20 = vmul.f32 %v7166_v16, %v7140_v63 }
  0x95   : > { %10034 = vst [vmem:[#allocation36_spill] sm:$0xff] %v7176_v22  ;;  %v7222_v24 = vunpack.c.l.bf16 %v6215_v53  ;;  %v7224_v29 = vunpack.c.h.bf16 %v6215_v53 }
  0x96   : > { %10035 = vst [vmem:[#allocation37_spill] sm:$0xff] %v7178_v23  ;;  %v6216_v35 = vld [vmem:[#allocation2 + $0x128] sm:$0xff]  }
  0x97   : > { %10036 = vst [vmem:[#allocation38_spill] sm:$0xff] %v7182_v27  ;;  %v7230_v46 = vunpack.c.l.bf16 %v6216_v35  ;;  %v7232_v21 = vunpack.c.h.bf16 %v6216_v35  ;;  %v782_v13 = vmul.f32 %v7222_v24, %v7080_v30  ;;  %v783_v11 = vmul.f32 %v7224_v29, %v7080_v30 }
  0x98   : > { %10037 = vst [vmem:[#allocation39_spill] sm:$0xff] %v7184_v28 }
  0x99   : > { %10038 = vst [vmem:[#allocation40_spill] sm:$0xff] %v7190_v33  ;;  %v785_v35 = vmul.f32 %v7230_v46, %v7080_v30  ;;  %v786_v6 = vmul.f32 %v7232_v21, %v7080_v30  ;;  %v7297_v48 = vadd.f32 %v7100_v45, %v782_v13  ;;  %v861_v13 = vmul.f32 %v7168_v17, %v7140_v63 }
  0x9a   : > { %10039 = vst [vmem:[#allocation41_spill] sm:$0xff] %v7192_v34 }
  0x9b   : > { %10040 = vst [vmem:[#allocation42_spill] sm:$0xff] %v7198_v38  ;;  %v6217_v15 = vld [vmem:[#allocation2 + $0x140] sm:$0xff]   ;;  %v7303_v12 = vadd.f32 %v7100_v45, %v785_v35  ;;  %v7306_v40 = vadd.f32 %v7100_v45, %v786_v6  ;;  %v863_v35 = vmul.f32 %v7178_v23, %v7140_v63  ;;  %v864_v6 = vmul.f32 %v7182_v27, %v7140_v63 }
  0x9c   : > { %10041 = vst [vmem:[#allocation43_spill] sm:$0xff] %v7200_v39  ;;  %v7238_v53 = vunpack.c.l.bf16 %v6217_v15  ;;  %v7240_v14 = vunpack.c.h.bf16 %v6217_v15  ;;  %v871_v27 = vmul.f32 %v7208_v44, %v7140_v63  ;;  %v875_v38 = vmul.f32 %v7224_v29, %v7140_v63 }
  0x9d   : > { %10042 = vst [vmem:[#allocation44_spill] sm:$0xff] %v7206_v43  ;;  %v876_v39 = vmul.f32 %v7230_v46, %v7140_v63  ;;  %v877_v43 = vmul.f32 %v7232_v21, %v7140_v63  ;;  %v925_v23 = vrot.slane %v860_v20, 1  ;;  %v929_v58 = vrot.slane %v863_v35, 1 }
  0x9e   : > { %10043 = vst [vmem:[#allocation45_spill] sm:$0xff] %v7208_v44  ;;  %v788_v15 = vmul.f32 %v7238_v53, %v7080_v30  ;;  %v789_v10 = vmul.f32 %v7240_v14, %v7080_v30  ;;  %v7279_v30 = vadd.f32 %v7100_v45, %v773_v8  ;;  %v7300_v8 = vadd.f32 %v7100_v45, %v783_v11 }
  0x9f   : > { %10044 = vst [vmem:[#allocation46_spill] sm:$0xff] %v7214_v49  ;;  %v862_v11 = vmul.f32 %v7176_v22, %v7140_v63  ;;  %v878_v44 = vmul.f32 %v7238_v53, %v7140_v63 }
  0xa0   : > { %10045 = vst [vmem:[#allocation47_spill] sm:$0xff] %v7216_v50  ;;  %v7309_v26 = vadd.f32 %v7100_v45, %v788_v15  ;;  %v7312_v25 = vadd.f32 %v7100_v45, %v789_v10  ;;  %v865_v15 = vmul.f32 %v7184_v28, %v7140_v63  ;;  %v866_v45 = vmul.f32 %v7190_v33, %v7140_v63 }
  0xa1   : > { %10046 = vst [vmem:[#allocation48_spill] sm:$0xff] %v7222_v24  ;;  %v867_v10 = vmul.f32 %v7192_v34, %v7140_v63  ;;  %v872_v28 = vmul.f32 %v7214_v49, %v7140_v63  ;;  %v873_v33 = vmul.f32 %v7216_v50, %v7140_v63  ;;  %v874_v34 = vmul.f32 %v7222_v24, %v7140_v63 }
  0xa2   : > { %10047 = vst [vmem:[#allocation49_spill] sm:$0xff] %v7224_v29  ;;  %v879_v49 = vmul.f32 %v7240_v14, %v7140_v63  ;;  %v926_v50 = vrot.slane %v861_v13, 1  ;;  %v928_v22 = vrot.slane %v862_v11, 1  ;;  %v931_v24 = vrot.slane %v864_v6, 1 }
  0xa3   : > { %10048 = vst [vmem:[#allocation50_spill] sm:$0xff] %v7230_v46  ;;  %v932_v17 = vrot.slane %v865_v15, 1  ;;  %v934_v16 = vrot.slane %v866_v45, 1  ;;  %v935_v29 = vrot.slane %v867_v10, 1  ;;  %v941_v63 = vrot.slane %v871_v27, 1 }
  0xa4   : > { %10049 = vst [vmem:[#allocation51_spill] sm:$0xff] %v7232_v21  ;;  %v927_v7 = vsel %vm924_vm0, %v925_v23, %v926_v50  ;;  %v930_v46 = vsel %vm924_vm0, %v928_v22, %v929_v58  ;;  %v938_v21 = vrot.slane %v869_v3, 1  ;;  %v943_v13 = vrot.slane %v872_v28, 1 }
  0xa5   : > { %10050 = vst [vmem:[#allocation52_spill] sm:$0xff] %v7238_v53  ;;  %v936_v53 = vsel %vm924_vm0, %v934_v16, %v935_v29  ;;  %v944_v11 = vrot.slane %v873_v33, 1  ;;  %v946_v35 = vrot.slane %v874_v34, 1  ;;  %v942_v6 = vsel %vm924_vm0, %v940_v2, %v941_v63 }
  0xa6   : > { %10051 = vst [vmem:[#allocation53_spill] sm:$0xff] %v7240_v14  ;;  %v947_v15 = vrot.slane %v875_v38, 1  ;;  %v949_v45 = vrot.slane %v876_v39, 1  ;;  %v950_v10 = vrot.slane %v877_v43, 1  ;;  %v953_v3 = vrot.slane %v879_v49, 1 }
  0xa7   : > { %10052 = vst [vmem:[#allocation54_spill] sm:$0xff] %v7306_v40  ;;  %v945_v14 = vsel %vm924_vm0, %v943_v13, %v944_v11  ;;  %v7362_v40 = vadd.f32 %v925_v23, %v7108_v51  ;;  %v7367_v28 = vadd.f32 %v927_v7, %v7251_v5  ;;  %v7370_v33 = vadd.f32 %v926_v50, %v7254_v19 }
  0xa8   : > { %10053 = vst [vmem:[#allocation55_spill] sm:$0xff] %v7309_v26  ;;  %v933_v26 = vsel %vm924_vm0, %v931_v24, %v932_v17  ;;  %v948_v59 = vsel %vm924_vm0, %v946_v35, %v947_v15  ;;  %v951_v27 = vsel %vm924_vm0, %v949_v45, %v950_v10  ;;  %v7374_v38 = vadd.f32 %v928_v22, %v7111_v52  ;;  %v10063_v22 = vld [vmem:[#allocation26_spill] sm:$0xff] }
  0xa9   : > { %10054 = vst [vmem:[#allocation56_spill] sm:$0xff] %v7312_v25  ;;  %v937_v25 = vrot.slane %v868_v0, 1  ;;  %v952_v0 = vrot.slane %v878_v44, 1  ;;  %v7377_v39 = vadd.f32 %v930_v46, %v7261_v1  ;;  %v7380_v51 = vadd.f32 %v929_v58, %v7264_v18 }
  0xaa   : > { %v7383_v23 = vadd.f32 %v931_v24, %v7115_v54  ;;  %v7386_v5 = vadd.f32 %v933_v26, %v7267_v9  ;;  %v7389_v7 = vadd.f32 %v932_v17, %v7270_v31  ;;  %v7392_v19 = vadd.f32 %v934_v16, %v7118_v55  ;;  %v10069_v24 = vld [vmem:[#allocation29_spill] sm:$0xff]  ;;  %v10078_v26 = vld [vmem:[#allocation38_spill] sm:$0xff] }
  0xab   : > { %v939_v20 = vsel %vm924_vm0, %v937_v25, %v938_v21  ;;  %v954_v34 = vsel %vm924_vm0, %v952_v0, %v953_v3  ;;  %v7395_v52 = vadd.f32 %v936_v53, %v7273_v32  ;;  %v7398_v1 = vadd.f32 %v935_v29, %v7276_v4  ;;  %v10070_v29 = vld [vmem:[#allocation32_spill] sm:$0xff]  ;;  %v10072_v31 = vld [vmem:[#allocation21_spill] sm:$0xff] }
  0xac   : > { %v7401_v58 = vadd.f32 %v937_v25, %v7121_v56  ;;  %v7404_v54 = vadd.f32 %v939_v20, %v7279_v30  ;;  %v7407_v9 = vadd.f32 %v938_v21, %v7282_v36  ;;  %v7410_v17 = vadd.f32 %v940_v2, %v7124_v57  ;;  %v10079_v20 = vld [vmem:[#allocation39_spill] sm:$0xff] }
  0xad   : > { %v7413_v55 = vadd.f32 %v942_v6, %v7285_v37  ;;  %v7416_v16 = vadd.f32 %v941_v63, %v7288_v41  ;;  %v7419_v4 = vadd.f32 %v943_v13, %v7131_v60  ;;  %v7422_v56 = vadd.f32 %v945_v14, %v7291_v42  ;;  %v10074_v37 = vld [vmem:[#allocation36_spill] sm:$0xff]  ;;  %v10075_v42 = vld [vmem:[#allocation37_spill] sm:$0xff] }
  0xae   : > { %v7425_v30 = vadd.f32 %v944_v11, %v7294_v47  ;;  %v7428_v18 = vadd.f32 %v946_v35, %v7134_v61  ;;  %v7431_v57 = vadd.f32 %v948_v59, %v7297_v48  ;;  %v7434_v2 = vadd.f32 %v947_v15, %v7300_v8  ;;  %v10061_v14 = vld [vmem:[#allocation54_spill] sm:$0xff]  ;;  %v10080_v11 = vld [vmem:[#allocation27_spill] sm:$0xff]  ;;  %v10082_v15 = vld [vmem:[#allocation40_spill] sm:$0xff] }
  0xaf   : > { %v7437_v63 = vadd.f32 %v949_v45, %v7137_v62  ;;  %v7440_v60 = vadd.f32 %v951_v27, %v7303_v12  ;;  %v7443_v21 = vadd.f32 %v950_v10, %v10061_v14  ;;  %v7446_v43 = vadd.f32 %v952_v0, %v10063_v22  ;;  %v10065_v61 = vld [vmem:[#allocation55_spill] sm:$0xff]  ;;  %v10071_v62 = vld [vmem:[#allocation33_spill] sm:$0xff]  ;;  %v10076_v48 = vld [vmem:[#allocation22_spill] sm:$0xff] }
  0xb0   : > { %10055 = vst [vmem:[#allocation57_spill] sm:$0xff] %v7425_v30  ;;  %v7449_v44 = vadd.f32 %v954_v34, %v10065_v61  ;;  %v10067_v49 = vld [vmem:[#allocation56_spill] sm:$0xff]  ;;  %v7456_v46 = vmul.f32 %v10070_v29, %v10069_v24  ;;  %v1103_v53 = vmul.f32 %v10071_v62, %v10069_v24  ;;  %v10073_v32 = vunpack.c.l.bf16 %v10072_v31  ;;  %v10083_v10 = vld [vmem:[#allocation41_spill] sm:$0xff]  ;;  %v10086_v34 = vld [vmem:[#allocation42_spill] sm:$0xff] }
  0xb1   : > { %10056 = vst [vmem:[#allocation58_spill] sm:$0xff] %v7428_v18  ;;  %v7452_v50 = vadd.f32 %v953_v3, %v10067_v49  ;;  %v7465_v41 = vmul.f32 %v10074_v37, %v10069_v24  ;;  %v1106_v47 = vmul.f32 %v10075_v42, %v10069_v24  ;;  %v10077_v8 = vunpack.c.l.bf16 %v10076_v48  ;;  %v10084_v3 = vld [vmem:[#allocation24_spill] sm:$0xff]  ;;  %v10087_v22 = vld [vmem:[#allocation43_spill] sm:$0xff]  ;;  %v10091_v37 = vld [vmem:[#allocation45_spill] sm:$0xff] }
  0xb2   : > { %10057 = vst [vmem:[#allocation59_spill] sm:$0xff] %v7431_v57  ;;  %v1104_v36 = vmul.f32 %v10069_v24, %v10073_v32  ;;  %v7474_v25 = vmul.f32 %v10078_v26, %v10069_v24  ;;  %v1109_v13 = vmul.f32 %v10079_v20, %v10069_v24  ;;  %v10081_v35 = vunpack.c.l.bf16 %v10080_v11  ;;  %v10088_v49 = vld [vmem:[#allocation28_spill] sm:$0xff]  ;;  %v10092_v48 = vld [vmem:[#allocation30_spill] sm:$0xff] }
  0xb3   : > { %10058 = vst [vmem:[#allocation60_spill] sm:$0xff] %v7434_v2  ;;  %v1107_v12 = vmul.f32 %v10069_v24, %v10077_v8  ;;  %v7483_v45 = vmul.f32 %v10082_v15, %v10069_v24  ;;  %v1112_v0 = vmul.f32 %v10083_v10, %v10069_v24  ;;  %v10085_v59 = vunpack.c.l.bf16 %v10084_v3  ;;  %v10090_v31 = vld [vmem:[#allocation44_spill] sm:$0xff]  ;;  %v10094_v20 = vld [vmem:[#allocation46_spill] sm:$0xff] }
  0xb4   : > { %10059 = vst [vmem:[#allocation61_spill] sm:$0xff] %v7437_v63  ;;  %v1110_v6 = vmul.f32 %v10069_v24, %v10081_v35  ;;  %v7492_v14 = vmul.f32 %v10086_v34, %v10069_v24  ;;  %v1115_v61 = vmul.f32 %v10087_v22, %v10069_v24  ;;  %v10089_v29 = vunpack.c.l.bf16 %v10088_v49  ;;  %v10095_v35 = vld [vmem:[#allocation47_spill] sm:$0xff]  ;;  %v10096_v10 = vld [vmem:[#allocation34_spill] sm:$0xff]  ;;  %v10098_v34 = vld [vmem:[#allocation48_spill] sm:$0xff] }
  0xb5   : > { %10060 = vst [vmem:[#allocation62_spill] sm:$0xff] %v7440_v60  ;;  %v1113_v27 = vmul.f32 %v10069_v24, %v10085_v59  ;;  %v7501_v32 = vmul.f32 %v10090_v31, %v10069_v24  ;;  %v1118_v42 = vmul.f32 %v10091_v37, %v10069_v24  ;;  %v10093_v8 = vunpack.c.l.bf16 %v10092_v48  ;;  %v10099_v49 = vld [vmem:[#allocation49_spill] sm:$0xff] }
  0xb6   : > { %10062 = vst [vmem:[#allocation54_spill] sm:$0xff] %v7443_v21  ;;  %v1116_v62 = vmul.f32 %v10069_v24, %v10089_v29  ;;  %v7510_v11 = vmul.f32 %v10094_v20, %v10069_v24  ;;  %v1121_v15 = vmul.f32 %v10095_v35, %v10069_v24  ;;  %v10097_v3 = vunpack.c.l.bf16 %v10096_v10  ;;  %v10100_v31 = vld [vmem:[#allocation25_spill] sm:$0xff]  ;;  %v10103_v35 = vld [vmem:[#allocation51_spill] sm:$0xff] }
  0xb7   : > { %10064 = vst [vmem:[#allocation26_spill] sm:$0xff] %v7446_v43  ;;  %v1119_v26 = vmul.f32 %v10069_v24, %v10093_v8  ;;  %v7519_v22 = vmul.f32 %v10098_v34, %v10069_v24  ;;  %v1124_v29 = vmul.f32 %v10099_v49, %v10069_v24  ;;  %v10101_v37 = vunpack.c.l.bf16 %v10100_v31  ;;  %v10102_v8 = vld [vmem:[#allocation50_spill] sm:$0xff]  ;;  %v10106_v34 = vld [vmem:[#allocation52_spill] sm:$0xff]  ;;  %v10107_v49 = vld [vmem:[#allocation53_spill] sm:$0xff] }
  0xb8   : > { %10066 = vst [vmem:[#allocation55_spill] sm:$0xff] %v7449_v44  ;;  %v1122_v59 = vmul.f32 %v10069_v24, %v10097_v3  ;;  %v7528_v20 = vmul.f32 %v10102_v8, %v10069_v24  ;;  %v1127_v10 = vmul.f32 %v10103_v35, %v10069_v24  ;;  %v7537_v43 = vmul.f32 %v10106_v34, %v10069_v24  ;;  %v10108_v21 = vld [vmem:[#allocation35_spill] sm:$0xff] }
  0xb9   : > { %10068 = vst [vmem:[#allocation56_spill] sm:$0xff] %v7452_v50  ;;  %v1125_v48 = vmul.f32 %v10069_v24, %v10101_v37  ;;  %v10104_v50 = vld [vmem:[#allocation31_spill] sm:$0xff]  ;;  %v1130_v31 = vmul.f32 %v10107_v49, %v10069_v24  ;;  %v10109_v37 = vunpack.c.l.bf16 %v10108_v21  ;;  %v1199_v8 = vrot.slane %v7456_v46, 2 }
  0xba   : > { %v10105_v3 = vunpack.c.l.bf16 %v10104_v50  ;;  %v1200_v63 = vrot.slane %v1103_v53, 2  ;;  %v1202_v35 = vrot.slane %v1104_v36, 2  ;;  %v1204_v50 = vrot.slane %v7465_v41, 2 }
  0xbb   : > { %v1131_v60 = vmul.f32 %v10069_v24, %v10109_v37  ;;  %v1205_v2 = vrot.slane %v1106_v47, 2  ;;  %v1209_v57 = vrot.slane %v7474_v25, 2  ;;  %v1210_v34 = vrot.slane %v1109_v13, 2 }
  0xbc   : > { %v1128_v44 = vmul.f32 %v10069_v24, %v10105_v3  ;;  %v1207_v3 = vrot.slane %v1107_v12, 2  ;;  %v1212_v18 = vrot.slane %v1110_v6, 2  ;;  %v1201_v30 = vsel %vm1198_vm1, %v1199_v8, %v1200_v63 }
  0xbd   : > { %v1203_v49 = vsel %vm1198_vm1, %v1200_v63, %v1202_v35  ;;  %v1206_v21 = vsel %vm1198_vm1, %v1204_v50, %v1205_v2  ;;  %v1214_v37 = vrot.slane %v7483_v45, 2  ;;  %v1211_v53 = vsel %vm1198_vm1, %v1209_v57, %v1210_v34 }
  0xbe   : > { %v1208_v46 = vsel %vm1198_vm1, %v1205_v2, %v1207_v3  ;;  %v1213_v36 = vsel %vm1198_vm1, %v1210_v34, %v1212_v18  ;;  %v1215_v41 = vrot.slane %v1112_v0, 2  ;;  %v1217_v47 = vrot.slane %v1113_v27, 2 }
  0xbf   : > { %v1219_v12 = vrot.slane %v7492_v14, 2  ;;  %v1220_v25 = vrot.slane %v1115_v61, 2  ;;  %v1222_v13 = vrot.slane %v1116_v62, 2  ;;  %v1224_v63 = vrot.slane %v7501_v32, 2 }
  0xc0   : > { %v1216_v6 = vsel %vm1198_vm1, %v1214_v37, %v1215_v41  ;;  %v1225_v35 = vrot.slane %v1118_v42, 2  ;;  %v1227_v24 = vrot.slane %v1119_v26, 2  ;;  %v1218_v45 = vsel %vm1198_vm1, %v1215_v41, %v1217_v47 }
  0xc1   : > { %v1221_v2 = vsel %vm1198_vm1, %v1219_v12, %v1220_v25  ;;  %v1223_v3 = vsel %vm1198_vm1, %v1220_v25, %v1222_v13  ;;  %v1229_v18 = vrot.slane %v7510_v11, 2  ;;  %v1230_v14 = vrot.slane %v1121_v15, 2 }
  0xc2   : > { %v1226_v0 = vsel %vm1198_vm1, %v1224_v63, %v1225_v35  ;;  %v1228_v27 = vsel %vm1198_vm1, %v1225_v35, %v1227_v24  ;;  %v1232_v61 = vrot.slane %v1122_v59, 2  ;;  %v1234_v62 = vrot.slane %v7519_v22, 2 }
  0xc3   : > { %v1235_v34 = vrot.slane %v1124_v29, 2  ;;  %v1237_v32 = vrot.slane %v1125_v48, 2  ;;  %v1239_v42 = vrot.slane %v7528_v20, 2  ;;  %v1231_v26 = vsel %vm1198_vm1, %v1229_v18, %v1230_v14 }
  0xc4   : > { %v1233_v41 = vsel %vm1198_vm1, %v1230_v14, %v1232_v61  ;;  %v1240_v47 = vrot.slane %v1127_v10, 2  ;;  %v1242_v25 = vrot.slane %v1128_v44, 2  ;;  %v1244_v24 = vrot.slane %v7537_v43, 2 }
  0xc5   : > { %v1236_v11 = vsel %vm1198_vm1, %v1234_v62, %v1235_v34  ;;  %v1238_v13 = vsel %vm1198_vm1, %v1235_v34, %v1237_v32  ;;  %v1245_v15 = vrot.slane %v1130_v31, 2  ;;  %v1247_v29 = vrot.slane %v1131_v60, 2 }
  0xc6   : > { %v1241_v59 = vsel %vm1198_vm1, %v1239_v42, %v1240_v47  ;;  %v1243_v22 = vsel %vm1198_vm1, %v1240_v47, %v1242_v25  ;;  %v7573_v48 = vadd.f32 %v1199_v8, %v7362_v40  ;;  %v1328_v10 = vadd.f32 %v1201_v30, %v7367_v28 }
  0xc7   : > { %v1246_v20 = vsel %vm1198_vm1, %v1244_v24, %v1245_v15  ;;  %v1329_v44 = vadd.f32 %v1203_v49, %v7370_v33  ;;  %v7579_v35 = vadd.f32 %v1204_v50, %v7374_v38  ;;  %v1248_v43 = vsel %vm1198_vm1, %v1245_v15, %v1247_v29 }
  0xc8   : > { %v1331_v31 = vadd.f32 %v1206_v21, %v7377_v39  ;;  %v1332_v14 = vadd.f32 %v1208_v46, %v7380_v51  ;;  %v7585_v60 = vadd.f32 %v1209_v57, %v7383_v23  ;;  %v1334_v40 = vadd.f32 %v1211_v53, %v7386_v5 }
  0xc9   : > { %v1335_v8 = vadd.f32 %v1213_v36, %v7389_v7  ;;  %v7590_v28 = vadd.f32 %v1214_v37, %v7392_v19  ;;  %v1337_v33 = vadd.f32 %v1216_v6, %v7395_v52  ;;  %v1338_v38 = vadd.f32 %v1218_v45, %v7398_v1  ;;  %v10110_v1 = vld [vmem:[#allocation57_spill] sm:$0xff]  ;;  %v10119_v6 = vld [vmem:[#allocation56_spill] sm:$0xff] }
  0xca   : > { %v7595_v30 = vadd.f32 %v1219_v12, %v7401_v58  ;;  %v1340_v39 = vadd.f32 %v1221_v2, %v7404_v54  ;;  %v1341_v51 = vadd.f32 %v1223_v3, %v7407_v9  ;;  %v7600_v23 = vadd.f32 %v1224_v63, %v7410_v17  ;;  %v10111_v58 = vld [vmem:[#allocation58_spill] sm:$0xff]  ;;  %v10112_v54 = vld [vmem:[#allocation59_spill] sm:$0xff]  ;;  %v10113_v9 = vld [vmem:[#allocation60_spill] sm:$0xff] }
  0xcb   : > { %v1343_v5 = vadd.f32 %v1226_v0, %v7413_v55  ;;  %v1344_v7 = vadd.f32 %v1228_v27, %v7416_v16  ;;  %v7605_v19 = vadd.f32 %v1229_v18, %v7419_v4  ;;  %v1346_v52 = vadd.f32 %v1231_v26, %v7422_v56  ;;  %v10114_v17 = vld [vmem:[#allocation61_spill] sm:$0xff]  ;;  %v10115_v55 = vld [vmem:[#allocation62_spill] sm:$0xff]  ;;  %v10118_v56 = vld [vmem:[#allocation55_spill] sm:$0xff] }
  0xcc   : > { %v1347_v57 = vadd.f32 %v1233_v41, %v10110_v1  ;;  %v7610_v50 = vadd.f32 %v1234_v62, %v10111_v58  ;;  %v1349_v49 = vadd.f32 %v1236_v11, %v10112_v54  ;;  %v1350_v21 = vadd.f32 %v1238_v13, %v10113_v9  ;;  %v10116_v16 = vld [vmem:[#allocation54_spill] sm:$0xff] }
  0xcd   : > { %v7615_v37 = vadd.f32 %v1239_v42, %v10114_v17  ;;  %v1352_v46 = vadd.f32 %v1241_v59, %v10115_v55  ;;  %v1353_v53 = vadd.f32 %v1243_v22, %v10116_v16  ;;  %v10117_v4 = vld [vmem:[#allocation26_spill] sm:$0xff]  ;;  %v1355_v12 = vadd.f32 %v1246_v20, %v10118_v56 }
  0xce   : > { %v7620_v36 = vadd.f32 %v1244_v24, %v10117_v4  ;;  %v1356_v63 = vadd.f32 %v1248_v43, %v10119_v6  ;;  %v1375_v45 = vpack.c.bf16 %v7573_v48, %v7573_v48  ;;  %v1376_v2 = vpack.c.bf16 %v1328_v10, %v1328_v10 }
  0xcf   : > { %v1377_v3 = vpack.c.bf16 %v1329_v44, %v1329_v44  ;;  %v1378_v18 = vpack.c.bf16 %v7579_v35, %v7579_v35  ;;  %v1379_v0 = vpack.c.bf16 %v1331_v31, %v1331_v31  ;;  %v1380_v27 = vpack.c.bf16 %v1332_v14, %v1332_v14 }
  0xd0   : > { %v1381_v61 = vpack.c.bf16 %v7585_v60, %v7585_v60  ;;  %v1382_v62 = vpack.c.bf16 %v1334_v40, %v1334_v40  ;;  %v7630_v34 = vpack.c.bf16 %v1335_v8, %v1335_v8  ;;  %v1384_v32 = vpack.c.bf16 %v7590_v28, %v7590_v28 }
  0xd1   : > { %v7634_v42 = vpack.c.bf16 %v1337_v33, %v1337_v33  ;;  %v7636_v26 = vpack.c.bf16 %v1338_v38, %v1338_v38  ;;  %v1387_v41 = vpack.c.bf16 %v7595_v30, %v7595_v30  ;;  %v7640_v47 = vpack.c.bf16 %v1340_v39, %v1340_v39 }
  0xd2   : > { %v7642_v25 = vpack.c.bf16 %v1341_v51, %v1341_v51  ;;  %v1390_v11 = vpack.c.bf16 %v7600_v23, %v7600_v23  ;;  %v7646_v13 = vpack.c.bf16 %v1343_v5, %v1343_v5  ;;  %v7648_v24 = vpack.c.bf16 %v1344_v7, %v1344_v7 }
  0xd3   : > { %v1393_v15 = vpack.c.bf16 %v7605_v19, %v7605_v19  ;;  %v7652_v59 = vpack.c.bf16 %v1346_v52, %v1346_v52  ;;  %v7654_v22 = vpack.c.bf16 %v1347_v57, %v1347_v57  ;;  %v1396_v29 = vpack.c.bf16 %v7610_v50, %v7610_v50 }
  0xd4   : > { %v7658_v48 = vpack.c.bf16 %v1349_v49, %v1349_v49  ;;  %v7660_v20 = vpack.c.bf16 %v1350_v21, %v1350_v21  ;;  %v1399_v10 = vpack.c.bf16 %v7615_v37, %v7615_v37  ;;  %v7664_v44 = vpack.c.bf16 %v1352_v46, %v1352_v46 }
  0xd5   : > { %v7666_v35 = vpack.c.bf16 %v1353_v53, %v1353_v53  ;;  %v1402_v43 = vpack.c.bf16 %v7620_v36, %v7620_v36  ;;  %v7670_v31 = vpack.c.bf16 %v1355_v12, %v1355_v12  ;;  %v7672_v14 = vpack.c.bf16 %v1356_v63, %v1356_v63 }
  0xd6   : > { %v1427_v60 = vshrl.u32 %v1375_v45, 16  ;;  %v1432_v40 = vshrl.u32 %v1376_v2, 16  ;;  %v1435_v8 = vshll.u32 %v1376_v2, 16  ;;  %v1441_v28 = vshrl.u32 %v1377_v3, 16 }
  0xd7   : > { %v1444_v33 = vshll.u32 %v1377_v3, 16  ;;  %v1449_v39 = vshrl.u32 %v1378_v18, 16  ;;  %v1454_v51 = vshrl.u32 %v1379_v0, 16  ;;  %v1457_v5 = vshll.u32 %v1379_v0, 16 }
  0xd8   : > { %v5169_v38 = vrot.slane %v1427_v60, 11  ;;  %v1434_v7 = vrot.slane %v1432_v40, 7  ;;  %v1443_v52 = vrot.slane %v1441_v28, 7  ;;  %v1463_v1 = vshrl.u32 %v1380_v27, 16 }
  0xd9   : > { %v1466_v57 = vshll.u32 %v1380_v27, 16  ;;  %v10120_v58 = vmov 0  ;;  %v5170_v54 = vrot.slane %v1449_v39, 11  ;;  %v1456_v49 = vrot.slane %v1454_v51, 7 }
  0xda   : > { %v10121_v58 = vsel %vm7675_vm4, 4294967295, %v10120_v58  ;;  %v1471_v9 = vshrl.u32 %v1381_v61, 16  ;;  %v1476_v21 = vshrl.u32 %v1382_v62, 16  ;;  %v1437_v17 = vor.u32 %v1435_v8, %v1434_v7 }
  0xdb   : > { %10122 = vst [vmem:[#allocation32_spill] sm:$0xff] %v10121_v58  ;;  %v1439_v55 = vrot.slane %v1434_v7, 4  ;;  %v1446_v46 = vor.u32 %v1444_v33, %v1443_v52  ;;  %v1465_v16 = vrot.slane %v1463_v1, 7  ;;  %v1459_v53 = vor.u32 %v1457_v5, %v1456_v49 }
  0xdc   : > { %v1461_v4 = vrot.slane %v1456_v49, 4  ;;  %v5171_v56 = vrot.slane %v1471_v9, 11  ;;  %v1478_v12 = vrot.slane %v1476_v21, 7  ;;  %v1438_v6 = vsel %vm7675_vm4, %v5169_v38, %v1437_v17 }
  0xdd   : > { %v1447_v63 = vsel %vm7675_vm4, %v1439_v55, %v1446_v46  ;;  %v1468_v45 = vor.u32 %v1466_v57, %v1465_v16  ;;  %v1479_v2 = vshll.u32 %v1382_v62, 16  ;;  %v1460_v3 = vsel %vm7675_vm4, %v5170_v54, %v1459_v53  ;;  %1810 = vst [vmem:[#allocation2 + $0x68] sm:$0xf] %v1438_v6 }
  0xde   : > { %v1483_v18 = vrot.slane %v1478_v12, 4  ;;  %v1485_v0 = vshrl.u32 %v7630_v34, 16  ;;  %v1488_v27 = vshll.u32 %v7630_v34, 16  ;;  %v1493_v40 = vshrl.u32 %v1384_v32, 16  ;;  %1811 = vst [vmem:[#allocation2 + $0x6c] sm:$0xf] %v1447_v63 }
  0xdf   : > { %v1469_v61 = vsel %vm7675_vm4, %v1461_v4, %v1468_v45  ;;  %v1481_v60 = vor.u32 %v1479_v2, %v1478_v12  ;;  %v1498_v8 = vshrl.u32 %v7634_v42, 16  ;;  %v1501_v62 = vshll.u32 %v7634_v42, 16  ;;  %1812 = vst [vmem:[#allocation2 + $0x80] sm:$0xf] %v1460_v3 }
  0xe0   : > { %v1487_v28 = vrot.slane %v1485_v0, 7  ;;  %v1507_v33 = vshrl.u32 %v7636_v26, 16  ;;  %v1510_v38 = vshll.u32 %v7636_v26, 16  ;;  %v5172_v39 = vrot.slane %v1493_v40, 11  ;;  %1813 = vst [vmem:[#allocation2 + $0x84] sm:$0xf] %v1469_v61 }
  0xe1   : > { %v1482_v34 = vsel %vm7675_vm4, %v5171_v56, %v1481_v60  ;;  %v1500_v51 = vrot.slane %v1498_v8, 7  ;;  %v1515_v32 = vshrl.u32 %v1387_v41, 16  ;;  %v1520_v52 = vshrl.u32 %v7640_v47, 16 }
  0xe2   : > { %v1490_v5 = vor.u32 %v1488_v27, %v1487_v28  ;;  %v1509_v7 = vrot.slane %v1507_v33, 7  ;;  %v1523_v42 = vshll.u32 %v7640_v47, 16  ;;  %1814 = vst [vmem:[#allocation2 + $0x98] sm:$0xf] %v1482_v34  ;;  %v1529_v54 = vshrl.u32 %v7642_v25, 16 }
  0xe3   : > { %v1503_v1 = vor.u32 %v1501_v62, %v1500_v51  ;;  %v1505_v26 = vrot.slane %v1500_v51, 4  ;;  %v5173_v57 = vrot.slane %v1515_v32, 11  ;;  %v1522_v21 = vrot.slane %v1520_v52, 7 }
  0xe4   : > { %v1491_v49 = vsel %vm7675_vm4, %v1483_v18, %v1490_v5  ;;  %v1512_v9 = vor.u32 %v1510_v38, %v1509_v7  ;;  %v1532_v30 = vshll.u32 %v7642_v25, 16  ;;  %v1531_v17 = vrot.slane %v1529_v54, 7 }
  0xe5   : > { %v1504_v41 = vsel %vm7675_vm4, %v5172_v39, %v1503_v1  ;;  %v1537_v47 = vshrl.u32 %v1390_v11, 16  ;;  %v1542_v55 = vshrl.u32 %v7646_v13, 16  ;;  %1815 = vst [vmem:[#allocation2 + $0x9c] sm:$0xf] %v1491_v49  ;;  %v1525_v16 = vor.u32 %v1523_v42, %v1522_v21 }
  0xe6   : > { %v1513_v46 = vsel %vm7675_vm4, %v1505_v26, %v1512_v9  ;;  %v1527_v53 = vrot.slane %v1522_v21, 4  ;;  %v1545_v4 = vshll.u32 %v7646_v13, 16  ;;  %1816 = vst [vmem:[#allocation2 + $0xb0] sm:$0xf] %v1504_v41  ;;  %v1534_v25 = vor.u32 %v1532_v30, %v1531_v17 }
  0xe7   : > { %v5174_v56 = vrot.slane %v1537_v47, 11  ;;  %v1544_v12 = vrot.slane %v1542_v55, 7  ;;  %v1551_v6 = vshrl.u32 %v7648_v24, 16  ;;  %1817 = vst [vmem:[#allocation2 + $0xb4] sm:$0xf] %v1513_v46  ;;  %v1526_v23 = vsel %vm7675_vm4, %v5173_v57, %v1525_v16 }
  0xe8   : > { %v1554_v11 = vshll.u32 %v7648_v24, 16  ;;  %v1559_v63 = vshrl.u32 %v1393_v15, 16  ;;  %v1564_v45 = vshrl.u32 %v7652_v59, 16  ;;  %v1535_v13 = vsel %vm7675_vm4, %v1527_v53, %v1534_v25  ;;  %1818 = vst [vmem:[#allocation2 + $0xc8] sm:$0xf] %v1526_v23 }
  0xe9   : > { %v1547_v2 = vor.u32 %v1545_v4, %v1544_v12  ;;  %v1549_v3 = vrot.slane %v1544_v12, 4  ;;  %v1553_v18 = vrot.slane %v1551_v6, 7  ;;  %v1567_v61 = vshll.u32 %v7652_v59, 16  ;;  %1819 = vst [vmem:[#allocation2 + $0xcc] sm:$0xf] %v1535_v13 }
  0xea   : > { %v5175_v0 = vrot.slane %v1559_v63, 11  ;;  %v1566_v27 = vrot.slane %v1564_v45, 7  ;;  %v1573_v60 = vshrl.u32 %v7654_v22, 16  ;;  %v1576_v15 = vshll.u32 %v7654_v22, 16  ;;  %v1842_v23 = vld [vmem:[#allocation8] sm:$0x7] }
  0xeb   : > { %v1548_v19 = vsel %vm7675_vm4, %v5174_v56, %v1547_v2  ;;  %v1556_v24 = vor.u32 %v1554_v11, %v1553_v18  ;;  %v1581_v40 = vshrl.u32 %v1396_v29, 16  ;;  %v1586_v33 = vshrl.u32 %v7658_v48, 16  ;;  %v7763_v56 = vld [vmem:[#allocation2 + $0x68] sm:$0xff]   ;;  %v7767_v11 = vld [vmem:[#allocation2 + $0x80] sm:$0xff]  }
  0xec   : > { %v1569_v8 = vor.u32 %v1567_v61, %v1566_v27  ;;  %v1571_v28 = vrot.slane %v1566_v27, 4  ;;  %v1575_v62 = vrot.slane %v1573_v60, 7  ;;  %1820 = vst [vmem:[#allocation2 + $0xe0] sm:$0xf] %v1548_v19  ;;  %v1589_v34 = vshll.u32 %v7658_v48, 16  ;;  %v6227_v63 = vld [vmem:[#allocation2 + $0x98] sm:$0xff]  }
  0xed   : > { %v1557_v59 = vsel %vm7675_vm4, %v1549_v3, %v1556_v24  ;;  %v5176_v38 = vrot.slane %v1581_v40, 11  ;;  %v1595_v39 = vshrl.u32 %v7660_v20, 16  ;;  %v1588_v50 = vrot.slane %v1586_v33, 7 }
  0xee   : > { %v1570_v22 = vsel %vm7675_vm4, %v5175_v0, %v1569_v8  ;;  %v1578_v51 = vor.u32 %v1576_v15, %v1575_v62  ;;  %v1598_v29 = vshll.u32 %v7660_v20, 16  ;;  %1821 = vst [vmem:[#allocation2 + $0xe4] sm:$0xf] %v1557_v59  ;;  %v1603_v5 = vshrl.u32 %v1399_v10, 16  ;;  %v7769_v45 = vld [vmem:[#allocation2 + $0xb0] sm:$0xff]  }
  0xef   : > { %v1597_v32 = vrot.slane %v1595_v39, 7  ;;  %v1608_v7 = vshrl.u32 %v7664_v44, 16  ;;  %v1611_v52 = vshll.u32 %v7664_v44, 16  ;;  %1822 = vst [vmem:[#allocation2 + $0xf8] sm:$0xf] %v1570_v22  ;;  %v1591_v42 = vor.u32 %v1589_v34, %v1588_v50 }
  0xf0   : > { %v1579_v48 = vsel %vm7675_vm4, %v1571_v28, %v1578_v51  ;;  %v1593_v1 = vrot.slane %v1588_v50, 4  ;;  %v1617_v26 = vshrl.u32 %v7666_v35, 16  ;;  %v5177_v20 = vrot.slane %v1603_v5, 11  ;;  %v6229_v13 = vld [vmem:[#allocation2 + $0xc8] sm:$0xff]  }
  0xf1   : > { %v1600_v57 = vor.u32 %v1598_v29, %v1597_v32  ;;  %v1610_v54 = vrot.slane %v1608_v7, 7  ;;  %v1620_v49 = vshll.u32 %v7666_v35, 16  ;;  %1823 = vst [vmem:[#allocation2 + $0xfc] sm:$0xf] %v1579_v48  ;;  %v1592_v37 = vsel %vm7675_vm4, %v5176_v38, %v1591_v42 }
  0xf2   : > { %v1619_v10 = vrot.slane %v1617_v26, 7  ;;  %v1625_v44 = vshrl.u32 %v1402_v43, 16  ;;  %v1630_v9 = vshrl.u32 %v7670_v31, 16  ;;  %v1633_v17 = vshll.u32 %v7670_v31, 16  ;;  %1824 = vst [vmem:[#allocation2 + $0x110] sm:$0xf] %v1592_v37 }
  0xf3   : > { %v1601_v21 = vsel %vm7675_vm4, %v1593_v1, %v1600_v57  ;;  %v1613_v30 = vor.u32 %v1611_v52, %v1610_v54  ;;  %v1615_v41 = vrot.slane %v1610_v54, 4  ;;  %v1639_v46 = vshrl.u32 %v7672_v14, 16  ;;  %v6224_v31 = vld [vmem:[#allocation2 + $0x50] sm:$0xff]  }
  0xf4   : > { %v1622_v35 = vor.u32 %v1620_v49, %v1619_v10  ;;  %v5178_v47 = vrot.slane %v1625_v44, 11  ;;  %v1632_v55 = vrot.slane %v1630_v9, 7  ;;  %1825 = vst [vmem:[#allocation2 + $0x114] sm:$0xf] %v1601_v21  ;;  %v1642_v43 = vshll.u32 %v7672_v14, 16  ;;  %v617_v54 = vld [vmem:[%s7012_s1 + $0x50] sm:$0xff]  }
  0xf5   : > { %v1614_v36 = vsel %vm7675_vm4, %v5177_v20, %v1613_v30  ;;  %v1641_v25 = vrot.slane %v1639_v46, 7  ;;  %v5394_v14 = vunpack.c.l.bf16 %v6224_v31  ;;  %v5395_v3 = vunpack.c.h.bf16 %v6224_v31  ;;  %v7775_v27 = vld [vmem:[#allocation2 + $0xe0] sm:$0xff]   ;;  %v619_v49 = vld [vmem:[%s7012_s1 + $0x58] sm:$0xff]   ;;  %649 = vst [vmem:[#allocation2 + $0x158] sm:$0xff] %v617_v54  }
  0xf6   : > { %v1623_v16 = vsel %vm7675_vm4, %v1615_v41, %v1622_v35  ;;  %v1635_v53 = vor.u32 %v1633_v17, %v1632_v55  ;;  %v1637_v4 = vrot.slane %v1632_v55, 4  ;;  %1826 = vst [vmem:[#allocation2 + $0x128] sm:$0xf] %v1614_v36  ;;  %v5398_v18 = vunpack.c.l.bf16 %v7763_v56  ;;  %v7824_v20 = vld [vmem:[%s9872_s4] ss:$0 sm:$0xff] }
  0xf7   : > { %1827 = vst [vmem:[#allocation2 + $0x12c] sm:$0xf] %v1623_v16  ;;  %v1644_v6 = vor.u32 %v1642_v43, %v1641_v25  ;;  %v5399_v0 = vunpack.c.h.bf16 %v7763_v56  ;;  %v5402_v60 = vunpack.c.l.bf16 %v7767_v11  ;;  %v5403_v19 = vunpack.c.h.bf16 %v7767_v11  ;;  %v621_v36 = vld [vmem:[%s7012_s1 + $0x60] sm:$0xff]   ;;  %v623_v25 = vld [vmem:[%s7012_s1 + $0x68] sm:$0xff]  }
  0xf8   : > { %v1636_v12 = vsel %vm7675_vm4, %v5178_v47, %v1635_v53  ;;  %v6231_v61 = vld [vmem:[#allocation2 + $0xf8] sm:$0xff]   ;;  %v7779_v24 = vunpack.c.l.bf16 %v6227_v63  ;;  %v7783_v40 = vperm.slane %v1842_v23, 0  ;;  %v7785_v8 = vunpack.c.h.bf16 %v6227_v63  ;;  %651 = vst [vmem:[#allocation2 + $0x170] sm:$0xff] %v619_v49  }
  0xf9   : > { %1828 = vst [vmem:[#allocation2 + $0x140] sm:$0xf] %v1636_v12  ;;  %v1645_v2 = vsel %vm7675_vm4, %v1637_v4, %v1644_v6  ;;  %v5410_v28 = vunpack.c.l.bf16 %v7769_v45  ;;  %v5411_v62 = vunpack.c.h.bf16 %v7769_v45  ;;  %v7789_v33 = vunpack.c.l.bf16 %v6229_v13 }
  0xfa   : > { %1829 = vst [vmem:[#allocation2 + $0x144] sm:$0xf] %v1645_v2  ;;  %v7791_v59 = vunpack.c.h.bf16 %v6229_v13  ;;  %v5418_v38 = vunpack.c.l.bf16 %v7775_v27  ;;  %v9920_v34 = vunpack.c.h.bf16 %v7775_v27  ;;  %v7795_v39 = vunpack.c.l.bf16 %v6231_v61 }
  0xfb   : > { %10123 = vst [vmem:[#allocation33_spill] sm:$0xff] %v7779_v24  ;;  %v7781_v15 = vld [vmem:[#allocation2 + $0x110] sm:$0xff]   ;;  %v7797_v22 = vunpack.c.h.bf16 %v6231_v61  ;;  %v7800_v29 = vperm.slane %v1842_v23, 1  ;;  %v7802_v32 = vperm.slane %v1842_v23, 2  ;;  %v1910_v7 = vmul.f32 %v5394_v14, %v7783_v40 }
  0xfc   : > { %10124 = vst [vmem:[#allocation21_spill] sm:$0xff] %v7783_v40  ;;  %v9919_v51 = vunpack.c.l.bf16 %v7781_v15  ;;  %v9918_v5 = vunpack.c.h.bf16 %v7781_v15  ;;  %v1911_v52 = vmul.f32 %v5395_v3, %v7783_v40  ;;  %v1912_v48 = vmul.f32 %v5398_v18, %v7783_v40 }
  0xfd   : > { %10125 = vst [vmem:[#allocation36_spill] sm:$0xff] %v7785_v8  ;;  %v1913_v42 = vmul.f32 %v5399_v0, %v7783_v40  ;;  %v1914_v1 = vmul.f32 %v5402_v60, %v7783_v40  ;;  %v1915_v26 = vmul.f32 %v5403_v19, %v7783_v40  ;;  %v1916_v57 = vmul.f32 %v7779_v24, %v7783_v40 }
  0xfe   : > { %v6233_v50 = vld [vmem:[#allocation2 + $0x128] sm:$0xff]   ;;  %10126 = vst [vmem:[#allocation37_spill] sm:$0xff] %v7800_v29  ;;  %v1917_v44 = vmul.f32 %v7785_v8, %v7783_v40  ;;  %v1918_v9 = vmul.f32 %v5410_v28, %v7783_v40  ;;  %v1919_v21 = vmul.f32 %v5411_v62, %v7783_v40  ;;  %v1920_v30 = vmul.f32 %v7789_v33, %v7783_v40 }
  0xff   : > { %10127 = vst [vmem:[#allocation22_spill] sm:$0xff] %v7802_v32  ;;  %v7828_v37 = vunpack.c.l.bf16 %v6233_v50  ;;  %v7830_v10 = vunpack.c.h.bf16 %v6233_v50  ;;  %v1921_v41 = vmul.f32 %v7791_v59, %v7783_v40  ;;  %v1922_v17 = vmul.f32 %v5418_v38, %v7783_v40 }
 0x100   : > { %v1923_v35 = vmul.f32 %v9920_v34, %v7783_v40  ;;  %v1924_v47 = vmul.f32 %v7795_v39, %v7783_v40  ;;  %v7854_v55 = vmul.f32 %v7797_v22, %v7783_v40  ;;  %v1926_v46 = vmul.f32 %v9919_v51, %v7783_v40  ;;  %653 = vst [vmem:[#allocation2 + $0x188] sm:$0xff] %v621_v36  }
 0x101   : > { %10128 = vst [vmem:[#allocation38_spill] sm:$0xff] %v7828_v37  ;;  %v1927_v43 = vmul.f32 %v9918_v5, %v7783_v40  ;;  %v7865_v16 = vmul.f32 %v7828_v37, %v7783_v40  ;;  %v7869_v53 = vmul.f32 %v7830_v10, %v7783_v40  ;;  %v1945_v4 = vadd.f32 %v7824_v20, %v1910_v7 }
 0x102   : > { %10129 = vst [vmem:[#allocation39_spill] sm:$0xff] %v7830_v10  ;;  %v1946_v31 = vadd.f32 %v7824_v20, %v1911_v52  ;;  %v7875_v12 = vadd.f32 %v7824_v20, %v1912_v48  ;;  %v7878_v6 = vadd.f32 %v7824_v20, %v1913_v42  ;;  %v1949_v23 = vadd.f32 %v7824_v20, %v1914_v1 }
 0x103   : > { %655 = vst [vmem:[#allocation2 + $0x1a0] sm:$0xff] %v623_v25   ;;  %v1950_v63 = vadd.f32 %v7824_v20, %v1915_v26  ;;  %v7883_v14 = vadd.f32 %v7824_v20, %v1916_v57  ;;  %v7886_v13 = vadd.f32 %v7824_v20, %v1917_v44  ;;  %v1953_v2 = vadd.f32 %v7824_v20, %v1918_v9 }
 0x104   : > { %10130 = vst [vmem:[#allocation27_spill] sm:$0xff] %v7875_v12  ;;  %v1954_v3 = vadd.f32 %v7824_v20, %v1919_v21  ;;  %v7891_v61 = vadd.f32 %v7824_v20, %v1920_v30  ;;  %v2042_v50 = vmul.f32 %v5398_v18, %v7800_v29  ;;  %v2043_v7 = vmul.f32 %v5399_v0, %v7800_v29  ;;  %v6264_v0 = vld [vmem:[#allocation2 + $0x140] sm:$0xff]  }
 0x105   : > { %10131 = vst [vmem:[#allocation40_spill] sm:$0xff] %v7878_v6  ;;  %v2046_v52 = vmul.f32 %v7779_v24, %v7800_v29  ;;  %v2047_v48 = vmul.f32 %v7785_v8, %v7800_v29  ;;  %v2050_v42 = vmul.f32 %v7789_v33, %v7800_v29  ;;  %v2051_v1 = vmul.f32 %v7791_v59, %v7800_v29 }
 0x106   : > { %10132 = vst [vmem:[#allocation41_spill] sm:$0xff] %v7883_v14  ;;  %v1957_v26 = vadd.f32 %v7824_v20, %v1922_v17  ;;  %v1958_v18 = vadd.f32 %v7824_v20, %v1923_v35  ;;  %v1961_v57 = vadd.f32 %v7824_v20, %v1926_v46  ;;  %v1962_v56 = vadd.f32 %v7824_v20, %v1927_v43 }
 0x107   : > { %10133 = vst [vmem:[#allocation24_spill] sm:$0xff] %v7886_v13  ;;  %v2054_v54 = vmul.f32 %v7795_v39, %v7800_v29  ;;  %v2055_v49 = vmul.f32 %v7797_v22, %v7800_v29  ;;  %v2058_v44 = vmul.f32 %v7828_v37, %v7800_v29  ;;  %v2059_v9 = vmul.f32 %v7830_v10, %v7800_v29 }
 0x108   : > { %10134 = vst [vmem:[#allocation42_spill] sm:$0xff] %v7891_v61  ;;  %v2074_v21 = vadd.f32 %v2042_v50, %v1945_v4  ;;  %v2075_v30 = vadd.f32 %v2043_v7, %v1946_v31  ;;  %v2078_v17 = vadd.f32 %v2046_v52, %v1949_v23  ;;  %v2079_v35 = vadd.f32 %v2047_v48, %v1950_v63 }
 0x109   : > { %v2082_v46 = vadd.f32 %v2050_v42, %v1953_v2  ;;  %v2083_v36 = vadd.f32 %v2051_v1, %v1954_v3  ;;  %v5554_v43 = vunpack.c.l.bf16 %v6264_v0  ;;  %v5555_v25 = vunpack.c.h.bf16 %v6264_v0 }
 0x10a   : > { %v2172_v5 = vmul.f32 %v5402_v60, %v7802_v32  ;;  %v2173_v51 = vmul.f32 %v5403_v19, %v7802_v32  ;;  %v2176_v34 = vmul.f32 %v5410_v28, %v7802_v32  ;;  %v2177_v4 = vmul.f32 %v5411_v62, %v7802_v32 }
 0x10b   : > { %v2086_v31 = vadd.f32 %v2054_v54, %v1957_v26  ;;  %v2087_v23 = vadd.f32 %v2055_v49, %v1958_v18  ;;  %v2180_v63 = vmul.f32 %v5418_v38, %v7802_v32  ;;  %v10135_v60 = vunpack.c.h.bf16 %v7775_v27  ;;  %v7951_v26 = vld [vmem:[#allocation9] sm:$0x1f]  ;;  %v2302_v18 = vld [vmem:[#allocation2 + $0x64] sm:$0xc]  ;;  %v2320_v49 = vld [vmem:[#allocation2 + $0xf4] sm:$0xc] }
 0x10c   : > { %v2090_v11 = vadd.f32 %v2058_v44, %v1961_v57  ;;  %v2091_v19 = vadd.f32 %v2059_v9, %v1962_v56  ;;  %v10136_v3 = vunpack.c.l.bf16 %v7781_v15  ;;  %v10137_v45 = vunpack.c.h.bf16 %v7781_v15  ;;  %v2308_v57 = vld [vmem:[#allocation2 + $0x94] sm:$0xc]  ;;  %v2314_v54 = vld [vmem:[#allocation2 + $0xc4] sm:$0xc] }
 0x10d   : > { %v2181_v2 = vmul.f32 %v10135_v60, %v7802_v32  ;;  %v7944_v50 = vadd.f32 %v7824_v20, %v1921_v41  ;;  %v7947_v7 = vadd.f32 %v7824_v20, %v1924_v47  ;;  %v2188_v38 = vmul.f32 %v5554_v43, %v7802_v32  ;;  %v2326_v47 = vld [vmem:[#allocation2 + $0x124] sm:$0xc] }
 0x10e   : > { %v2184_v28 = vmul.f32 %v10136_v3, %v7802_v32  ;;  %v2185_v62 = vmul.f32 %v10137_v45, %v7802_v32  ;;  %v2189_v27 = vmul.f32 %v5555_v25, %v7802_v32  ;;  %v2204_v52 = vadd.f32 %v2172_v5, %v2074_v21  ;;  %v2498_v25 = vld [vmem:[#allocation2 + $0x64] sm:$0x8]  ;;  %v2502_v5 = vld [vmem:[#allocation2 + $0x94] sm:$0x8] }
 0x10f   : > { %10138 = vst [vmem:[#allocation43_spill] sm:$0xff] %v7944_v50  ;;  %v2205_v48 = vadd.f32 %v2173_v51, %v2075_v30  ;;  %v2208_v42 = vadd.f32 %v2176_v34, %v2078_v17  ;;  %v2209_v1 = vadd.f32 %v2177_v4, %v2079_v35  ;;  %v2212_v15 = vadd.f32 %v2180_v63, %v2082_v46  ;;  %v2506_v51 = vld [vmem:[#allocation2 + $0xc4] sm:$0x8]  ;;  %v2510_v35 = vld [vmem:[#allocation2 + $0xf4] sm:$0x8] }
 0x110   : > { %10139 = vst [vmem:[#allocation28_spill] sm:$0xff] %v7947_v7  ;;  %v2213_v56 = vadd.f32 %v2181_v2, %v2083_v36  ;;  %v2216_v0 = vadd.f32 %v2184_v28, %v2086_v31  ;;  %v2217_v41 = vadd.f32 %v2185_v62, %v2087_v23  ;;  %v2220_v44 = vadd.f32 %v2188_v38, %v2090_v11  ;;  %v2514_v4 = vld [vmem:[#allocation2 + $0x124] sm:$0x8] }
 0x111   : > { %v2221_v9 = vadd.f32 %v2189_v27, %v2091_v19  ;;  %v5587_v43 = vpack.c.bf16 %v2205_v48, %v2204_v52  ;;  %v5597_v60 = vpack.c.bf16 %v2209_v1, %v2208_v42  ;;  %v2350_v30 = vunpack.c.l.bf16 %v2302_v18  ;;  %v7975_v1 = vld [vmem:[%s9874_s6] ss:$0 sm:$0xff] }
 0x112   : > { %v5607_v34 = vpack.c.bf16 %v2213_v56, %v2212_v15  ;;  %v5617_v21 = vpack.c.bf16 %v2217_v41, %v2216_v0  ;;  %v2356_v17 = vunpack.c.l.bf16 %v2308_v57  ;;  %v2362_v36 = vunpack.c.l.bf16 %v2314_v54 }
 0x113   : > { %6272 = vst [vmem:[#allocation2 + $0x68] sm:$0xff] %v5587_v43   ;;  %v5627_v46 = vpack.c.bf16 %v2221_v9, %v2220_v44  ;;  %v2368_v31 = vunpack.c.l.bf16 %v2320_v49  ;;  %v2374_v23 = vunpack.c.l.bf16 %v2326_v47  ;;  %v7954_v63 = vperm.slane %v7951_v26, 0 }
 0x114   : > { %6274 = vst [vmem:[#allocation2 + $0x98] sm:$0xff] %v5597_v60   ;;  %v2530_v2 = vunpack.c.l.bf16 %v2498_v25  ;;  %v2534_v11 = vunpack.c.l.bf16 %v2502_v5  ;;  %v2538_v19 = vunpack.c.l.bf16 %v2506_v51  ;;  %v7958_v3 = vadd.f32 %v7824_v20, %v7854_v55 }
 0x115   : > { %10140 = vst [vmem:[#allocation44_spill] sm:$0xff] %v7954_v63  ;;  %v2542_v28 = vunpack.c.l.bf16 %v2510_v35  ;;  %v2546_v45 = vunpack.c.l.bf16 %v2514_v4  ;;  %v7961_v62 = vperm.slane %v7951_v26, 1  ;;  %v2399_v38 = vmul.f32 %v7954_v63, %v2350_v30 }
 0x116   : > { %10141 = vst [vmem:[#allocation45_spill] sm:$0xff] %v7958_v3  ;;  %v2405_v27 = vmul.f32 %v7954_v63, %v2356_v17  ;;  %v2411_v52 = vmul.f32 %v7954_v63, %v2362_v36  ;;  %v2417_v48 = vmul.f32 %v7954_v63, %v2368_v31  ;;  %v7969_v42 = vadd.f32 %v7824_v20, %v7865_v16 }
 0x117   : > { %6276 = vst [vmem:[#allocation2 + $0xc8] sm:$0xff] %v5607_v34   ;;  %v2423_v55 = vmul.f32 %v7954_v63, %v2374_v23  ;;  %v7978_v18 = vmul.f32 %v7961_v62, %v2530_v2  ;;  %v7981_v57 = vmul.f32 %v7961_v62, %v2534_v11  ;;  %v7985_v15 = vadd.f32 %v7824_v20, %v7869_v53 }
 0x118   : > { %10142 = vst [vmem:[#allocation30_spill] sm:$0xff] %v7961_v62  ;;  %v7989_v16 = vmul.f32 %v7789_v33, %v7802_v32  ;;  %v7992_v56 = vmul.f32 %v7961_v62, %v2538_v19  ;;  %v7995_v0 = vperm.slane %v7951_v26, 2  ;;  %v7998_v41 = vadd.f32 %v7975_v1, %v2399_v38 }
 0x119   : > { %6278 = vst [vmem:[#allocation2 + $0xf8] sm:$0xff] %v5617_v21   ;;  %v8001_v54 = vadd.f32 %v7975_v1, %v2405_v27  ;;  %v8004_v49 = vadd.f32 %v7975_v1, %v2411_v52  ;;  %v8007_v20 = vadd.f32 %v7975_v1, %v2417_v48  ;;  %v8012_v47 = vadd.f32 %v7975_v1, %v2423_v55 }
 0x11a   : > { %10143 = vst [vmem:[#allocation46_spill] sm:$0xff] %v7969_v42  ;;  %v8009_v33 = vld [vmem:[#allocation2 + $0x68] sm:$0xff]   ;;  %v8015_v9 = vmul.f32 %v7961_v62, %v2542_v28  ;;  %v8018_v43 = vmul.f32 %v7961_v62, %v2546_v45  ;;  %v2679_v23 = vrot.slane %v7992_v56, 2  ;;  %v10147_v6 = vrot.slane %v7978_v18, 2 }
 0x11b   : > { %6280 = vst [vmem:[#allocation2 + $0x128] sm:$0xff] %v5627_v46   ;;  %v2304_v53 = vld [vmem:[#allocation2 + $0x6c] sm:$0x3]  ;;  %v8021_v25 = vld [vmem:[#allocation2 + $0x98] sm:$0xff]   ;;  %v8024_v51 = vunpack.c.l.bf16 %v8009_v33 }
 0x11c   : > { %10144 = vst [vmem:[#allocation47_spill] sm:$0xff] %v7985_v15  ;;  %v2499_v44 = vld [vmem:[#allocation2 + $0x6c] sm:$0x7]  ;;  %v2310_v5 = vld [vmem:[#allocation2 + $0x9c] sm:$0x3]  ;;  %v2352_v34 = vunpack.c.l.bf16 %v2304_v53  ;;  %v8030_v46 = vunpack.c.l.bf16 %v8021_v25 }
 0x11d   : > { %10145 = vst [vmem:[#allocation34_spill] sm:$0xff] %v7989_v16  ;;  %v2503_v21 = vld [vmem:[#allocation2 + $0x9c] sm:$0x7]  ;;  %v2531_v30 = vunpack.c.l.bf16 %v2499_v44  ;;  %v2358_v36 = vunpack.c.l.bf16 %v2310_v5  ;;  %v2400_v45 = vmul.f32 %v7954_v63, %v8024_v51 }
 0x11e   : > { %10146 = vst [vmem:[#allocation48_spill] sm:$0xff] %v7995_v0  ;;  %v8027_v35 = vld [vmem:[#allocation2 + $0xc8] sm:$0xff]   ;;  %v2535_v31 = vunpack.c.l.bf16 %v2503_v21  ;;  %v2401_v38 = vmul.f32 %v7954_v63, %v2352_v34  ;;  %v2406_v56 = vmul.f32 %v7954_v63, %v8030_v46 }
 0x11f   : > { %v2316_v4 = vld [vmem:[#allocation2 + $0xcc] sm:$0x3]  ;;  %v8036_v19 = vunpack.c.l.bf16 %v8027_v35  ;;  %v2407_v53 = vmul.f32 %v7954_v63, %v2358_v36  ;;  %v2689_v36 = vrot.slane %v8015_v9, 2 }
 0x120   : > { %v8033_v2 = vld [vmem:[#allocation2 + $0xf8] sm:$0xff]   ;;  %v2364_v28 = vunpack.c.l.bf16 %v2316_v4  ;;  %v2507_v60 = vld [vmem:[#allocation2 + $0xcc] sm:$0x7]  ;;  %v2452_v24 = vadd.f32 %v7975_v1, %v2401_v38  ;;  %v2564_v38 = vmul.f32 %v7961_v62, %v8024_v51 }
 0x121   : > { %v2322_v11 = vld [vmem:[#allocation2 + $0xfc] sm:$0x3]  ;;  %v8044_v48 = vunpack.c.l.bf16 %v8033_v2  ;;  %v2412_v21 = vmul.f32 %v7954_v63, %v8036_v19  ;;  %v2458_v42 = vadd.f32 %v7975_v1, %v2407_v53  ;;  %v2539_v50 = vunpack.c.l.bf16 %v2507_v60 }
 0x122   : > { %v8041_v27 = vld [vmem:[#allocation2 + $0x128] sm:$0xff]   ;;  %v2370_v55 = vunpack.c.l.bf16 %v2322_v11  ;;  %v2413_v34 = vmul.f32 %v7954_v63, %v2364_v28  ;;  %v2451_v11 = vadd.f32 %v7975_v1, %v2400_v45  ;;  %v2511_v16 = vld [vmem:[#allocation2 + $0xfc] sm:$0x7]  ;;  %v2457_v28 = vadd.f32 %v7975_v1, %v2406_v56 }
 0x123   : > { %v2328_v52 = vld [vmem:[#allocation2 + $0x12c] sm:$0x3]  ;;  %v8050_v44 = vunpack.c.l.bf16 %v8041_v27  ;;  %v2418_v4 = vmul.f32 %v7954_v63, %v8044_v48  ;;  %v2543_v61 = vunpack.c.l.bf16 %v2511_v16  ;;  %v2565_v56 = vmul.f32 %v7961_v62, %v2531_v30 }
 0x124   : > { %v2376_v5 = vunpack.c.l.bf16 %v2328_v52  ;;  %v2419_v17 = vmul.f32 %v7954_v63, %v2370_v55  ;;  %v2515_v15 = vld [vmem:[#allocation2 + $0x12c] sm:$0x7]  ;;  %v2463_v55 = vadd.f32 %v7975_v1, %v2412_v21  ;;  %v2464_v45 = vadd.f32 %v7975_v1, %v2413_v34 }
 0x125   : > { %v2424_v8 = vmul.f32 %v7954_v63, %v8050_v44  ;;  %v2469_v3 = vadd.f32 %v7975_v1, %v2418_v4  ;;  %v2570_v53 = vmul.f32 %v7961_v62, %v8030_v46  ;;  %v2571_v21 = vmul.f32 %v7961_v62, %v2535_v31 }
 0x126   : > { %v2425_v52 = vmul.f32 %v7954_v63, %v2376_v5  ;;  %v2470_v9 = vadd.f32 %v7975_v1, %v2419_v17  ;;  %v2547_v5 = vunpack.c.l.bf16 %v2515_v15  ;;  %v2576_v34 = vmul.f32 %v7961_v62, %v8036_v19 }
 0x127   : > { %v2475_v7 = vadd.f32 %v7975_v1, %v2424_v8  ;;  %v2577_v17 = vmul.f32 %v7961_v62, %v2539_v50  ;;  %v2582_v8 = vmul.f32 %v7961_v62, %v8044_v48  ;;  %v2583_v15 = vmul.f32 %v7961_v62, %v2543_v61 }
 0x128   : > { %v2588_v16 = vmul.f32 %v7961_v62, %v8050_v44  ;;  %v8086_v60 = vmul.f32 %v7961_v62, %v2547_v5  ;;  %v2660_v30 = vrot.slane %v2564_v38, 2  ;;  %v2662_v4 = vrot.slane %v2565_v56, 2 }
 0x129   : > { %v2670_v13 = vrot.slane %v2570_v53, 2  ;;  %v2672_v31 = vrot.slane %v2571_v21, 2  ;;  %v2680_v14 = vrot.slane %v2576_v34, 2  ;;  %v2682_v12 = vrot.slane %v2577_v17, 2 }
 0x12a   : > { %v2661_v50 = vsel %vm1198_vm1, %v10147_v6, %v2660_v30  ;;  %v2690_v29 = vrot.slane %v2582_v8, 2  ;;  %v2692_v10 = vrot.slane %v2583_v15, 2  ;;  %v2476_v61 = vadd.f32 %v7975_v1, %v2425_v52 }
 0x12b   : > { %v2663_v37 = vsel %vm1198_vm1, %v2660_v30, %v2662_v4  ;;  %v10148_v63 = vrot.slane %v7981_v57, 2  ;;  %v2673_v38 = vsel %vm1198_vm1, %v2670_v13, %v2672_v31  ;;  %v2681_v56 = vsel %vm1198_vm1, %v2679_v23, %v2680_v14 }
 0x12c   : > { %v2683_v53 = vsel %vm1198_vm1, %v2680_v14, %v2682_v12  ;;  %v2691_v18 = vsel %vm1198_vm1, %v2689_v36, %v2690_v29  ;;  %v2699_v6 = vrot.slane %v8018_v43, 2  ;;  %v2693_v21 = vsel %vm1198_vm1, %v2690_v29, %v2692_v10 }
 0x12d   : > { %v2671_v5 = vsel %vm1198_vm1, %v10148_v63, %v2670_v13  ;;  %v2700_v34 = vrot.slane %v2588_v16, 2  ;;  %v2702_v1 = vrot.slane %v8086_v60, 2  ;;  %v2787_v52 = vadd.f32 %v2661_v50, %v7998_v41 }
 0x12e   : > { %v2788_v57 = vadd.f32 %v2663_v37, %v2451_v11  ;;  %v2789_v17 = vadd.f32 %v2662_v4, %v2452_v24  ;;  %v2793_v63 = vadd.f32 %v2671_v5, %v8001_v54  ;;  %v2794_v13 = vadd.f32 %v2673_v38, %v2457_v28 }
 0x12f   : > { %v2701_v23 = vsel %vm1198_vm1, %v2699_v6, %v2700_v34  ;;  %v2703_v14 = vsel %vm1198_vm1, %v2700_v34, %v2702_v1  ;;  %v2795_v8 = vadd.f32 %v2672_v31, %v2458_v42  ;;  %v2799_v36 = vadd.f32 %v2681_v56, %v8004_v49  ;;  %v3078_v34 = vld [vmem:[#allocation2 + $0x70] sm:$0x1] }
 0x130   : > { %v2800_v43 = vadd.f32 %v2683_v53, %v2463_v55  ;;  %v2801_v15 = vadd.f32 %v2682_v12, %v2464_v45  ;;  %v2805_v29 = vadd.f32 %v2691_v18, %v8007_v20  ;;  %v2806_v16 = vadd.f32 %v2693_v21, %v2469_v3  ;;  %v3077_v21 = vld [vmem:[#allocation2 + $0x68] sm:$0xe] }
 0x131   : > { %v2807_v60 = vadd.f32 %v2692_v10, %v2470_v9  ;;  %v2811_v41 = vadd.f32 %v2701_v23, %v8012_v47  ;;  %v2812_v37 = vadd.f32 %v2703_v14, %v2475_v7  ;;  %v8111_v24 = vunpack.c.h.bf16 %v8009_v33 }
 0x132   : > { %v8114_v54 = vunpack.c.h.bf16 %v8021_v25  ;;  %v8117_v11 = vunpack.c.h.bf16 %v8027_v35  ;;  %v8120_v42 = vunpack.c.h.bf16 %v8033_v2  ;;  %v8123_v12 = vunpack.c.h.bf16 %v8041_v27 }
 0x133   : > { %v2868_v10 = vmul.f32 %v7995_v0, %v8024_v51  ;;  %v2869_v7 = vmul.f32 %v7995_v0, %v8111_v24  ;;  %v2872_v3 = vmul.f32 %v7995_v0, %v8030_v46  ;;  %v2876_v49 = vmul.f32 %v7995_v0, %v8036_v19 }
 0x134   : > { %v2873_v20 = vmul.f32 %v7995_v0, %v8114_v54  ;;  %v2877_v33 = vmul.f32 %v7995_v0, %v8117_v11  ;;  %v2880_v47 = vmul.f32 %v7995_v0, %v8044_v48  ;;  %v2881_v25 = vmul.f32 %v7995_v0, %v8120_v42 }
 0x135   : > { %v2884_v51 = vmul.f32 %v7995_v0, %v8050_v44  ;;  %v2885_v35 = vmul.f32 %v7995_v0, %v8123_v12  ;;  %v2933_v46 = vrot.slane %v2868_v10, 4  ;;  %v2934_v2 = vrot.slane %v2869_v7, 4  ;;  %v3085_v7 = vld [vmem:[#allocation2 + $0xc8] sm:$0xe] }
 0x136   : > { %v2939_v19 = vrot.slane %v2872_v3, 4  ;;  %v2940_v27 = vrot.slane %v2873_v20, 4  ;;  %v2945_v28 = vrot.slane %v2876_v49, 4  ;;  %v2946_v55 = vrot.slane %v2877_v33, 4  ;;  %v3086_v3 = vld [vmem:[#allocation2 + $0xd0] sm:$0x1] }
 0x137   : > { %v2951_v45 = vrot.slane %v2880_v47, 4  ;;  %v2952_v9 = vrot.slane %v2881_v25, 4  ;;  %v2957_v30 = vrot.slane %v2884_v51, 4  ;;  %v2813_v48 = vadd.f32 %v2702_v1, %v2476_v61  ;;  %v3081_v1 = vld [vmem:[#allocation2 + $0x98] sm:$0xe] }
 0x138   : > { %v2935_v4 = vsel %vm2932_vm5, %v2933_v46, %v2934_v2  ;;  %v2941_v31 = vsel %vm2932_vm5, %v2939_v19, %v2940_v27  ;;  %v2958_v50 = vrot.slane %v2885_v35, 4  ;;  %v2947_v44 = vsel %vm2932_vm5, %v2945_v28, %v2946_v55  ;;  %v3089_v20 = vld [vmem:[#allocation2 + $0xf8] sm:$0xe]  ;;  %v3093_v33 = vld [vmem:[#allocation2 + $0x128] sm:$0xe] }
 0x139   : > { %v2953_v5 = vsel %vm2932_vm5, %v2951_v45, %v2952_v9  ;;  %v8149_v38 = vadd.f32 %v2933_v46, %v2787_v52  ;;  %v8151_v56 = vadd.f32 %v2935_v4, %v2788_v57  ;;  %v8154_v18 = vadd.f32 %v2934_v2, %v2789_v17  ;;  %v3082_v57 = vld [vmem:[#allocation2 + $0xa0] sm:$0x1]  ;;  %v8178_v51 = vld [vmem:[#allocation2 + $0x68] sm:$0xc]  ;;  %v8180_v35 = vld [vmem:[#allocation2 + $0x70] sm:$0x3] }
 0x13a   : > { %v2959_v53 = vsel %vm2932_vm5, %v2957_v30, %v2958_v50  ;;  %v8156_v6 = vadd.f32 %v2939_v19, %v2793_v63  ;;  %v8158_v61 = vadd.f32 %v2941_v31, %v2794_v13  ;;  %v8160_v23 = vadd.f32 %v2940_v27, %v2795_v8  ;;  %v3090_v8 = vld [vmem:[#allocation2 + $0x100] sm:$0x1] }
 0x13b   : > { %v8162_v14 = vadd.f32 %v2945_v28, %v2799_v36  ;;  %v8164_v10 = vadd.f32 %v2947_v44, %v2800_v43  ;;  %v8166_v52 = vadd.f32 %v2946_v55, %v2801_v15  ;;  %v8168_v17 = vadd.f32 %v2951_v45, %v2805_v29  ;;  %v3094_v43 = vld [vmem:[#allocation2 + $0x130] sm:$0x1] }
 0x13c   : > { %v8170_v63 = vadd.f32 %v2953_v5, %v2806_v16  ;;  %v8172_v13 = vadd.f32 %v2952_v9, %v2807_v60  ;;  %v8174_v49 = vadd.f32 %v2957_v30, %v2811_v41  ;;  %v8176_v36 = vadd.f32 %v2959_v53, %v2812_v37 }
 0x13d   : > { %v3109_v47 = vunpack.c.l.bf16 %v3077_v21  ;;  %v3110_v15 = vunpack.c.l.bf16 %v3078_v34  ;;  %v3113_v25 = vunpack.c.l.bf16 %v3081_v1  ;;  %v8182_v29 = vadd.f32 %v2958_v50, %v2813_v48 }
 0x13e   : > { %v3114_v16 = vunpack.c.l.bf16 %v3082_v57  ;;  %v3117_v60 = vunpack.c.l.bf16 %v3085_v7  ;;  %v3118_v46 = vunpack.c.l.bf16 %v3086_v3  ;;  %v3121_v41 = vunpack.c.l.bf16 %v3089_v20  ;;  %v8209_v20 = vld [vmem:[#allocation2 + $0x98] sm:$0xc] }
 0x13f   : > { %v3122_v2 = vunpack.c.l.bf16 %v3090_v8  ;;  %v3125_v19 = vunpack.c.l.bf16 %v3093_v33  ;;  %v8185_v27 = vperm.slane %v7951_v26, 3  ;;  %v3126_v37 = vunpack.c.l.bf16 %v3094_v43 }
 0x140   : > { %v3447_v28 = vunpack.c.l.bf16 %v8178_v51  ;;  %v3448_v55 = vunpack.c.l.bf16 %v8180_v35 }
 0x141   : > { %v3142_v45 = vmul.f32 %v8185_v27, %v3109_v47  ;;  %v3143_v9 = vmul.f32 %v8185_v27, %v8111_v24  ;;  %v3144_v30 = vmul.f32 %v8185_v27, %v3110_v15  ;;  %v3148_v48 = vmul.f32 %v8185_v27, %v3113_v25 }
 0x142   : > { %v3149_v4 = vmul.f32 %v8185_v27, %v8114_v54  ;;  %v3150_v31 = vmul.f32 %v8185_v27, %v3114_v16  ;;  %v3154_v50 = vmul.f32 %v8185_v27, %v3117_v60  ;;  %v3155_v44 = vmul.f32 %v8185_v27, %v8117_v11 }
 0x143   : > { %v3156_v5 = vmul.f32 %v8185_v27, %v3118_v46  ;;  %v3160_v53 = vmul.f32 %v8185_v27, %v3121_v41  ;;  %v3161_v21 = vmul.f32 %v8185_v27, %v8120_v42  ;;  %v3162_v34 = vmul.f32 %v8185_v27, %v3122_v2 }
 0x144   : > { %v3166_v1 = vmul.f32 %v8185_v27, %v3125_v19  ;;  %v3167_v57 = vmul.f32 %v8185_v27, %v8123_v12  ;;  %v3168_v7 = vmul.f32 %v8185_v27, %v3126_v37  ;;  %v3239_v3 = vrot.slane %v3142_v45, 6 }
 0x145   : > { %v3240_v8 = vrot.slane %v3143_v9, 6  ;;  %v3242_v33 = vrot.slane %v3144_v30, 6  ;;  %v3249_v43 = vrot.slane %v3148_v48, 6  ;;  %v3250_v47 = vrot.slane %v3149_v4, 6 }
 0x146   : > { %v3252_v15 = vrot.slane %v3150_v31, 6  ;;  %v3259_v25 = vrot.slane %v3154_v50, 6  ;;  %v3260_v16 = vrot.slane %v3155_v44, 6  ;;  %v3262_v60 = vrot.slane %v3156_v5, 6 }
 0x147   : > { %v3241_v46 = vsel %vm3238_vm6, %v3239_v3, %v3240_v8  ;;  %v3243_v41 = vsel %vm3238_vm6, %v3240_v8, %v3242_v33  ;;  %v3269_v2 = vrot.slane %v3160_v53, 6  ;;  %v3451_v19 = vunpack.c.l.bf16 %v8209_v20 }
 0x148   : > { %v3251_v37 = vsel %vm3238_vm6, %v3249_v43, %v3250_v47  ;;  %v3253_v45 = vsel %vm3238_vm6, %v3250_v47, %v3252_v15  ;;  %v3261_v9 = vsel %vm3238_vm6, %v3259_v25, %v3260_v16  ;;  %v3270_v30 = vrot.slane %v3161_v21, 6 }
 0x149   : > { %v3272_v48 = vrot.slane %v3162_v34, 6  ;;  %v3279_v4 = vrot.slane %v3166_v1, 6  ;;  %v3280_v31 = vrot.slane %v3167_v57, 6  ;;  %v3282_v50 = vrot.slane %v3168_v7, 6  ;;  %v3420_v34 = vld [vmem:[#allocation2 + $0xa0] sm:$0x3] }
 0x14a   : > { %v3263_v44 = vsel %vm3238_vm6, %v3260_v16, %v3262_v60  ;;  %v3271_v5 = vsel %vm3238_vm6, %v3269_v2, %v3270_v30  ;;  %v3367_v8 = vadd.f32 %v3239_v3, %v8149_v38  ;;  %v3368_v53 = vadd.f32 %v3241_v46, %v8151_v56  ;;  %v3423_v38 = vld [vmem:[#allocation2 + $0xc8] sm:$0xc]  ;;  %v3424_v3 = vld [vmem:[#allocation2 + $0xd0] sm:$0x3]  ;;  %v3427_v56 = vld [vmem:[#allocation2 + $0xf8] sm:$0xc] }
 0x14b   : > { %v3273_v20 = vsel %vm3238_vm6, %v3270_v30, %v3272_v48  ;;  %v3281_v33 = vsel %vm3238_vm6, %v3279_v4, %v3280_v31  ;;  %v3283_v47 = vsel %vm3238_vm6, %v3280_v31, %v3282_v50  ;;  %v3369_v21 = vadd.f32 %v3243_v41, %v8154_v18  ;;  %v3428_v41 = vld [vmem:[#allocation2 + $0x100] sm:$0x3]  ;;  %v3431_v30 = vld [vmem:[#allocation2 + $0x128] sm:$0xc] }
 0x14c   : > { %v3373_v1 = vadd.f32 %v3249_v43, %v8156_v6  ;;  %v3374_v57 = vadd.f32 %v3251_v37, %v8158_v61  ;;  %v3375_v7 = vadd.f32 %v3253_v45, %v8160_v23  ;;  %v3379_v15 = vadd.f32 %v3259_v25, %v8162_v14  ;;  %v3432_v6 = vld [vmem:[#allocation2 + $0x130] sm:$0x3]  ;;  %v8237_v25 = vld [vmem:[#allocation2 + $0x8] sm:$0xff]  }
 0x14d   : > { %v3380_v16 = vadd.f32 %v3261_v9, %v8164_v10  ;;  %v3381_v60 = vadd.f32 %v3263_v44, %v8166_v52  ;;  %v3385_v46 = vadd.f32 %v3269_v2, %v8168_v17  ;;  %v3386_v18 = vadd.f32 %v3271_v5, %v8170_v63  ;;  %v8239_v10 = vld [vmem:[#allocation2 + $0x38] sm:$0xff]  }
 0x14e   : > { %v3387_v61 = vadd.f32 %v3273_v20, %v8172_v13  ;;  %v3391_v23 = vadd.f32 %v3279_v4, %v8174_v49  ;;  %v3392_v14 = vadd.f32 %v3281_v33, %v8176_v36  ;;  %v3393_v43 = vadd.f32 %v3283_v47, %v8182_v29 }
 0x14f   : > { %v3452_v52 = vunpack.c.l.bf16 %v3420_v34  ;;  %v3455_v37 = vunpack.c.l.bf16 %v3423_v38  ;;  %v3456_v17 = vunpack.c.l.bf16 %v3424_v3  ;;  %v3459_v2 = vunpack.c.l.bf16 %v3427_v56 }
 0x150   : > { %v3460_v63 = vunpack.c.l.bf16 %v3428_v41  ;;  %v3463_v45 = vunpack.c.l.bf16 %v3431_v30  ;;  %v3464_v9 = vunpack.c.l.bf16 %v3432_v6  ;;  %v8242_v48 = vperm.slane %v7951_v26, 4 }
 0x151   : > { %v5666_v13 = vunpack.c.l.bf16 %v8237_v25  ;;  %v5667_v49 = vunpack.c.h.bf16 %v8237_v25  ;;  %v8329_v25 = vld [vmem:[#allocation2 + $0x188] sm:$0xff]  }
 0x152   : > { %v3480_v4 = vmul.f32 %v8242_v48, %v3447_v28  ;;  %v3481_v31 = vmul.f32 %v8242_v48, %v8111_v24  ;;  %v3482_v26 = vmul.f32 %v8242_v48, %v3448_v55  ;;  %v3486_v50 = vmul.f32 %v8242_v48, %v3451_v19 }
 0x153   : > { %v3487_v44 = vmul.f32 %v8242_v48, %v8114_v54  ;;  %v3488_v5 = vmul.f32 %v8242_v48, %v3452_v52  ;;  %v3492_v20 = vmul.f32 %v8242_v48, %v3455_v37  ;;  %v3493_v51 = vmul.f32 %v8242_v48, %v8117_v11 }
 0x154   : > { %v3494_v28 = vmul.f32 %v8242_v48, %v3456_v17  ;;  %v3498_v24 = vmul.f32 %v8242_v48, %v3459_v2  ;;  %v3499_v35 = vmul.f32 %v8242_v48, %v8120_v42  ;;  %v3500_v55 = vmul.f32 %v8242_v48, %v3460_v63 }
 0x155   : > { %v3504_v19 = vmul.f32 %v8242_v48, %v3463_v45  ;;  %v3505_v54 = vmul.f32 %v8242_v48, %v8123_v12  ;;  %v3506_v33 = vmul.f32 %v8242_v48, %v3464_v9  ;;  %v3528_v47 = vadd.f32 %v3480_v4, %v3367_v8 }
 0x156   : > { %v3529_v34 = vadd.f32 %v3481_v31, %v3368_v53  ;;  %v3530_v38 = vadd.f32 %v3482_v26, %v3369_v21  ;;  %v3534_v11 = vadd.f32 %v3486_v50, %v3373_v1  ;;  %v3535_v3 = vadd.f32 %v3487_v44, %v3374_v57 }
 0x157   : > { %v3536_v56 = vadd.f32 %v3488_v5, %v3375_v7  ;;  %v3540_v41 = vadd.f32 %v3492_v20, %v3379_v15  ;;  %v3541_v30 = vadd.f32 %v3493_v51, %v3380_v16  ;;  %v3542_v6 = vadd.f32 %v3494_v28, %v3381_v60  ;;  %v3851_v51 = vld [vmem:[#allocation11] sm:$0x1f] }
 0x158   : > { %v3546_v52 = vadd.f32 %v3498_v24, %v3385_v46  ;;  %v3547_v42 = vadd.f32 %v3499_v35, %v3386_v18  ;;  %v3548_v37 = vadd.f32 %v3500_v55, %v3387_v61  ;;  %v3552_v17 = vadd.f32 %v3504_v19, %v3391_v23 }
 0x159   : > { %v3553_v2 = vadd.f32 %v3505_v54, %v3392_v14  ;;  %v3554_v63 = vadd.f32 %v3506_v33, %v3393_v43  ;;  %v3576_v45 = vpack.c.bf16 %v3528_v47, %v3528_v47  ;;  %v3577_v29 = vpack.c.bf16 %v3529_v34, %v3529_v34  ;;  %v6218_v33 = vld [vmem:[#allocation2 + $0x158] sm:$0xff]  }
 0x15a   : > { %v3578_v12 = vpack.c.bf16 %v3530_v38, %v3530_v38  ;;  %v3582_v36 = vpack.c.bf16 %v3534_v11, %v3534_v11  ;;  %v3583_v9 = vpack.c.bf16 %v3535_v3, %v3535_v3  ;;  %v3584_v8 = vpack.c.bf16 %v3536_v56, %v3536_v56  ;;  %v8293_v3 = vld [vmem:[%s9876_s8] ss:$0 sm:$0xff] }
 0x15b   : > { %v3588_v53 = vpack.c.bf16 %v3540_v41, %v3540_v41  ;;  %v3589_v21 = vpack.c.bf16 %v3541_v30, %v3541_v30  ;;  %v3590_v1 = vpack.c.bf16 %v3542_v6, %v3542_v6  ;;  %v3594_v57 = vpack.c.bf16 %v3546_v52, %v3546_v52 }
 0x15c   : > { %v3595_v7 = vpack.c.bf16 %v3547_v42, %v3547_v42  ;;  %v3596_v15 = vpack.c.bf16 %v3548_v37, %v3548_v37  ;;  %v3600_v16 = vpack.c.bf16 %v3552_v17, %v3552_v17  ;;  %v3601_v60 = vpack.c.bf16 %v3553_v2, %v3553_v2 }
 0x15d   : > { %v10149_v46 = vmov 0  ;;  %v3602_v18 = vpack.c.bf16 %v3554_v63, %v3554_v63  ;;  %v5185_v61 = vrot.slane %v3576_v45, 10  ;;  %v3677_v23 = vrot.slane %v3577_v29, 6 }
 0x15e   : > { %v10150_v46 = vsel %vm8274_vm8, 4294967295, %v10149_v46  ;;  %v3680_v14 = vrot.slane %v3578_v12, 6  ;;  %v5187_v43 = vrot.slane %v3582_v36, 10  ;;  %v3691_v4 = vrot.slane %v3583_v9, 6  ;;  %v6219_v12 = vld [vmem:[#allocation2 + $0x170] sm:$0xff]  }
 0x15f   : > { %10151 = vst [vmem:[#allocation49_spill] sm:$0xff] %v10150_v46  ;;  %v3694_v31 = vrot.slane %v3584_v8, 6  ;;  %v5189_v26 = vrot.slane %v3588_v53, 10  ;;  %v3678_v50 = vsel %vm8274_vm8, %v5185_v61, %v3677_v23  ;;  %v3679_v44 = vrot.slane %v3677_v23, 4  ;;  %v8339_v61 = vld [vmem:[#allocation2 + $0x16c] sm:$0x8] }
 0x160   : > { %v3705_v5 = vrot.slane %v3589_v21, 6  ;;  %v3708_v20 = vrot.slane %v3590_v1, 6  ;;  %v3692_v28 = vsel %vm8274_vm8, %v5187_v43, %v3691_v4  ;;  %v3693_v24 = vrot.slane %v3691_v4, 4  ;;  %3819 = vst [vmem:[#allocation2 + $0x68] sm:$0xf] %v3678_v50 }
 0x161   : > { %v5191_v35 = vrot.slane %v3594_v57, 10  ;;  %v3719_v55 = vrot.slane %v3595_v7, 6  ;;  %v3681_v36 = vsel %vm8274_vm8, %v3679_v44, %v3680_v14  ;;  %v3722_v54 = vrot.slane %v3596_v15, 6  ;;  %3823 = vst [vmem:[#allocation2 + $0x98] sm:$0xf] %v3692_v28 }
 0x162   : > { %v3706_v29 = vsel %vm8274_vm8, %v5189_v26, %v3705_v5  ;;  %v3707_v19 = vrot.slane %v3705_v5, 4  ;;  %v3695_v47 = vsel %vm8274_vm8, %v3693_v24, %v3694_v31  ;;  %v5193_v11 = vrot.slane %v3600_v16, 10  ;;  %3820 = vst [vmem:[#allocation2 + $0x6c] sm:$0xf] %v3681_v36 }
 0x163   : > { %v3720_v34 = vsel %vm8274_vm8, %v5191_v35, %v3719_v55  ;;  %v3721_v38 = vrot.slane %v3719_v55, 4  ;;  %v3733_v41 = vrot.slane %v3601_v60, 6  ;;  %v3736_v30 = vrot.slane %v3602_v18, 6  ;;  %3824 = vst [vmem:[#allocation2 + $0x9c] sm:$0xf] %v3695_v47 }
 0x164   : > { %v3709_v56 = vsel %vm8274_vm8, %v3707_v19, %v3708_v20  ;;  %v8297_v6 = vperm.slane %v3851_v51, 0  ;;  %v8301_v52 = vmul.f32 %v7791_v59, %v7802_v32  ;;  %3827 = vst [vmem:[#allocation2 + $0xc8] sm:$0xf] %v3706_v29  ;;  %v8305_v37 = vperm.slane %v3851_v51, 1  ;;  %v8335_v60 = vld [vmem:[#allocation2 + $0x154] sm:$0x8] }
 0x165   : > { %v3723_v42 = vsel %vm8274_vm8, %v3721_v38, %v3722_v54  ;;  %v8307_v17 = vunpack.c.l.bf16 %v6218_v33  ;;  %v3734_v2 = vsel %vm8274_vm8, %v5193_v11, %v3733_v41  ;;  %v3735_v63 = vrot.slane %v3733_v41, 4  ;;  %3828 = vst [vmem:[#allocation2 + $0xcc] sm:$0xf] %v3709_v56 }
 0x166   : > { %10152 = vst [vmem:[#allocation25_spill] sm:$0xff] %v8297_v6  ;;  %v3918_v45 = vmul.f32 %v5666_v13, %v8297_v6  ;;  %v3919_v59 = vmul.f32 %v5667_v49, %v8297_v6  ;;  %v10155_v9 = vunpack.c.l.bf16 %v8239_v10  ;;  %v10156_v53 = vunpack.c.h.bf16 %v8239_v10 }
 0x167   : > { %10153 = vst [vmem:[#allocation50_spill] sm:$0xff] %v8301_v52  ;;  %v3737_v49 = vsel %vm8274_vm8, %v3735_v63, %v3736_v30  ;;  %v8337_v18 = vunpack.c.h.bf16 %v6218_v33  ;;  %v8341_v23 = vperm.slane %v3851_v51, 2  ;;  %v8343_v10 = vperm.slane %v3851_v51, 3  ;;  %v625_v30 = vld [vmem:[%s7012_s1 + $0x70] sm:$0xff]  }
 0x168   : > { %10154 = vst [vmem:[#allocation51_spill] sm:$0xff] %v8305_v37  ;;  %v3922_v8 = vmul.f32 %v10155_v9, %v8297_v6  ;;  %v3923_v21 = vmul.f32 %v10156_v53, %v8297_v6  ;;  %v10157_v1 = vmov %v10155_v9  ;;  %v10158_v13 = vmov %v10156_v53 }
 0x169   : > { %3831 = vst [vmem:[#allocation2 + $0xf8] sm:$0xf] %v3720_v34  ;;  %v4051_v57 = vmul.f32 %v10157_v1, %v8305_v37  ;;  %v4052_v7 = vmul.f32 %v10158_v13, %v8305_v37  ;;  %v3953_v15 = vadd.f32 %v8293_v3, %v3918_v45  ;;  %v3954_v16 = vadd.f32 %v8293_v3, %v3919_v59  ;;  %v6292_v4 = vld [vmem:[#allocation2 + $0x68] sm:$0xff]  }
 0x16a   : > { %3832 = vst [vmem:[#allocation2 + $0xfc] sm:$0xf] %v3723_v42  ;;  %v8345_v14 = vperm.slane %v3851_v51, 4  ;;  %v8347_v43 = vunpack.c.l.bf16 %v6219_v12  ;;  %v3957_v31 = vadd.f32 %v8293_v3, %v3922_v8  ;;  %v3958_v26 = vadd.f32 %v8293_v3, %v3923_v21  ;;  %v6308_v28 = vld [vmem:[#allocation2 + $0x98] sm:$0xff]  }
 0x16b   : > { %3835 = vst [vmem:[#allocation2 + $0x128] sm:$0xf] %v3734_v2  ;;  %v8351_v50 = vunpack.c.h.bf16 %v6219_v12  ;;  %v8354_v44 = vunpack.c.l.bf16 %v8329_v25  ;;  %v5682_v5 = vunpack.c.l.bf16 %v6292_v4  ;;  %v5683_v20 = vunpack.c.h.bf16 %v6292_v4  ;;  %v627_v21 = vld [vmem:[%s7012_s1 + $0x78] sm:$0xff]  }
 0x16c   : > { %10159 = vst [vmem:[#allocation31_spill] sm:$0xff] %v8341_v23  ;;  %v4083_v24 = vadd.f32 %v4051_v57, %v3953_v15  ;;  %v4084_v51 = vadd.f32 %v4052_v7, %v3954_v16  ;;  %v5746_v35 = vunpack.c.l.bf16 %v6308_v28  ;;  %v5747_v55 = vunpack.c.h.bf16 %v6308_v28  ;;  %v6324_v34 = vld [vmem:[#allocation2 + $0xc8] sm:$0xff]  }
 0x16d   : > { %10160 = vst [vmem:[#allocation52_spill] sm:$0xff] %v8343_v10  ;;  %v741_v36 = vunpack.c.l.bf16 %v8335_v60  ;;  %v744_v29 = vunpack.c.l.bf16 %v8339_v61  ;;  %v3926_v19 = vmul.f32 %v5682_v5, %v8297_v6  ;;  %v3927_v54 = vmul.f32 %v5683_v20, %v8297_v6 }
 0x16e   : > { %10161 = vst [vmem:[#allocation53_spill] sm:$0xff] %v8345_v14  ;;  %v4055_v33 = vmul.f32 %v5682_v5, %v8305_v37  ;;  %v4056_v47 = vmul.f32 %v5683_v20, %v8305_v37  ;;  %v4059_v38 = vmul.f32 %v5746_v35, %v8305_v37  ;;  %v4060_v11 = vmul.f32 %v5747_v55, %v8305_v37 }
 0x16f   : > { %3836 = vst [vmem:[#allocation2 + $0x12c] sm:$0xf] %v3737_v49  ;;  %v8364_v56 = vunpack.c.l.bf16 %v6324_v34  ;;  %v8366_v41 = vunpack.c.h.bf16 %v6324_v34  ;;  %v3961_v42 = vadd.f32 %v8293_v3, %v3926_v19  ;;  %v3962_v2 = vadd.f32 %v8293_v3, %v3927_v54 }
 0x170   : > { %v8371_v63 = vadd.f32 %v4055_v33, %v3957_v31  ;;  %v8373_v45 = vadd.f32 %v4056_v47, %v3958_v26  ;;  %657 = vst [vmem:[#allocation2 + $0x1b8] sm:$0xff] %v625_v30   ;;  %v4180_v12 = vmul.f32 %v5682_v5, %v8341_v23  ;;  %v4181_v9 = vmul.f32 %v5683_v20, %v8341_v23  ;;  %v699_v20 = vld [vmem:[#allocation2 + $0x184] sm:$0x8] }
 0x171   : > { %10162 = vst [vmem:[#allocation35_spill] sm:$0xff] %v8364_v56  ;;  %v8375_v59 = vld [vmem:[#allocation2 + $0xf8] sm:$0xff]   ;;  %v4188_v8 = vmul.f32 %v8364_v56, %v8341_v23  ;;  %v4189_v53 = vmul.f32 %v8366_v41, %v8341_v23  ;;  %v4091_v1 = vadd.f32 %v4059_v38, %v3961_v42  ;;  %v4092_v57 = vadd.f32 %v4060_v11, %v3962_v2  ;;  %v1082_v23 = vld [vmem:[#allocation2 + $0x1a8] sm:$0x1] }
 0x172   : > { %10163 = vst [vmem:[#allocation57_spill] sm:$0xff] %v8366_v41  ;;  %v9930_v13 = vunpack.c.l.bf16 %v8375_v59  ;;  %v9929_v7 = vunpack.c.h.bf16 %v8375_v59  ;;  %v4212_v15 = vadd.f32 %v4180_v12, %v4083_v24  ;;  %v4213_v16 = vadd.f32 %v4181_v9, %v4084_v51  ;;  %v702_v51 = vld [vmem:[#allocation2 + $0x19c] sm:$0x8] }
 0x173   : > { %10164 = vst [vmem:[#allocation58_spill] sm:$0xff] %v8371_v63  ;;  %v4310_v60 = vmul.f32 %v5746_v35, %v8343_v10  ;;  %v4311_v61 = vmul.f32 %v5747_v55, %v8343_v10  ;;  %v4220_v4 = vadd.f32 %v4188_v8, %v4091_v1  ;;  %v4221_v31 = vadd.f32 %v4189_v53, %v4092_v57  ;;  %v6221_v35 = vld [vmem:[#allocation2 + $0x1a0] sm:$0xff]   ;;  %v10169_v57 = vld [vmem:[#allocation20_spill] sm:$0xff] }
 0x174   : > { %10165 = vst [vmem:[#allocation59_spill] sm:$0xff] %v8373_v45  ;;  %v4318_v26 = vmul.f32 %v9930_v13, %v8343_v10  ;;  %v4319_v5 = vmul.f32 %v9929_v7, %v8343_v10  ;;  %v4440_v47 = vmul.f32 %v8364_v56, %v8345_v14  ;;  %v4441_v34 = vmul.f32 %v8366_v41, %v8345_v14 }
 0x175   : > { %10166 = vst [vmem:[#allocation60_spill] sm:$0xff] %v8375_v59  ;;  %v4342_v28 = vadd.f32 %v4310_v60, %v4212_v15  ;;  %v4343_v19 = vadd.f32 %v4311_v61, %v4213_v16  ;;  %v8407_v30 = vunpack.c.h.bf16 %v8329_v25  ;;  %v747_v42 = vunpack.c.l.bf16 %v699_v20 }
 0x176   : > { %v6356_v49 = vld [vmem:[#allocation2 + $0x128] sm:$0xff]   ;;  %659 = vst [vmem:[#allocation2 + $0x1d0] sm:$0xff] %v627_v21   ;;  %v4350_v55 = vadd.f32 %v4318_v26, %v4220_v4  ;;  %v4351_v33 = vadd.f32 %v4319_v5, %v4221_v31  ;;  %v8409_v9 = vunpack.c.l.bf16 %v6221_v35  ;;  %v750_v8 = vunpack.c.l.bf16 %v702_v51 }
 0x177   : > { %v8394_v54 = vunpack.c.l.bf16 %v6356_v49  ;;  %v8396_v24 = vunpack.c.h.bf16 %v6356_v49  ;;  %v4472_v2 = vadd.f32 %v4440_v47, %v4342_v28  ;;  %v4473_v12 = vadd.f32 %v4441_v34, %v4343_v19  ;;  %v8436_v19 = vld [vmem:[%s9870_s2] ss:$0 sm:$0xff] }
 0x178   : > { %v8411_v1 = vunpack.c.h.bf16 %v6221_v35  ;;  %v790_v49 = vmul.f32 %v10169_v57, %v741_v36  ;;  %v791_v16 = vmul.f32 %v8307_v17, %v10169_v57  ;;  %v792_v25 = vmul.f32 %v8337_v18, %v10169_v57 }
 0x179   : > { %10167 = vst [vmem:[#allocation61_spill] sm:$0xff] %v8394_v54  ;;  %v4448_v38 = vmul.f32 %v8394_v54, %v8345_v14  ;;  %v4449_v11 = vmul.f32 %v8396_v24, %v8345_v14  ;;  %v5987_v15 = vpack.c.bf16 %v4473_v12, %v4472_v2  ;;  %v793_v60 = vmul.f32 %v10169_v57, %v744_v29  ;;  %v1081_v54 = vld [vmem:[#allocation2 + $0x190] sm:$0x1] }
 0x17a   : > { %10168 = vst [vmem:[#allocation62_spill] sm:$0xff] %v8396_v24  ;;  %v794_v4 = vmul.f32 %v8347_v43, %v10169_v57  ;;  %v795_v31 = vmul.f32 %v8351_v50, %v10169_v57  ;;  %v796_v26 = vmul.f32 %v10169_v57, %v747_v42  ;;  %v797_v36 = vmul.f32 %v8354_v44, %v10169_v57 }
 0x17b   : > { %v4480_v53 = vadd.f32 %v4448_v38, %v4350_v55  ;;  %v4481_v21 = vadd.f32 %v4449_v11, %v4351_v33  ;;  %6368 = vst [vmem:[#allocation2 + $0x68] sm:$0xff] %v5987_v15   ;;  %v798_v5 = vmul.f32 %v8407_v30, %v10169_v57  ;;  %v799_v20 = vmul.f32 %v10169_v57, %v750_v8 }
 0x17c   : > { %v800_v29 = vmul.f32 %v8409_v9, %v10169_v57  ;;  %v801_v28 = vmul.f32 %v8411_v1, %v10169_v57  ;;  %v841_v51 = vadd.f32 %v8436_v19, %v790_v49  ;;  %v842_v35 = vadd.f32 %v8436_v19, %v791_v16 }
 0x17d   : > { %v6007_v61 = vpack.c.bf16 %v4481_v21, %v4480_v53  ;;  %v843_v55 = vadd.f32 %v8436_v19, %v792_v25  ;;  %v844_v33 = vadd.f32 %v8436_v19, %v793_v60  ;;  %v845_v47 = vadd.f32 %v8436_v19, %v794_v4  ;;  %v10170_v53 = vld [vmem:[#allocation23_spill] sm:$0xff] }
 0x17e   : > { %v846_v34 = vadd.f32 %v8436_v19, %v795_v31  ;;  %v847_v38 = vadd.f32 %v8436_v19, %v796_v26  ;;  %v848_v11 = vadd.f32 %v8436_v19, %v797_v36  ;;  %v849_v42 = vadd.f32 %v8436_v19, %v798_v5 }
 0x17f   : > { %6372 = vst [vmem:[#allocation2 + $0xc8] sm:$0xff] %v6007_v61   ;;  %v850_v2 = vadd.f32 %v8436_v19, %v799_v20  ;;  %v851_v12 = vadd.f32 %v8436_v19, %v800_v29  ;;  %v852_v8 = vadd.f32 %v8436_v19, %v801_v28  ;;  %v880_v21 = vmul.f32 %v8307_v17, %v10170_v53 }
 0x180   : > { %v881_v49 = vmul.f32 %v8337_v18, %v10170_v53  ;;  %v882_v15 = vmul.f32 %v8347_v43, %v10170_v53  ;;  %v883_v16 = vmul.f32 %v8351_v50, %v10170_v53  ;;  %v884_v25 = vmul.f32 %v8354_v44, %v10170_v53 }
 0x181   : > { %v885_v60 = vmul.f32 %v8407_v30, %v10170_v53  ;;  %v886_v61 = vmul.f32 %v8409_v9, %v10170_v53  ;;  %v887_v4 = vmul.f32 %v8411_v1, %v10170_v53  ;;  %v955_v31 = vrot.slane %v880_v21, 1 }
 0x182   : > { %v956_v26 = vrot.slane %v881_v49, 1  ;;  %v958_v36 = vrot.slane %v882_v15, 1  ;;  %v5311_v5 = vld [vmem:[#allocation2 + $0x68] sm:$0xff]  ;;  %v959_v20 = vrot.slane %v883_v16, 1  ;;  %v961_v29 = vrot.slane %v884_v25, 1 }
 0x183   : > { %v962_v28 = vrot.slane %v885_v60, 1  ;;  %v964_v7 = vrot.slane %v886_v61, 1  ;;  %v965_v63 = vrot.slane %v887_v4, 1  ;;  %v1051_v52 = vadd.f32 %v955_v31, %v841_v51  ;;  %4772 = vmatmul.bf16.vlgmr.msra.gmra.mxu0 %v5311_v5  ;;  %v1079_v49 = vld [vmem:[#allocation2 + $0x160] sm:$0x1] }
 0x184   : > { %v957_v45 = vsel %vm924_vm0, %v955_v31, %v956_v26  ;;  %v1053_v14 = vadd.f32 %v956_v26, %v843_v55  ;;  %v960_v10 = vsel %vm924_vm0, %v958_v36, %v959_v20  ;;  %v1054_v21 = vadd.f32 %v958_v36, %v844_v33  ;;  %v1080_v15 = vld [vmem:[#allocation2 + $0x178] sm:$0x1] }
 0x185   : > { %v963_v46 = vsel %vm924_vm0, %v961_v29, %v962_v28  ;;  %v1052_v24 = vadd.f32 %v957_v45, %v842_v35  ;;  %v966_v16 = vsel %vm924_vm0, %v964_v7, %v965_v63  ;;  %v1055_v25 = vadd.f32 %v960_v10, %v845_v47  ;;  %v10171_v35 = vld [vmem:[#allocation29_spill] sm:$0xff] }
 0x186   : > { %v5315_v13 = vld [vmem:[#allocation2 + $0xc8] sm:$0xff]  ;;  %v1056_v60 = vadd.f32 %v959_v20, %v846_v34  ;;  %v1057_v61 = vadd.f32 %v961_v29, %v847_v38  ;;  %v1058_v4 = vadd.f32 %v963_v46, %v848_v11  ;;  %v1059_v51 = vadd.f32 %v962_v28, %v849_v42 }
 0x187   : > { %4792 = vmatmul.bf16.vlgmr.msra.gmra.mxu1 %v5315_v13  ;;  %v1060_v55 = vadd.f32 %v964_v7, %v850_v2  ;;  %v1061_v31 = vadd.f32 %v966_v16, %v851_v12  ;;  %v1062_v26 = vadd.f32 %v965_v63, %v852_v8  ;;  %v1095_v5 = vunpack.c.l.bf16 %v1079_v49 }
 0x188   : > { %v1096_v59 = vunpack.c.l.bf16 %v1080_v15  ;;  %v1097_v37 = vunpack.c.l.bf16 %v1081_v54  ;;  %v1098_v45 = vunpack.c.l.bf16 %v1082_v23  ;;  %v1132_v33 = vmul.f32 %v8307_v17, %v10171_v35 }
 0x189   : > { %v1133_v13 = vmul.f32 %v8337_v18, %v10171_v35  ;;  %v1135_v10 = vmul.f32 %v8347_v43, %v10171_v35  ;;  %v1134_v47 = vmul.f32 %v10171_v35, %v1095_v5  ;;  %v1136_v46 = vmul.f32 %v8351_v50, %v10171_v35 }
 0x18a   : > { %v1137_v63 = vmul.f32 %v10171_v35, %v1096_v59  ;;  %v1138_v7 = vmul.f32 %v8354_v44, %v10171_v35  ;;  %v1139_v23 = vmul.f32 %v8407_v30, %v10171_v35  ;;  %v1140_v17 = vmul.f32 %v10171_v35, %v1097_v37 }
 0x18b   : > { %v1141_v18 = vmul.f32 %v8409_v9, %v10171_v35  ;;  %v1142_v43 = vmul.f32 %v8411_v1, %v10171_v35  ;;  %v1143_v54 = vmul.f32 %v10171_v35, %v1098_v45  ;;  %v1249_v34 = vrot.slane %v1132_v33, 2 }
 0x18c   : > { %v1250_v50 = vrot.slane %v1133_v13, 2  ;;  %v1252_v38 = vrot.slane %v1134_v47, 2  ;;  %v1254_v59 = vrot.slane %v1135_v10, 2  ;;  %v1255_v11 = vrot.slane %v1136_v46, 2 }
 0x18d   : > { %v1257_v42 = vrot.slane %v1137_v63, 2  ;;  %v1259_v44 = vrot.slane %v1138_v7, 2  ;;  %v1260_v37 = vrot.slane %v1139_v23, 2  ;;  %v1262_v12 = vrot.slane %v1140_v17, 2 }
 0x18e   : > { %v1251_v2 = vsel %vm1198_vm1, %v1249_v34, %v1250_v50  ;;  %v1253_v30 = vsel %vm1198_vm1, %v1250_v50, %v1252_v38  ;;  %v1256_v9 = vsel %vm1198_vm1, %v1254_v59, %v1255_v11  ;;  %v1264_v1 = vrot.slane %v1141_v18, 2 }
 0x18f   : > { %v1258_v8 = vsel %vm1198_vm1, %v1255_v11, %v1257_v42  ;;  %v1265_v36 = vrot.slane %v1142_v43, 2  ;;  %v1261_v20 = vsel %vm1198_vm1, %v1259_v44, %v1260_v37  ;;  %v1263_v29 = vsel %vm1198_vm1, %v1260_v37, %v1262_v12 }
 0x190   : > { %v1267_v28 = vrot.slane %v1143_v54, 2  ;;  %v1357_v49 = vadd.f32 %v1249_v34, %v1051_v52  ;;  %v1358_v16 = vadd.f32 %v1251_v2, %v1052_v24  ;;  %v1359_v5 = vadd.f32 %v1253_v30, %v1053_v14 }
 0x191   : > { %v1266_v15 = vsel %vm1198_vm1, %v1264_v1, %v1265_v36  ;;  %v1360_v45 = vadd.f32 %v1254_v59, %v1054_v21  ;;  %v1361_v13 = vadd.f32 %v1256_v9, %v1055_v25  ;;  %v1362_v10 = vadd.f32 %v1258_v8, %v1056_v60 }
 0x192   : > { %v1268_v33 = vsel %vm1198_vm1, %v1265_v36, %v1267_v28  ;;  %v1363_v47 = vadd.f32 %v1259_v44, %v1057_v61  ;;  %v1364_v46 = vadd.f32 %v1261_v20, %v1058_v4  ;;  %v1365_v63 = vadd.f32 %v1263_v29, %v1059_v51 }
 0x193   : > { %v1366_v7 = vadd.f32 %v1264_v1, %v1060_v55  ;;  %v1367_v23 = vadd.f32 %v1266_v15, %v1061_v31  ;;  %v1368_v17 = vadd.f32 %v1268_v33, %v1062_v26  ;;  %v1405_v18 = vpack.c.bf16 %v1357_v49, %v1357_v49 }
 0x194   : > { %v1406_v43 = vpack.c.bf16 %v1358_v16, %v1358_v16  ;;  %v1407_v50 = vpack.c.bf16 %v1359_v5, %v1359_v5  ;;  %v1408_v54 = vpack.c.bf16 %v1360_v45, %v1360_v45  ;;  %v1409_v52 = vpack.c.bf16 %v1361_v13, %v1361_v13 }
 0x195   : > { %v1410_v34 = vpack.c.bf16 %v1362_v10, %v1362_v10  ;;  %v1411_v38 = vpack.c.bf16 %v1363_v47, %v1363_v47  ;;  %v1412_v24 = vpack.c.bf16 %v1364_v46, %v1364_v46  ;;  %v1413_v14 = vpack.c.bf16 %v1365_v63, %v1365_v63  ;;  %v2332_v63 = vld [vmem:[#allocation2 + $0x154] sm:$0xc] }
 0x196   : > { %v1414_v21 = vpack.c.bf16 %v1366_v7, %v1366_v7  ;;  %v1415_v59 = vpack.c.bf16 %v1367_v23, %v1367_v23  ;;  %v8498_v11 = vpack.c.bf16 %v1368_v17, %v1368_v17  ;;  %v1647_v25 = vshrl.u32 %v1405_v18, 16 }
 0x197   : > { %v1652_v60 = vshrl.u32 %v1406_v43, 16  ;;  %v1655_v61 = vshll.u32 %v1406_v43, 16  ;;  %v1661_v4 = vshrl.u32 %v1407_v50, 16  ;;  %v1664_v51 = vshll.u32 %v1407_v50, 16  ;;  %v6234_v43 = vld [vmem:[#allocation2 + $0x140] sm:$0xff]  }
 0x198   : > { %v1669_v55 = vshrl.u32 %v1408_v54, 16  ;;  %v1674_v31 = vshrl.u32 %v1409_v52, 16  ;;  %v5179_v26 = vrot.slane %v1647_v25, 11  ;;  %v1677_v44 = vshll.u32 %v1409_v52, 16 }
 0x199   : > { %v1654_v42 = vrot.slane %v1652_v60, 7  ;;  %v1683_v2 = vshrl.u32 %v1410_v34, 16  ;;  %v1663_v30 = vrot.slane %v1661_v4, 7  ;;  %v1686_v9 = vshll.u32 %v1410_v34, 16 }
 0x19a   : > { %v5180_v37 = vrot.slane %v1669_v55, 11  ;;  %v1676_v12 = vrot.slane %v1674_v31, 7  ;;  %v1691_v20 = vshrl.u32 %v1411_v38, 16  ;;  %v1696_v15 = vshrl.u32 %v1412_v24, 16 }
 0x19b   : > { %v1657_v8 = vor.u32 %v1655_v61, %v1654_v42  ;;  %v1659_v1 = vrot.slane %v1654_v42, 4  ;;  %v1685_v36 = vrot.slane %v1683_v2, 7  ;;  %v1666_v29 = vor.u32 %v1664_v51, %v1663_v30  ;;  %v2338_v51 = vld [vmem:[#allocation2 + $0x184] sm:$0xc]  ;;  %v2518_v42 = vld [vmem:[#allocation2 + $0x154] sm:$0x8] }
 0x19c   : > { %v1679_v28 = vor.u32 %v1677_v44, %v1676_v12  ;;  %v1681_v49 = vrot.slane %v1676_v12, 4  ;;  %v5181_v45 = vrot.slane %v1691_v20, 11  ;;  %v1699_v33 = vshll.u32 %v1412_v24, 16 }
 0x19d   : > { %v1658_v16 = vsel %vm7675_vm4, %v5179_v26, %v1657_v8  ;;  %v1688_v5 = vor.u32 %v1686_v9, %v1685_v36  ;;  %v1667_v13 = vsel %vm7675_vm4, %v1659_v1, %v1666_v29  ;;  %v1698_v47 = vrot.slane %v1696_v15, 7  ;;  %v10174_v29 = vld [vmem:[#allocation44_spill] sm:$0xff] }
 0x19e   : > { %v1680_v10 = vsel %vm7675_vm4, %v5180_v37, %v1679_v28  ;;  %v1705_v46 = vshrl.u32 %v1413_v14, 16  ;;  %1830 = vst [vmem:[#allocation2 + $0x158] sm:$0xf] %v1658_v16  ;;  %v1708_v23 = vshll.u32 %v1413_v14, 16  ;;  %v1713_v17 = vshrl.u32 %v1414_v21, 16 }
 0x19f   : > { %v1689_v7 = vsel %vm7675_vm4, %v1681_v49, %v1688_v5  ;;  %v1718_v18 = vshrl.u32 %v1415_v59, 16  ;;  %1831 = vst [vmem:[#allocation2 + $0x15c] sm:$0xf] %v1667_v13  ;;  %v1701_v50 = vor.u32 %v1699_v33, %v1698_v47  ;;  %v1703_v54 = vrot.slane %v1698_v47, 4  ;;  %v2522_v37 = vld [vmem:[#allocation2 + $0x184] sm:$0x8] }
 0x1a0   : > { %v1707_v52 = vrot.slane %v1705_v46, 7  ;;  %v1721_v34 = vshll.u32 %v1415_v59, 16  ;;  %1832 = vst [vmem:[#allocation2 + $0x170] sm:$0xf] %v1680_v10  ;;  %v5182_v38 = vrot.slane %v1713_v17, 11  ;;  %v1727_v25 = vshrl.u32 %v8498_v11, 16 }
 0x1a1   : > { %v1720_v24 = vrot.slane %v1718_v18, 7  ;;  %v1730_v60 = vshll.u32 %v8498_v11, 16  ;;  %1833 = vst [vmem:[#allocation2 + $0x174] sm:$0xf] %v1689_v7  ;;  %v1702_v61 = vsel %vm7675_vm4, %v5181_v45, %v1701_v50  ;;  %v5434_v21 = vunpack.c.l.bf16 %v6234_v43  ;;  %v10177_v33 = vld [vmem:[#allocation38_spill] sm:$0xff]  ;;  %v10182_v50 = vld [vmem:[#allocation37_spill] sm:$0xff] }
 0x1a2   : > { %v1710_v14 = vor.u32 %v1708_v23, %v1707_v52  ;;  %v5435_v4 = vunpack.c.h.bf16 %v6234_v43  ;;  %v1729_v26 = vrot.slane %v1727_v25, 7  ;;  %1834 = vst [vmem:[#allocation2 + $0x188] sm:$0xf] %v1702_v61  ;;  %v2380_v59 = vunpack.c.l.bf16 %v2332_v63  ;;  %v8548_v46 = vld [vmem:[%s9872_s4] ss:$0 sm:$0xff] }
 0x1a3   : > { %v1723_v55 = vor.u32 %v1721_v34, %v1720_v24  ;;  %v1725_v31 = vrot.slane %v1720_v24, 4  ;;  %v8514_v44 = vmul.f32 %v7795_v39, %v7802_v32  ;;  %v1930_v2 = vmul.f32 %v5434_v21, %v7783_v40  ;;  %10181 = vst [vmem:[#allocation29_spill] sm:$0xff] %v8548_v46  ;;  %v3102_v21 = vld [vmem:[#allocation2 + $0x190] sm:$0x1] }
 0x1a4   : > { %v1711_v11 = vsel %vm7675_vm4, %v1703_v54, %v1710_v14  ;;  %v1931_v30 = vmul.f32 %v5435_v4, %v7783_v40  ;;  %v3934_v12 = vmul.f32 %v8364_v56, %v8297_v6  ;;  %v3935_v9 = vmul.f32 %v8366_v41, %v8297_v6  ;;  %v3098_v14 = vld [vmem:[#allocation2 + $0x160] sm:$0x1] }
 0x1a5   : > { %10172 = vst [vmem:[#allocation54_spill] sm:$0xff] %v8514_v44  ;;  %v1724_v8 = vsel %vm7675_vm4, %v5182_v38, %v1723_v55  ;;  %v1732_v1 = vor.u32 %v1730_v60, %v1729_v26  ;;  %v8528_v39 = vmul.f32 %v7797_v22, %v7802_v32  ;;  %v2386_v20 = vunpack.c.l.bf16 %v2338_v51  ;;  %v10179_v22 = vld [vmem:[#allocation39_spill] sm:$0xff]  ;;  %v8566_v38 = vld [vmem:[%s9874_s6] ss:$0 sm:$0xff] }
 0x1a6   : > { %1835 = vst [vmem:[#allocation2 + $0x18c] sm:$0xf] %v1711_v11  ;;  %v6235_v36 = vld [vmem:[#allocation2 + $0x158] sm:$0xff]   ;;  %v2429_v28 = vmul.f32 %v10174_v29, %v2380_v59  ;;  %v2550_v49 = vunpack.c.l.bf16 %v2518_v42  ;;  %v2554_v45 = vunpack.c.l.bf16 %v2522_v37  ;;  %v8539_v13 = vmul.f32 %v10177_v33, %v7802_v32 }
 0x1a7   : > { %10173 = vst [vmem:[#allocation26_spill] sm:$0xff] %v8528_v39  ;;  %v1733_v15 = vsel %vm7675_vm4, %v1725_v31, %v1732_v1  ;;  %v8533_v16 = vunpack.c.l.bf16 %v6235_v36  ;;  %v8535_v5 = vunpack.c.h.bf16 %v6235_v36  ;;  %v8543_v10 = vmul.f32 %v10179_v22, %v7802_v32  ;;  %v3436_v22 = vld [vmem:[#allocation2 + $0x160] sm:$0x3] }
 0x1a8   : > { %1836 = vst [vmem:[#allocation2 + $0x1a0] sm:$0xf] %v1724_v8  ;;  %v6236_v47 = vld [vmem:[#allocation2 + $0x170] sm:$0xff]   ;;  %v1965_v63 = vadd.f32 %v8548_v46, %v1930_v2  ;;  %v1966_v7 = vadd.f32 %v8548_v46, %v1931_v30  ;;  %v8553_v23 = vadd.f32 %v8293_v3, %v3934_v12  ;;  %v8556_v17 = vadd.f32 %v8293_v3, %v3935_v9 }
 0x1a9   : > { %10175 = vst [vmem:[#allocation55_spill] sm:$0xff] %v8533_v16  ;;  %v5442_v18 = vunpack.c.l.bf16 %v6236_v47  ;;  %v5443_v43 = vunpack.c.h.bf16 %v6236_v47  ;;  %v2062_v54 = vmul.f32 %v8533_v16, %v10182_v50  ;;  %v2063_v52 = vmul.f32 %v8535_v5, %v10182_v50  ;;  %v6222_v47 = vld [vmem:[#allocation2 + $0x1b8] sm:$0xff]  }
 0x1aa   : > { %10176 = vst [vmem:[#allocation56_spill] sm:$0xff] %v8535_v5  ;;  %v2435_v34 = vmul.f32 %v10174_v29, %v2386_v20  ;;  %v8569_v24 = vadd.f32 %v8566_v38, %v2429_v28  ;;  %v8574_v60 = vmul.f32 %v7961_v62, %v2550_v49  ;;  %v8577_v61 = vmul.f32 %v7961_v62, %v2554_v45 }
 0x1ab   : > { %10178 = vst [vmem:[#allocation20_spill] sm:$0xff] %v8539_v13  ;;  %v1934_v3 = vmul.f32 %v5442_v18, %v7783_v40  ;;  %v1935_v25 = vmul.f32 %v5443_v43, %v7783_v40  ;;  %v2094_v51 = vadd.f32 %v2062_v54, %v1965_v63  ;;  %v2095_v55 = vadd.f32 %v2063_v52, %v1966_v7  ;;  %v6223_v63 = vld [vmem:[#allocation2 + $0x1d0] sm:$0xff]  }
 0x1ac   : > { %10180 = vst [vmem:[#allocation23_spill] sm:$0xff] %v8543_v10  ;;  %v2192_v31 = vmul.f32 %v5442_v18, %v7802_v32  ;;  %v2193_v26 = vmul.f32 %v5443_v43, %v7802_v32  ;;  %v3130_v12 = vunpack.c.l.bf16 %v3098_v14  ;;  %v3134_v9 = vunpack.c.l.bf16 %v3102_v21  ;;  %v3440_v52 = vld [vmem:[#allocation2 + $0x190] sm:$0x3]  ;;  %v705_v21 = vld [vmem:[#allocation2 + $0x1b4] sm:$0x8] }
 0x1ad   : > { %1837 = vst [vmem:[#allocation2 + $0x1a4] sm:$0xf] %v1733_v15  ;;  %v6237_v4 = vld [vmem:[#allocation2 + $0x188] sm:$0xff]   ;;  %v1969_v11 = vadd.f32 %v8548_v46, %v1934_v3  ;;  %v1970_v2 = vadd.f32 %v8548_v46, %v1935_v25  ;;  %v1932_v8 = vmul.f32 %v8533_v16, %v7783_v40  ;;  %v8594_v28 = vadd.f32 %v8566_v38, %v2435_v34 }
 0x1ae   : > { %10183 = vst [vmem:[#allocation38_spill] sm:$0xff] %v8566_v38  ;;  %v8581_v59 = vunpack.c.l.bf16 %v6237_v4  ;;  %v8583_v42 = vunpack.c.h.bf16 %v6237_v4  ;;  %v2224_v30 = vadd.f32 %v2192_v31, %v2094_v51  ;;  %v2225_v37 = vadd.f32 %v2193_v26, %v2095_v55  ;;  %v708_v4 = vld [vmem:[#allocation2 + $0x1cc] sm:$0x8] }
 0x1af   : > { %v1933_v49 = vmul.f32 %v8535_v5, %v7783_v40  ;;  %v8609_v25 = vmul.f32 %v8185_v27, %v3130_v12  ;;  %v8612_v14 = vmul.f32 %v8185_v27, %v3134_v9  ;;  %v3468_v51 = vunpack.c.l.bf16 %v3436_v22 }
 0x1b0   : > { %10184 = vst [vmem:[#allocation39_spill] sm:$0xff] %v8581_v59  ;;  %v2066_v1 = vmul.f32 %v8581_v59, %v10182_v50  ;;  %v2067_v36 = vmul.f32 %v8583_v42, %v10182_v50  ;;  %v5637_v33 = vpack.c.bf16 %v2225_v37, %v2224_v30  ;;  %v8614_v55 = vunpack.c.l.bf16 %v6222_v47 }
 0x1b1   : > { %10185 = vst [vmem:[#allocation63_spill] sm:$0xff] %v8583_v42  ;;  %v8616_v31 = vunpack.c.h.bf16 %v6222_v47  ;;  %v8618_v26 = vunpack.c.l.bf16 %v6223_v63  ;;  %v3472_v30 = vunpack.c.l.bf16 %v3440_v52  ;;  %v8620_v37 = vunpack.c.h.bf16 %v6223_v63 }
 0x1b2   : > { %v2098_v7 = vadd.f32 %v2066_v1, %v1969_v11  ;;  %v2099_v18 = vadd.f32 %v2067_v36, %v1970_v2  ;;  %6282 = vst [vmem:[#allocation2 + $0x158] sm:$0xff] %v5637_v33   ;;  %v753_v1 = vunpack.c.l.bf16 %v705_v21  ;;  %v756_v12 = vunpack.c.l.bf16 %v708_v4 }
 0x1b3   : > { %v803_v9 = vmul.f32 %v8614_v55, %v10169_v57  ;;  %v804_v36 = vmul.f32 %v8616_v31, %v10169_v57  ;;  %v806_v22 = vmul.f32 %v8618_v26, %v10169_v57  ;;  %v807_v47 = vmul.f32 %v8620_v37, %v10169_v57 }
 0x1b4   : > { %v6268_v20 = vld [vmem:[#allocation2 + $0x1a0] sm:$0xff]   ;;  %v8634_v63 = vadd.f32 %v8548_v46, %v1933_v49  ;;  %v8639_v52 = vmul.f32 %v8242_v48, %v3468_v51  ;;  %v8650_v49 = vmul.f32 %v8614_v55, %v10170_v53  ;;  %v10191_v50 = vrot.slane %v8574_v60, 2 }
 0x1b5   : > { %v8598_v15 = vunpack.c.l.bf16 %v6268_v20  ;;  %v8600_v45 = vunpack.c.h.bf16 %v6268_v20  ;;  %v8627_v20 = vadd.f32 %v8548_v46, %v1932_v8  ;;  %v8642_v8 = vmul.f32 %v8242_v48, %v3472_v30  ;;  %v10192_v46 = vld [vmem:[#allocation51_spill] sm:$0xff] }
 0x1b6   : > { %10189 = vst [vmem:[#allocation67_spill] sm:$0xff] %v8634_v63  ;;  %v8656_v51 = vadd.f32 %v8436_v19, %v804_v36  ;;  %v8659_v30 = vadd.f32 %v8436_v19, %v806_v22  ;;  %v8670_v36 = vmul.f32 %v8618_v26, %v10170_v53 }
 0x1b7   : > { %10186 = vst [vmem:[#allocation64_spill] sm:$0xff] %v8598_v15  ;;  %v2196_v34 = vmul.f32 %v8598_v15, %v7802_v32  ;;  %v2197_v3 = vmul.f32 %v8600_v45, %v7802_v32  ;;  %v10193_v15 = vld [vmem:[#allocation60_spill] sm:$0xff] }
 0x1b8   : > { %10187 = vst [vmem:[#allocation65_spill] sm:$0xff] %v8600_v45 }
 0x1b9   : > { %v2228_v11 = vadd.f32 %v2196_v34, %v2098_v7  ;;  %v2229_v2 = vadd.f32 %v2197_v3, %v2099_v18  ;;  %10188 = vst [vmem:[#allocation66_spill] sm:$0xff] %v8627_v20  ;;  %v802_v34 = vmul.f32 %v10169_v57, %v753_v1  ;;  %v8646_v3 = vmul.f32 %v10169_v57, %v756_v12  ;;  %v2333_v21 = vld [vmem:[#allocation2 + $0x158] sm:$0xff]  }
 0x1ba   : > { %v2334_v4 = vld [vmem:[#allocation2 + $0x15c] sm:$0x3]  ;;  %10190 = vst [vmem:[#allocation68_spill] sm:$0xff] %v8659_v30  ;;  %v8662_v1 = vadd.f32 %v8436_v19, %v807_v47  ;;  %v2381_v57 = vunpack.c.l.bf16 %v2333_v21  ;;  %v2861_v18 = vunpack.c.h.bf16 %v2333_v21  ;;  %v3097_v7 = vld [vmem:[#allocation2 + $0x158] sm:$0xe] }
 0x1bb   : > { %v5647_v33 = vpack.c.bf16 %v2229_v2, %v2228_v11  ;;  %v2519_v11 = vld [vmem:[#allocation2 + $0x15c] sm:$0x7]  ;;  %v8653_v2 = vadd.f32 %v8436_v19, %v803_v9  ;;  %v2382_v12 = vunpack.c.l.bf16 %v2334_v4  ;;  %v3435_v54 = vld [vmem:[#allocation2 + $0x158] sm:$0xc]  ;;  %v3129_v43 = vunpack.c.l.bf16 %v3097_v7 }
 0x1bc   : > { %v3467_v41 = vunpack.c.l.bf16 %v3435_v54  ;;  %v8666_v9 = vmul.f32 %v8616_v31, %v10170_v53  ;;  %v2430_v22 = vmul.f32 %v10174_v29, %v2381_v57  ;;  %v2594_v4 = vmul.f32 %v7961_v62, %v2381_v57 }
 0x1bd   : > { %6284 = vst [vmem:[#allocation2 + $0x188] sm:$0xff] %v5647_v33   ;;  %v2551_v33 = vunpack.c.l.bf16 %v2519_v11  ;;  %v2431_v47 = vmul.f32 %v10174_v29, %v2382_v12  ;;  %v2888_v11 = vmul.f32 %v7995_v0, %v2381_v57  ;;  %v2889_v54 = vmul.f32 %v7995_v0, %v2861_v18 }
 0x1be   : > { %v3172_v7 = vmul.f32 %v8185_v27, %v3129_v43  ;;  %v8680_v56 = vadd.f32 %v8436_v19, %v802_v34  ;;  %v2710_v20 = vrot.slane %v2594_v4, 2  ;;  %v3173_v13 = vmul.f32 %v8185_v27, %v2861_v18 }
 0x1bf   : > { %v2595_v21 = vmul.f32 %v7961_v62, %v2551_v33  ;;  %v2482_v63 = vadd.f32 %v8566_v38, %v2431_v47  ;;  %v2481_v44 = vadd.f32 %v8566_v38, %v2430_v22  ;;  %v2963_v5 = vrot.slane %v2888_v11, 4 }
 0x1c0   : > { %v3510_v57 = vmul.f32 %v8242_v48, %v3467_v41  ;;  %v3511_v16 = vmul.f32 %v8242_v48, %v2861_v18  ;;  %v2711_v47 = vsel %vm1198_vm1, %v10191_v50, %v2710_v20  ;;  %v2964_v50 = vrot.slane %v2889_v54, 4 }
 0x1c1   : > { %v2712_v10 = vrot.slane %v2595_v21, 2  ;;  %v2817_v21 = vadd.f32 %v2711_v47, %v8569_v24  ;;  %v3290_v40 = vrot.slane %v3173_v13, 6  ;;  %v10198_v13 = vrot.slane %v8612_v14, 6 }
 0x1c3   : > { %v2713_v4 = vsel %vm1198_vm1, %v2710_v20, %v2712_v10  ;;  %v2819_v45 = vadd.f32 %v2712_v10, %v2482_v63 }
 0x1c4   : > { %v2339_v12 = vld [vmem:[#allocation2 + $0x188] sm:$0xff]  }
 0x1c5   : > { %v2340_v39 = vld [vmem:[#allocation2 + $0x18c] sm:$0x3]  ;;  %v2387_v43 = vunpack.c.l.bf16 %v2339_v12  ;;  %v2863_v58 = vunpack.c.h.bf16 %v2339_v12  ;;  %v2965_v12 = vsel %vm2932_vm5, %v2963_v5, %v2964_v50 }
 0x1c6   : > { %v2523_v33 = vld [vmem:[#allocation2 + $0x18c] sm:$0x7]  ;;  %v2388_v32 = vunpack.c.l.bf16 %v2340_v39  ;;  %v2818_v39 = vadd.f32 %v2713_v4, %v2481_v44 }
 0x1c7   : > { %v2555_v34 = vunpack.c.l.bf16 %v2523_v33  ;;  %v2436_v22 = vmul.f32 %v10174_v29, %v2387_v43  ;;  %v2600_v41 = vmul.f32 %v7961_v62, %v2387_v43  ;;  %v2892_v33 = vmul.f32 %v7995_v0, %v2387_v43 }
 0x1c8   : > { %v2437_v11 = vmul.f32 %v10174_v29, %v2388_v32  ;;  %v2893_v60 = vmul.f32 %v7995_v0, %v2863_v58  ;;  %v3101_v29 = vld [vmem:[#allocation2 + $0x188] sm:$0xe]  ;;  %v10195_v43 = vrot.slane %v8577_v61, 2  ;;  %v3059_v0 = vadd.f32 %v2963_v5, %v2817_v21 }
 0x1c9   : > { %v2601_v18 = vmul.f32 %v7961_v62, %v2555_v34  ;;  %v2487_v20 = vadd.f32 %v8566_v38, %v2436_v22  ;;  %v2720_v10 = vrot.slane %v2600_v41, 2  ;;  %v2969_v47 = vrot.slane %v2892_v33, 4 }
 0x1ca   : > { %v2488_v24 = vadd.f32 %v8566_v38, %v2437_v11  ;;  %v2970_v32 = vrot.slane %v2893_v60, 4  ;;  %v10194_v34 = vunpack.c.l.bf16 %v10193_v15  ;;  %v3439_v11 = vld [vmem:[#allocation2 + $0x188] sm:$0xc]  ;;  %v3060_v60 = vadd.f32 %v2965_v12, %v2818_v39 }
 0x1cb   : > { %v2722_v63 = vrot.slane %v2601_v18, 2  ;;  %v2721_v4 = vsel %vm1198_vm1, %v10195_v43, %v2720_v10  ;;  %v3061_v38 = vadd.f32 %v2964_v50, %v2819_v45  ;;  %v3133_v62 = vunpack.c.l.bf16 %v3101_v29 }
 0x1cc   : > { %v4067_v44 = vmul.f32 %v10194_v34, %v10192_v46  ;;  %v2823_v41 = vadd.f32 %v2721_v4, %v8594_v28  ;;  %v2971_v33 = vsel %vm2932_vm5, %v2969_v47, %v2970_v32  ;;  %v3179_v42 = vmul.f32 %v8185_v27, %v2863_v58 }
 0x1cd   : > { %v2723_v54 = vsel %vm1198_vm1, %v2720_v10, %v2722_v63  ;;  %v2825_v22 = vadd.f32 %v2722_v63, %v2488_v24  ;;  %v3289_v34 = vrot.slane %v3172_v7, 6  ;;  %v3471_v43 = vunpack.c.l.bf16 %v3439_v11 }
 0x1ce   : > { %v2824_v18 = vadd.f32 %v2723_v54, %v2487_v20  ;;  %v3065_v59 = vadd.f32 %v2969_v47, %v2823_v41  ;;  %v3178_v24 = vmul.f32 %v8185_v27, %v3133_v62  ;;  %v3300_v5 = vrot.slane %v3179_v42, 6 }
 0x1cf   : > { %v3067_v61 = vadd.f32 %v2970_v32, %v2825_v22  ;;  %v3397_v21 = vadd.f32 %v3289_v34, %v3059_v0  ;;  %v3291_v28 = vsel %vm3238_vm6, %v3289_v34, %v3290_v40  ;;  %v10196_v20 = vrot.slane %v8609_v25, 6 }
 0x1d0   : > { %v3066_v30 = vadd.f32 %v2971_v33, %v2824_v18  ;;  %v3516_v29 = vmul.f32 %v8242_v48, %v3471_v43  ;;  %v10197_v45 = vunpack.c.h.bf16 %v10193_v15  ;;  %v3299_v50 = vrot.slane %v3178_v24, 6  ;;  %v10199_v33 = vld [vmem:[#allocation31_spill] sm:$0xff]  ;;  %v1083_v43 = vld [vmem:[#allocation2 + $0x1c0] sm:$0x1] }
 0x1d1   : > { %v3293_v39 = vsel %vm3238_vm6, %v3290_v40, %v10196_v20  ;;  %v3303_v10 = vsel %vm3238_vm6, %v3300_v5, %v10198_v13  ;;  %v3398_v62 = vadd.f32 %v3291_v28, %v3060_v60  ;;  %v3517_v63 = vmul.f32 %v8242_v48, %v2863_v58  ;;  %v10200_v60 = vld [vmem:[#allocation61_spill] sm:$0xff] }
 0x1d2   : > { %v4068_v7 = vmul.f32 %v10197_v45, %v10192_v46  ;;  %v3399_v42 = vadd.f32 %v3293_v39, %v3061_v38  ;;  %v3405_v0 = vadd.f32 %v3303_v10, %v3067_v61  ;;  %v3558_v12 = vadd.f32 %v3510_v57, %v3397_v21 }
 0x1d3   : > { %v891_v40 = vmul.f32 %v8620_v37, %v10170_v53  ;;  %v3301_v25 = vsel %vm3238_vm6, %v3299_v50, %v3300_v5  ;;  %v3403_v47 = vadd.f32 %v3299_v50, %v3065_v59  ;;  %v3559_v32 = vadd.f32 %v3511_v16, %v3398_v62 }
 0x1d4   : > { %v3560_v15 = vadd.f32 %v8639_v52, %v3399_v42  ;;  %v3404_v4 = vadd.f32 %v3301_v25, %v3066_v30  ;;  %v3566_v14 = vadd.f32 %v8642_v8, %v3405_v0  ;;  %v3606_v54 = vpack.c.bf16 %v3558_v12, %v3558_v12  ;;  %v10201_v30 = vld [vmem:[#allocation62_spill] sm:$0xff] }
 0x1d5   : > { %v4099_v22 = vadd.f32 %v4067_v44, %v8553_v23  ;;  %v3564_v38 = vadd.f32 %v3516_v29, %v3403_v47  ;;  %v3607_v11 = vpack.c.bf16 %v3559_v32, %v3559_v32  ;;  %v4100_v58 = vadd.f32 %v4068_v7, %v8556_v17 }
 0x1d6   : > { %v3608_v41 = vpack.c.bf16 %v3560_v15, %v3560_v15  ;;  %v3565_v57 = vadd.f32 %v3517_v63, %v3404_v4  ;;  %v3614_v18 = vpack.c.bf16 %v3566_v14, %v3566_v14  ;;  %v5195_v53 = vrot.slane %v3606_v54, 10  ;;  %v10203_v4 = vld [vmem:[#allocation68_spill] sm:$0xff] }
 0x1d7   : > { %v4196_v59 = vmul.f32 %v10200_v60, %v10199_v33  ;;  %v3612_v16 = vpack.c.bf16 %v3564_v38, %v3564_v38  ;;  %v3747_v34 = vrot.slane %v3607_v11, 6  ;;  %v4197_v8 = vmul.f32 %v10201_v30, %v10199_v33  ;;  %v10205_v38 = vld [vmem:[#allocation39_spill] sm:$0xff] }
 0x1d8   : > { %v3750_v52 = vrot.slane %v3608_v41, 6  ;;  %v3613_v61 = vpack.c.bf16 %v3565_v57, %v3565_v57  ;;  %v8737_v23 = vmul.f32 %v10200_v60, %v8297_v6  ;;  %v856_v17 = vadd.f32 %v8436_v19, %v8646_v3 }
 0x1d9   : > { %v967_v44 = vrot.slane %v8650_v49, 1  ;;  %v3748_v5 = vsel %vm8274_vm8, %v5195_v53, %v3747_v34  ;;  %v3749_v21 = vrot.slane %v3747_v34, 4  ;;  %v5197_v28 = vrot.slane %v3612_v16, 10  ;;  %v1084_v49 = vld [vmem:[#allocation2 + $0x1d8] sm:$0x1]  ;;  %v10206_v53 = vld [vmem:[#allocation63_spill] sm:$0xff] }
 0x1da   : > { %v3764_v20 = vrot.slane %v3614_v18, 6  ;;  %v3761_v39 = vrot.slane %v3613_v61, 6  ;;  %3839 = vst [vmem:[#allocation2 + $0x158] sm:$0xf] %v3748_v5  ;;  %v4228_v29 = vadd.f32 %v4196_v59, %v4099_v22  ;;  %v968_v45 = vrot.slane %v8666_v9, 1  ;;  %v10204_v22 = vld [vmem:[#allocation21_spill] sm:$0xff] }
 0x1db   : > { %v970_v7 = vrot.slane %v8670_v36, 1  ;;  %v3751_v50 = vsel %vm8274_vm8, %v3749_v21, %v3750_v52  ;;  %v4229_v19 = vadd.f32 %v4197_v8, %v4100_v58  ;;  %v971_v3 = vrot.slane %v891_v40, 1  ;;  %v10207_v59 = vld [vmem:[#allocation64_spill] sm:$0xff] }
 0x1dc   : > { %v1099_v13 = vunpack.c.l.bf16 %v1083_v43  ;;  %v3762_v10 = vsel %vm8274_vm8, %v5197_v28, %v3761_v39  ;;  %v3763_v62 = vrot.slane %v3761_v39, 4  ;;  %3840 = vst [vmem:[#allocation2 + $0x15c] sm:$0xf] %v3751_v50  ;;  %v969_v42 = vsel %vm924_vm0, %v967_v44, %v968_v45  ;;  %v10208_v39 = vld [vmem:[#allocation52_spill] sm:$0xff] }
 0x1dd   : > { %v1063_v0 = vadd.f32 %v967_v44, %v8680_v56  ;;  %3843 = vst [vmem:[#allocation2 + $0x188] sm:$0xf] %v3762_v10  ;;  %v972_v9 = vsel %vm924_vm0, %v970_v7, %v971_v3  ;;  %v1064_v36 = vadd.f32 %v969_v42, %v8653_v2  ;;  %v1065_v63 = vadd.f32 %v968_v45, %v8656_v51 }
 0x1de   : > { %v1066_v12 = vadd.f32 %v970_v7, %v856_v17  ;;  %v3765_v40 = vsel %vm8274_vm8, %v3763_v62, %v3764_v20  ;;  %v1068_v25 = vadd.f32 %v971_v3, %v8662_v1  ;;  %v1100_v47 = vunpack.c.l.bf16 %v1084_v49 }
 0x1df   : > { %v1144_v32 = vmul.f32 %v8614_v55, %v10171_v35  ;;  %3844 = vst [vmem:[#allocation2 + $0x18c] sm:$0xf] %v3765_v40  ;;  %v1145_v56 = vmul.f32 %v8616_v31, %v10171_v35  ;;  %v1146_v15 = vmul.f32 %v10171_v35, %v1099_v13  ;;  %v1147_v2 = vmul.f32 %v8618_v26, %v10171_v35 }
 0x1e0   : > { %v1148_v51 = vmul.f32 %v8620_v37, %v10171_v35  ;;  %v1067_v14 = vadd.f32 %v972_v9, %v10203_v4  ;;  %v1149_v1 = vmul.f32 %v10171_v35, %v1100_v47  ;;  %v1936_v55 = vmul.f32 %v10205_v38, %v10204_v22 }
 0x1e1   : > { %v1269_v54 = vrot.slane %v1144_v32, 2  ;;  %v1270_v11 = vrot.slane %v1145_v56, 2  ;;  %v1272_v41 = vrot.slane %v1146_v15, 2  ;;  %v1274_v58 = vrot.slane %v1147_v2, 2 }
 0x1e2   : > { %v1275_v31 = vrot.slane %v1148_v51, 2  ;;  %v1277_v57 = vrot.slane %v1149_v1, 2  ;;  %v1937_v26 = vmul.f32 %v10206_v53, %v10204_v22  ;;  %v8775_v37 = vmul.f32 %v10207_v59, %v10204_v22 }
 0x1e3   : > { %v1369_v18 = vadd.f32 %v1269_v54, %v1063_v0  ;;  %v6344_v16 = vld [vmem:[#allocation2 + $0x158] sm:$0xff]   ;;  %v1271_v35 = vsel %vm1198_vm1, %v1269_v54, %v1270_v11  ;;  %v1273_v34 = vsel %vm1198_vm1, %v1270_v11, %v1272_v41  ;;  %v1372_v8 = vadd.f32 %v1274_v58, %v1066_v12  ;;  %v10211_v12 = vld [vmem:[#allocation53_spill] sm:$0xff] }
 0x1e4   : > { %v1276_v52 = vsel %vm1198_vm1, %v1274_v58, %v1275_v31  ;;  %v8780_v61 = vunpack.c.l.bf16 %v6344_v16  ;;  %v8782_v17 = vunpack.c.h.bf16 %v6344_v16  ;;  %v1278_v44 = vsel %vm1198_vm1, %v1275_v31, %v1277_v57 }
 0x1e5   : > { %v1370_v43 = vadd.f32 %v1271_v35, %v1064_v36  ;;  %v1371_v5 = vadd.f32 %v1273_v34, %v1065_v63  ;;  %v1373_v21 = vadd.f32 %v1276_v52, %v1067_v14  ;;  %v1374_v28 = vadd.f32 %v1278_v44, %v1068_v25  ;;  %v10212_v52 = vld [vmem:[#allocation29_spill] sm:$0xff] }
 0x1e6   : > { %v1417_v20 = vpack.c.bf16 %v1369_v18, %v1369_v18  ;;  %v4326_v45 = vmul.f32 %v8780_v61, %v10208_v39  ;;  %v4327_v7 = vmul.f32 %v8782_v17, %v10208_v39  ;;  %v6360_v50 = vld [vmem:[#allocation2 + $0x188] sm:$0xff]   ;;  %v1420_v49 = vpack.c.bf16 %v1372_v8, %v1372_v8 }
 0x1e7   : > { %v1418_v3 = vpack.c.bf16 %v1370_v43, %v1370_v43  ;;  %v8789_v13 = vunpack.c.l.bf16 %v6360_v50  ;;  %v8791_v10 = vunpack.c.h.bf16 %v6360_v50  ;;  %v1419_v62 = vpack.c.bf16 %v1371_v5, %v1371_v5 }
 0x1e8   : > { %v1421_v42 = vpack.c.bf16 %v1373_v21, %v1373_v21  ;;  %v4358_v0 = vadd.f32 %v4326_v45, %v4228_v29  ;;  %v4359_v9 = vadd.f32 %v4327_v7, %v4229_v19  ;;  %v1422_v36 = vpack.c.bf16 %v1374_v28, %v1374_v28  ;;  %v2526_v45 = vld [vmem:[#allocation2 + $0x1b4] sm:$0x8] }
 0x1e9   : > { %10209 = vst [vmem:[#allocation60_spill] sm:$0xff] %v8789_v13  ;;  %v1735_v63 = vshrl.u32 %v1417_v20, 16  ;;  %v4456_v40 = vmul.f32 %v8789_v13, %v10211_v12  ;;  %v4457_v25 = vmul.f32 %v8791_v10, %v10211_v12  ;;  %v1740_v47 = vshrl.u32 %v1418_v3, 16  ;;  %v2344_v20 = vld [vmem:[#allocation2 + $0x1b4] sm:$0xc] }
 0x1ea   : > { %10210 = vst [vmem:[#allocation49_spill] sm:$0xff] %v8791_v10  ;;  %v1743_v32 = vshll.u32 %v1418_v3, 16  ;;  %v1749_v15 = vshrl.u32 %v1419_v62, 16  ;;  %v1752_v2 = vshll.u32 %v1419_v62, 16  ;;  %v1757_v51 = vshrl.u32 %v1420_v49, 16 }
 0x1eb   : > { %v5183_v56 = vrot.slane %v1735_v63, 11  ;;  %v4488_v4 = vadd.f32 %v4456_v40, %v4358_v0  ;;  %v4489_v14 = vadd.f32 %v4457_v25, %v4359_v9  ;;  %v1742_v1 = vrot.slane %v1740_v47, 7  ;;  %v3106_v63 = vld [vmem:[#allocation2 + $0x1c0] sm:$0x1] }
 0x1ec   : > { %v1762_v54 = vshrl.u32 %v1421_v42, 16  ;;  %v1751_v29 = vrot.slane %v1749_v15, 7  ;;  %v5184_v19 = vrot.slane %v1757_v51, 11  ;;  %v1765_v11 = vshll.u32 %v1421_v42, 16  ;;  %v10215_v42 = vld [vmem:[#allocation37_spill] sm:$0xff] }
 0x1ed   : > { %v1771_v41 = vshrl.u32 %v1422_v36, 16  ;;  %v6027_v58 = vpack.c.bf16 %v4489_v14, %v4488_v4  ;;  %v1745_v31 = vor.u32 %v1743_v32, %v1742_v1  ;;  %v1747_v57 = vrot.slane %v1742_v1, 4  ;;  %v6243_v4 = vld [vmem:[#allocation2 + $0xb0] sm:$0xff]   ;;  %v6245_v14 = vld [vmem:[#allocation2 + $0xe0] sm:$0xff]  }
 0x1ee   : > { %v1764_v18 = vrot.slane %v1762_v54, 7  ;;  %v1754_v16 = vor.u32 %v1752_v2, %v1751_v29  ;;  %v1774_v34 = vshll.u32 %v1422_v36, 16  ;;  %v1971_v8 = vadd.f32 %v10212_v52, %v1936_v55  ;;  %v10214_v55 = vld [vmem:[#allocation65_spill] sm:$0xff]  ;;  %v8819_v36 = vld [vmem:[#allocation2 + $0x1e8] sm:$0xff]   ;;  %v10217_v29 = vld [vmem:[#allocation44_spill] sm:$0xff] }
 0x1ef   : > { %v1773_v35 = vrot.slane %v1771_v41, 7  ;;  %6376 = vst [vmem:[#allocation2 + $0x128] sm:$0xff] %v6027_v58   ;;  %v1746_v43 = vsel %vm7675_vm4, %v5183_v56, %v1745_v31  ;;  %v1972_v28 = vadd.f32 %v10212_v52, %v1937_v26  ;;  %v8803_v7 = vmul.f32 %v10201_v30, %v8297_v6  ;;  %v6241_v56 = vld [vmem:[#allocation2 + $0x80] sm:$0xff]   ;;  %v6247_v58 = vld [vmem:[#allocation2 + $0x110] sm:$0xff]  }
 0x1f0   : > { %v1767_v5 = vor.u32 %v1765_v11, %v1764_v18  ;;  %v1769_v21 = vrot.slane %v1764_v18, 4  ;;  %v1755_v50 = vsel %vm7675_vm4, %v1747_v57, %v1754_v16  ;;  %1838 = vst [vmem:[#allocation2 + $0x1b8] sm:$0xf] %v1746_v43  ;;  %v1939_v49 = vmul.f32 %v10214_v55, %v10204_v22  ;;  %v10218_v11 = vld [vmem:[#allocation30_spill] sm:$0xff]  ;;  %v6249_v16 = vld [vmem:[#allocation2 + $0x140] sm:$0xff]  }
 0x1f1   : > { %v1776_v3 = vor.u32 %v1774_v34, %v1773_v35  ;;  %v8811_v62 = vmul.f32 %v10200_v60, %v10192_v46  ;;  %1839 = vst [vmem:[#allocation2 + $0x1bc] sm:$0xf] %v1755_v50  ;;  %v2068_v0 = vmul.f32 %v10207_v59, %v10215_v42  ;;  %v2069_v9 = vmul.f32 %v10214_v55, %v10215_v42  ;;  %v10219_v34 = vld [vmem:[#allocation38_spill] sm:$0xff] }
 0x1f2   : > { %v1768_v26 = vsel %vm7675_vm4, %v5184_v19, %v1767_v5  ;;  %10216 = vst [vmem:[#allocation68_spill] sm:$0xff] %v8819_v36  ;;  %v8823_v40 = vmul.f32 %v10201_v30, %v10192_v46  ;;  %v2392_v47 = vunpack.c.l.bf16 %v2344_v20  ;;  %v2558_v32 = vunpack.c.l.bf16 %v2526_v45  ;;  %v10224_v30 = vld [vmem:[#allocation40_spill] sm:$0xff] }
 0x1f3   : > { %v1777_v25 = vsel %vm7675_vm4, %v1769_v21, %v1776_v3  ;;  %1840 = vst [vmem:[#allocation2 + $0x1d0] sm:$0xf] %v1768_v26  ;;  %v1973_v59 = vadd.f32 %v10212_v52, %v8775_v37  ;;  %v2100_v15 = vadd.f32 %v2068_v0, %v1971_v8  ;;  %v2101_v2 = vadd.f32 %v2069_v9, %v1972_v28  ;;  %v10223_v3 = vld [vmem:[#allocation27_spill] sm:$0xff] }
 0x1f4   : > { %1841 = vst [vmem:[#allocation2 + $0x1d4] sm:$0xf] %v1777_v25  ;;  %v3138_v51 = vunpack.c.l.bf16 %v3106_v63  ;;  %v1974_v1 = vadd.f32 %v10212_v52, %v1939_v49  ;;  %v2441_v19 = vmul.f32 %v10217_v29, %v2392_v47  ;;  %v8833_v41 = vmul.f32 %v10218_v11, %v2558_v32  ;;  %v3444_v52 = vld [vmem:[#allocation2 + $0x1c0] sm:$0x3] }
 0x1f5   : > { %v5462_v37 = vunpack.c.l.bf16 %v6241_v56  ;;  %v5463_v18 = vunpack.c.h.bf16 %v6241_v56  ;;  %v5470_v44 = vunpack.c.l.bf16 %v6243_v4  ;;  %v5471_v43 = vunpack.c.h.bf16 %v6243_v4 }
 0x1f6   : > { %v8837_v57 = vmul.f32 %v8185_v27, %v3138_v51  ;;  %v5319_v35 = vld [vmem:[#allocation2 + $0x128] sm:$0xff]  ;;  %v8840_v8 = vadd.f32 %v10219_v34, %v2441_v19  ;;  %v5478_v5 = vunpack.c.l.bf16 %v6245_v14  ;;  %v3476_v28 = vunpack.c.l.bf16 %v3444_v52 }
 0x1f7   : > { %v5479_v20 = vunpack.c.h.bf16 %v6245_v14  ;;  %v5486_v45 = vunpack.c.l.bf16 %v6247_v58  ;;  %4812 = vmatmul.bf16.vlgmr.msra.gmra.mxu2 %v5319_v35  ;;  %v5487_v55 = vunpack.c.h.bf16 %v6247_v58  ;;  %v5494_v49 = vunpack.c.l.bf16 %v6249_v16  ;;  %v10222_v35 = vld [vmem:[#allocation22_spill] sm:$0xff] }
 0x1f8   : > { %v6239_v50 = vld [vmem:[#allocation2 + $0x1b8] sm:$0xff]   ;;  %v5495_v26 = vunpack.c.h.bf16 %v6249_v16  ;;  %v2044_v63 = vmul.f32 %v5462_v37, %v10215_v42  ;;  %v2045_v25 = vmul.f32 %v5463_v18, %v10215_v42  ;;  %v8851_v32 = vmul.f32 %v8242_v48, %v3476_v28 }
 0x1f9   : > { %v8844_v0 = vunpack.c.l.bf16 %v6239_v50  ;;  %v8846_v9 = vunpack.c.h.bf16 %v6239_v50  ;;  %v2048_v56 = vmul.f32 %v5470_v44, %v10215_v42  ;;  %v2049_v51 = vmul.f32 %v5471_v43, %v10215_v42 }
 0x1fa   : > { %v2052_v4 = vmul.f32 %v5478_v5, %v10215_v42  ;;  %v2053_v58 = vmul.f32 %v5479_v20, %v10215_v42  ;;  %v2056_v37 = vmul.f32 %v5486_v45, %v10215_v42  ;;  %v2057_v28 = vmul.f32 %v5487_v55, %v10215_v42  ;;  %v10226_v55 = vld [vmem:[#allocation24_spill] sm:$0xff] }
 0x1fb   : > { %10220 = vst [vmem:[#allocation64_spill] sm:$0xff] %v8844_v0  ;;  %v6270_v47 = vld [vmem:[#allocation2 + $0x1d0] sm:$0xff]   ;;  %v2070_v14 = vmul.f32 %v8844_v0, %v10215_v42  ;;  %v2071_v19 = vmul.f32 %v8846_v9, %v10215_v42  ;;  %v2198_v52 = vmul.f32 %v8844_v0, %v10222_v35  ;;  %v2199_v44 = vmul.f32 %v8846_v9, %v10222_v35  ;;  %v10225_v0 = vld [vmem:[#allocation41_spill] sm:$0xff] }
 0x1fc   : > { %10221 = vst [vmem:[#allocation29_spill] sm:$0xff] %v8846_v9  ;;  %v5578_v18 = vunpack.c.l.bf16 %v6270_v47  ;;  %v5579_v16 = vunpack.c.h.bf16 %v6270_v47  ;;  %v2060_v50 = vmul.f32 %v5494_v49, %v10215_v42  ;;  %v2061_v47 = vmul.f32 %v5495_v26, %v10215_v42  ;;  %v10227_v49 = vld [vmem:[#allocation42_spill] sm:$0xff] }
 0x1fd   : > { %v2102_v43 = vadd.f32 %v2070_v14, %v1973_v59  ;;  %v2103_v5 = vadd.f32 %v2071_v19, %v1974_v1  ;;  %v2230_v54 = vadd.f32 %v2198_v52, %v2100_v15  ;;  %v2231_v45 = vadd.f32 %v2199_v44, %v2101_v2  ;;  %v10230_v2 = vld [vmem:[#allocation45_spill] sm:$0xff] }
 0x1fe   : > { %v2200_v31 = vmul.f32 %v5578_v18, %v10222_v35  ;;  %v2201_v20 = vmul.f32 %v5579_v16, %v10222_v35  ;;  %v2076_v21 = vadd.f32 %v2044_v63, %v10223_v3  ;;  %v2077_v60 = vadd.f32 %v2045_v25, %v10224_v30  ;;  %v10228_v18 = vld [vmem:[#allocation43_spill] sm:$0xff]  ;;  %v10229_v16 = vld [vmem:[#allocation28_spill] sm:$0xff]  ;;  %v8884_v30 = vld [vmem:[%s9876_s8] ss:$0 sm:$0xff] }
 0x1ff   : > { %v2080_v9 = vadd.f32 %v2048_v56, %v10225_v0  ;;  %v5652_v14 = vpack.c.bf16 %v2231_v45, %v2230_v54  ;;  %v2081_v19 = vadd.f32 %v2049_v51, %v10226_v55  ;;  %v2084_v22 = vadd.f32 %v2052_v4, %v10227_v49  ;;  %v6298_v3 = vld [vmem:[#allocation2 + $0xf8] sm:$0xff]   ;;  %10231 = vst [vmem:[#allocation32_spill] sm:$0xff] %v8884_v30  ;;  %v10235_v49 = vld [vmem:[#allocation33_spill] sm:$0xff] }
 0x200   : > { %v2232_v59 = vadd.f32 %v2200_v31, %v2102_v43  ;;  %v2233_v1 = vadd.f32 %v2201_v20, %v2103_v5  ;;  %v2085_v53 = vadd.f32 %v2053_v58, %v10228_v18  ;;  %v2088_v15 = vadd.f32 %v2056_v37, %v10229_v16  ;;  %v10232_v5 = vld [vmem:[#allocation46_spill] sm:$0xff]  ;;  %v10233_v20 = vld [vmem:[#allocation47_spill] sm:$0xff] }
 0x201   : > { %v8879_v52 = vadd.f32 %v2057_v28, %v10230_v2  ;;  %v3977_v54 = vadd.f32 %v8884_v30, %v8737_v23  ;;  %v3978_v31 = vadd.f32 %v8884_v30, %v8803_v7  ;;  %v4075_v0 = vmul.f32 %v8780_v61, %v10192_v46  ;;  %6285 = vst [vmem:[#allocation2 + $0x1a0] sm:$0xff] %v5652_v14   ;;  %v10234_v14 = vld [vmem:[#allocation55_spill] sm:$0xff]  ;;  %v10237_v2 = vld [vmem:[#allocation56_spill] sm:$0xff] }
 0x202   : > { %v5657_v26 = vpack.c.bf16 %v2233_v1, %v2232_v59  ;;  %v5706_v63 = vunpack.c.l.bf16 %v6298_v3  ;;  %v5707_v25 = vunpack.c.h.bf16 %v6298_v3  ;;  %v4076_v56 = vmul.f32 %v8782_v17, %v10192_v46 }
 0x203   : > { %v4200_v51 = vmul.f32 %v8780_v61, %v10199_v33  ;;  %v4107_v4 = vadd.f32 %v4075_v0, %v3977_v54  ;;  %v4201_v23 = vmul.f32 %v8782_v17, %v10199_v33  ;;  %v4204_v7 = vmul.f32 %v8789_v13, %v10199_v33  ;;  %v10239_v0 = vld [vmem:[#allocation50_spill] sm:$0xff] }
 0x204   : > { %6286 = vst [vmem:[#allocation2 + $0x1b8] sm:$0xff] %v5657_v26   ;;  %v4205_v58 = vmul.f32 %v8791_v10, %v10199_v33  ;;  %v3938_v37 = vmul.f32 %v5706_v63, %v8297_v6  ;;  %v3939_v44 = vmul.f32 %v5707_v25, %v8297_v6  ;;  %v4108_v43 = vadd.f32 %v4076_v56, %v3978_v31  ;;  %v10238_v26 = vld [vmem:[#allocation34_spill] sm:$0xff] }
 0x205   : > { %v8905_v28 = vadd.f32 %v2060_v50, %v10232_v5  ;;  %v8907_v61 = vadd.f32 %v4204_v7, %v4107_v4  ;;  %v8910_v45 = vadd.f32 %v2061_v47, %v10233_v20  ;;  %v8918_v55 = vmul.f32 %v10234_v14, %v10222_v35  ;;  %v10236_v50 = vld [vmem:[#allocation36_spill] sm:$0xff]  ;;  %v10240_v25 = vld [vmem:[#allocation54_spill] sm:$0xff] }
 0x206   : > { %v3973_v17 = vadd.f32 %v8884_v30, %v3938_v37  ;;  %v3974_v59 = vadd.f32 %v8884_v30, %v3939_v44  ;;  %v8914_v1 = vadd.f32 %v4205_v58, %v4108_v43  ;;  %v2174_v18 = vmul.f32 %v10235_v49, %v10222_v35 }
 0x207   : > { %v2175_v16 = vmul.f32 %v10236_v50, %v10222_v35  ;;  %v2191_v47 = vmul.f32 %v10237_v2, %v10222_v35  ;;  %v8927_v3 = vadd.f32 %v10238_v26, %v2080_v9  ;;  %v8932_v63 = vadd.f32 %v10239_v0, %v2081_v19  ;;  %v10241_v19 = vld [vmem:[#allocation26_spill] sm:$0xff]  ;;  %v10243_v26 = vld [vmem:[#allocation48_spill] sm:$0xff] }
 0x208   : > { %v4103_v54 = vadd.f32 %v8811_v62, %v3973_v17  ;;  %v4104_v31 = vadd.f32 %v8823_v40, %v3974_v59  ;;  %v8935_v56 = vadd.f32 %v10240_v25, %v2084_v22  ;;  %v4330_v4 = vmul.f32 %v8789_v13, %v10208_v39  ;;  %v10242_v22 = vld [vmem:[#allocation20_spill] sm:$0xff] }
 0x209   : > { %v4331_v7 = vmul.f32 %v8791_v10, %v10208_v39  ;;  %v8941_v58 = vadd.f32 %v2174_v18, %v2076_v21  ;;  %v8943_v9 = vadd.f32 %v2175_v16, %v2077_v60  ;;  %v8946_v5 = vadd.f32 %v10241_v19, %v2085_v53 }
 0x20a   : > { %v4232_v40 = vadd.f32 %v4200_v51, %v4103_v54  ;;  %v4233_v43 = vadd.f32 %v4201_v23, %v4104_v31  ;;  %v8949_v20 = vadd.f32 %v10242_v22, %v2088_v15  ;;  %v10244_v22 = vrot.slane %v8833_v41, 2 }
 0x20b   : > { %v2345_v37 = vld [vmem:[#allocation2 + $0x1b8] sm:$0xff]  }
 0x20c   : > { %v2346_v62 = vld [vmem:[#allocation2 + $0x1bc] sm:$0x3]  ;;  %v2393_v17 = vunpack.c.l.bf16 %v2345_v37  ;;  %v2865_v49 = vunpack.c.h.bf16 %v2345_v37  ;;  %v3105_v50 = vld [vmem:[#allocation2 + $0x1b8] sm:$0xe]  ;;  %v8951_v16 = vadd.f32 %v4330_v4, %v4232_v40  ;;  %v8953_v2 = vadd.f32 %v4331_v7, %v4233_v43 }
 0x20d   : > { %v2527_v44 = vld [vmem:[#allocation2 + $0x1bc] sm:$0x7]  ;;  %v2394_v59 = vunpack.c.l.bf16 %v2346_v62  ;;  %v3443_v21 = vld [vmem:[#allocation2 + $0x1b8] sm:$0xc]  ;;  %v3137_v18 = vunpack.c.l.bf16 %v3105_v50 }
 0x20e   : > { %v2559_v14 = vunpack.c.l.bf16 %v2527_v44  ;;  %v3475_v60 = vunpack.c.l.bf16 %v3443_v21  ;;  %v2442_v51 = vmul.f32 %v10217_v29, %v2393_v17  ;;  %v2606_v23 = vmul.f32 %v10218_v11, %v2393_v17 }
 0x20f   : > { %v2443_v53 = vmul.f32 %v10217_v29, %v2394_v59  ;;  %v2896_v54 = vmul.f32 %v10243_v26, %v2393_v17  ;;  %v2897_v31 = vmul.f32 %v10243_v26, %v2865_v49  ;;  %v3184_v0 = vmul.f32 %v8185_v27, %v3137_v18 }
 0x210   : > { %v2607_v15 = vmul.f32 %v10218_v11, %v2559_v14  ;;  %v3185_v25 = vmul.f32 %v8185_v27, %v2865_v49  ;;  %v2493_v4 = vadd.f32 %v10219_v34, %v2442_v51  ;;  %v2730_v37 = vrot.slane %v2606_v23, 2 }
 0x211   : > { %v2494_v7 = vadd.f32 %v10219_v34, %v2443_v53  ;;  %v2975_v44 = vrot.slane %v2896_v54, 4  ;;  %v2976_v40 = vrot.slane %v2897_v31, 4  ;;  %v3309_v43 = vrot.slane %v3184_v0, 6 }
 0x212   : > { %v2732_v62 = vrot.slane %v2607_v15, 2  ;;  %v3310_v19 = vrot.slane %v3185_v25, 6  ;;  %v2731_v17 = vsel %vm1198_vm1, %v10244_v22, %v2730_v37  ;;  %v3522_v50 = vmul.f32 %v8242_v48, %v3475_v60  ;;  %v2317_v22 = vld [vmem:[#allocation2 + $0xdc] sm:$0xc] }
 0x213   : > { %v2829_v21 = vadd.f32 %v2731_v17, %v8840_v8  ;;  %v2977_v51 = vsel %vm2932_vm5, %v2975_v44, %v2976_v40  ;;  %v10245_v15 = vrot.slane %v8837_v57, 6  ;;  %v3523_v41 = vmul.f32 %v8242_v48, %v2865_v49  ;;  %v2305_v57 = vld [vmem:[#allocation2 + $0x7c] sm:$0xc] }
 0x214   : > { %v2733_v59 = vsel %vm1198_vm1, %v2730_v37, %v2732_v62  ;;  %v2831_v14 = vadd.f32 %v2732_v62, %v2494_v7  ;;  %v3311_v53 = vsel %vm3238_vm6, %v3309_v43, %v3310_v19  ;;  %v10246_v31 = vunpack.c.l.bf16 %v8819_v36  ;;  %v10248_v7 = vld [vmem:[#allocation23_spill] sm:$0xff] }
 0x215   : > { %v2830_v18 = vadd.f32 %v2733_v59, %v2493_v4  ;;  %v3313_v54 = vsel %vm3238_vm6, %v3310_v19, %v10245_v15  ;;  %v3071_v60 = vadd.f32 %v2975_v44, %v2829_v21  ;;  %v10247_v8 = vunpack.c.h.bf16 %v8819_v36  ;;  %v2311_v44 = vld [vmem:[#allocation2 + $0xac] sm:$0xc]  ;;  %v2500_v15 = vld [vmem:[#allocation2 + $0x7c] sm:$0x8] }
 0x216   : > { %v3073_v23 = vadd.f32 %v2976_v40, %v2831_v14  ;;  %v8980_v0 = vmul.f32 %v10246_v31, %v10211_v12  ;;  %v2219_v37 = vadd.f32 %v10248_v7, %v8879_v52  ;;  %v2222_v49 = vadd.f32 %v8918_v55, %v8905_v28  ;;  %v2323_v21 = vld [vmem:[#allocation2 + $0x10c] sm:$0xc] }
 0x217   : > { %v3072_v25 = vadd.f32 %v2977_v51, %v2830_v18  ;;  %v8985_v4 = vmul.f32 %v10247_v8, %v10211_v12  ;;  %v2223_v40 = vadd.f32 %v2191_v47, %v8910_v45  ;;  %v5592_v19 = vpack.c.bf16 %v8943_v9, %v8941_v58  ;;  %v2329_v18 = vld [vmem:[#allocation2 + $0x13c] sm:$0xc]  ;;  %v9012_v8 = vld [vmem:[#allocation2 + $0x10c] sm:$0x8] }
 0x218   : > { %v3411_v62 = vadd.f32 %v3313_v54, %v3073_v23  ;;  %v3409_v17 = vadd.f32 %v3309_v43, %v3071_v60  ;;  %v5602_v14 = vpack.c.bf16 %v8932_v63, %v8927_v3  ;;  %v5612_v52 = vpack.c.bf16 %v8946_v5, %v8935_v56  ;;  %v9003_v54 = vld [vmem:[#allocation2 + $0xac] sm:$0x8] }
 0x219   : > { %v3410_v59 = vadd.f32 %v3311_v53, %v3072_v25  ;;  %6273 = vst [vmem:[#allocation2 + $0x80] sm:$0xff] %v5592_v19   ;;  %v5622_v28 = vpack.c.bf16 %v2219_v37, %v8949_v20  ;;  %v5632_v45 = vpack.c.bf16 %v2223_v40, %v2222_v49  ;;  %v2353_v55 = vunpack.c.l.bf16 %v2305_v57  ;;  %v9010_v25 = vld [vmem:[#allocation2 + $0xdc] sm:$0x8]  ;;  %v9025_v40 = vld [vmem:[%s9874_s6] ss:$0 sm:$0xff] }
 0x21a   : > { %v3572_v51 = vadd.f32 %v8851_v32, %v3411_v62  ;;  %v3570_v47 = vadd.f32 %v3522_v50, %v3409_v17  ;;  %6275 = vst [vmem:[#allocation2 + $0xb0] sm:$0xff] %v5602_v14   ;;  %v2359_v9 = vunpack.c.l.bf16 %v2311_v44  ;;  %v2365_v43 = vunpack.c.l.bf16 %v2317_v22  ;;  %v9020_v49 = vld [vmem:[#allocation2 + $0x13c] sm:$0x8] }
 0x21b   : > { %v3571_v58 = vadd.f32 %v3523_v41, %v3410_v59  ;;  %6277 = vst [vmem:[#allocation2 + $0xe0] sm:$0xff] %v5612_v52   ;;  %v2371_v3 = vunpack.c.l.bf16 %v2323_v21  ;;  %v2377_v63 = vunpack.c.l.bf16 %v2329_v18  ;;  %v2402_v56 = vmul.f32 %v10217_v29, %v2353_v55 }
 0x21c   : > { %v3620_v53 = vpack.c.bf16 %v3572_v51, %v3572_v51  ;;  %v3618_v5 = vpack.c.bf16 %v3570_v47, %v3570_v47  ;;  %6279 = vst [vmem:[#allocation2 + $0x110] sm:$0xff] %v5622_v28   ;;  %v2408_v32 = vmul.f32 %v10217_v29, %v2359_v9  ;;  %v2414_v20 = vmul.f32 %v10217_v29, %v2365_v43 }
 0x21d   : > { %v3619_v23 = vpack.c.bf16 %v3571_v58, %v3571_v58  ;;  %6281 = vst [vmem:[#allocation2 + $0x140] sm:$0xff] %v5632_v45   ;;  %v2420_v41 = vmul.f32 %v10217_v29, %v2371_v3  ;;  %v2426_v31 = vmul.f32 %v10217_v29, %v2377_v63  ;;  %v9008_v60 = vadd.f32 %v10219_v34, %v2402_v56 }
 0x21e   : > { %v3778_v50 = vrot.slane %v3620_v53, 6  ;;  %v5199_v7 = vrot.slane %v3618_v5, 10  ;;  %v9015_v57 = vadd.f32 %v10219_v34, %v2408_v32  ;;  %v9018_v62 = vadd.f32 %v10219_v34, %v2414_v20  ;;  %10249 = vst [vmem:[#allocation65_spill] sm:$0xff] %v9025_v40 }
 0x21f   : > { %v3775_v37 = vrot.slane %v3619_v23, 6  ;;  %v9028_v19 = vadd.f32 %v9025_v40, %v2420_v41  ;;  %v9031_v44 = vadd.f32 %v9025_v40, %v2426_v31  ;;  %v2532_v22 = vunpack.c.l.bf16 %v2500_v15 }
 0x220   : > { %v9036_v14 = vld [vmem:[#allocation2 + $0x80] sm:$0xff]   ;;  %v2540_v18 = vunpack.c.l.bf16 %v9010_v25  ;;  %v10252_v46 = vunpack.c.l.bf16 %v9020_v49 }
 0x221   : > { %v3776_v34 = vsel %vm8274_vm8, %v5199_v7, %v3775_v37  ;;  %v3777_v59 = vrot.slane %v3775_v37, 4  ;;  %v2307_v52 = vld [vmem:[#allocation2 + $0x84] sm:$0x3]  ;;  %v9040_v28 = vld [vmem:[#allocation2 + $0xb0] sm:$0xff]   ;;  %v9043_v55 = vunpack.c.l.bf16 %v9036_v14  ;;  %v9054_v5 = vmul.f32 %v10218_v11, %v2532_v22 }
 0x222   : > { %v2501_v21 = vld [vmem:[#allocation2 + $0x84] sm:$0x7]  ;;  %3847 = vst [vmem:[#allocation2 + $0x1b8] sm:$0xf] %v3776_v34  ;;  %v2313_v45 = vld [vmem:[#allocation2 + $0xb4] sm:$0x3]  ;;  %v2355_v47 = vunpack.c.l.bf16 %v2307_v52  ;;  %v9051_v63 = vunpack.c.l.bf16 %v9040_v28 }
 0x223   : > { %v2533_v58 = vunpack.c.l.bf16 %v2501_v21  ;;  %v3779_v43 = vsel %vm8274_vm8, %v3777_v59, %v3778_v50  ;;  %v9048_v53 = vld [vmem:[#allocation2 + $0xe0] sm:$0xff]   ;;  %v2361_v56 = vunpack.c.l.bf16 %v2313_v45  ;;  %v9056_v23 = vld [vmem:[#allocation2 + $0x110] sm:$0xff]   ;;  %v2403_v50 = vmul.f32 %v10217_v29, %v9043_v55 }
 0x224   : > { %v2319_v3 = vld [vmem:[#allocation2 + $0xe4] sm:$0x3]  ;;  %3848 = vst [vmem:[#allocation2 + $0x1bc] sm:$0xf] %v3779_v43  ;;  %v2325_v32 = vld [vmem:[#allocation2 + $0x114] sm:$0x3]  ;;  %v9059_v20 = vunpack.c.l.bf16 %v9048_v53  ;;  %v2404_v41 = vmul.f32 %v10217_v29, %v2355_v47  ;;  %v9067_v7 = vunpack.c.l.bf16 %v9056_v23  ;;  %v2409_v22 = vmul.f32 %v10217_v29, %v9051_v63 }
 0x225   : > { %v2367_v15 = vunpack.c.l.bf16 %v2319_v3  ;;  %v9064_v31 = vld [vmem:[#allocation2 + $0x140] sm:$0xff]   ;;  %v2373_v37 = vunpack.c.l.bf16 %v2325_v32  ;;  %v2410_v34 = vmul.f32 %v10217_v29, %v2361_v56  ;;  %v9082_v3 = vadd.f32 %v9025_v40, %v2403_v50  ;;  %v2505_v56 = vld [vmem:[#allocation2 + $0xb4] sm:$0x7] }
 0x226   : > { %v2331_v25 = vld [vmem:[#allocation2 + $0x144] sm:$0x3]  ;;  %v9073_v59 = vunpack.c.l.bf16 %v9064_v31  ;;  %v2415_v21 = vmul.f32 %v10217_v29, %v9059_v20  ;;  %v2421_v47 = vmul.f32 %v10217_v29, %v9067_v7  ;;  %v9085_v32 = vadd.f32 %v9025_v40, %v2404_v41 }
 0x227   : > { %v2379_v52 = vunpack.c.l.bf16 %v2331_v25  ;;  %v2416_v45 = vmul.f32 %v10217_v29, %v2367_v15  ;;  %v2422_v43 = vmul.f32 %v10217_v29, %v2373_v37  ;;  %v2509_v9 = vld [vmem:[#allocation2 + $0xe4] sm:$0x7]  ;;  %v9091_v15 = vadd.f32 %v9025_v40, %v2409_v22  ;;  %v2513_v37 = vld [vmem:[#allocation2 + $0x114] sm:$0x7] }
 0x228   : > { %v2427_v25 = vmul.f32 %v10217_v29, %v9073_v59  ;;  %v9094_v17 = vadd.f32 %v9025_v40, %v2410_v34  ;;  %v2517_v10 = vld [vmem:[#allocation2 + $0x144] sm:$0x7]  ;;  %v9097_v50 = vadd.f32 %v9025_v40, %v2415_v21  ;;  %v9103_v13 = vadd.f32 %v9025_v40, %v2421_v47 }
 0x229   : > { %v2428_v51 = vmul.f32 %v10217_v29, %v2379_v52  ;;  %v9100_v41 = vadd.f32 %v9025_v40, %v2416_v45  ;;  %v9106_v36 = vadd.f32 %v9025_v40, %v2422_v43  ;;  %v2537_v52 = vunpack.c.l.bf16 %v2505_v56 }
 0x22a   : > { %v9109_v22 = vadd.f32 %v9025_v40, %v2427_v25  ;;  %v2541_v29 = vunpack.c.l.bf16 %v2509_v9  ;;  %v2545_v21 = vunpack.c.l.bf16 %v2513_v37  ;;  %v2549_v42 = vunpack.c.l.bf16 %v2517_v10 }
 0x22b   : > { %v9112_v34 = vadd.f32 %v9025_v40, %v2428_v51  ;;  %v6348_v33 = vld [vmem:[#allocation2 + $0x1b8] sm:$0xff]   ;;  %v2567_v45 = vmul.f32 %v10218_v11, %v9043_v55  ;;  %v2568_v47 = vmul.f32 %v10218_v11, %v2533_v58  ;;  %v10250_v43 = vunpack.c.l.bf16 %v9003_v54 }
 0x22c   : > { %v5906_v30 = vunpack.c.l.bf16 %v6348_v33  ;;  %v5907_v38 = vunpack.c.h.bf16 %v6348_v33  ;;  %v2573_v51 = vmul.f32 %v10218_v11, %v9051_v63  ;;  %v2574_v56 = vmul.f32 %v10218_v11, %v2537_v52 }
 0x22d   : > { %v2572_v25 = vmul.f32 %v10218_v11, %v10250_v43  ;;  %v2578_v9 = vmul.f32 %v10218_v11, %v2540_v18  ;;  %v2579_v10 = vmul.f32 %v10218_v11, %v9059_v20  ;;  %v2580_v37 = vmul.f32 %v10218_v11, %v2541_v29 }
 0x22e   : > { %v4334_v58 = vmul.f32 %v5906_v30, %v10208_v39  ;;  %v4335_v33 = vmul.f32 %v5907_v38, %v10208_v39  ;;  %v4460_v54 = vmul.f32 %v5906_v30, %v10211_v12  ;;  %v4461_v43 = vmul.f32 %v5907_v38, %v10211_v12 }
 0x22f   : > { %v10251_v40 = vunpack.c.l.bf16 %v9012_v8  ;;  %v2585_v18 = vmul.f32 %v10218_v11, %v9067_v7  ;;  %v2586_v52 = vmul.f32 %v10218_v11, %v2545_v21  ;;  %v2590_v29 = vmul.f32 %v10218_v11, %v10252_v46 }
 0x230   : > { %v4366_v6 = vadd.f32 %v4334_v58, %v8907_v61  ;;  %v4367_v39 = vadd.f32 %v4335_v33, %v8914_v1  ;;  %v9143_v30 = vadd.f32 %v4460_v54, %v8951_v16  ;;  %v9146_v38 = vadd.f32 %v4461_v43, %v8953_v2 }
 0x231   : > { %v2584_v35 = vmul.f32 %v10218_v11, %v10251_v40  ;;  %v2591_v8 = vmul.f32 %v10218_v11, %v9073_v59  ;;  %v2592_v40 = vmul.f32 %v10218_v11, %v2549_v42  ;;  %v2664_v21 = vrot.slane %v9054_v5, 2 }
 0x232   : > { %v2665_v49 = vrot.slane %v2567_v45, 2  ;;  %v4496_v46 = vadd.f32 %v8980_v0, %v4366_v6  ;;  %v4497_v61 = vadd.f32 %v8985_v4, %v4367_v39  ;;  %v6037_v1 = vpack.c.bf16 %v9146_v38, %v9143_v30 }
 0x233   : > { %v2667_v16 = vrot.slane %v2568_v47, 2  ;;  %v2674_v2 = vrot.slane %v2572_v25, 2  ;;  %v2675_v33 = vrot.slane %v2573_v51, 2  ;;  %v2677_v54 = vrot.slane %v2574_v56, 2 }
 0x234   : > { %v2666_v58 = vsel %vm1198_vm1, %v2664_v21, %v2665_v49  ;;  %v6047_v43 = vpack.c.bf16 %v4497_v61, %v4496_v46  ;;  %v2684_v42 = vrot.slane %v2578_v9, 2  ;;  %v2685_v11 = vrot.slane %v2579_v10, 2 }
 0x235   : > { %v2668_v12 = vsel %vm1198_vm1, %v2665_v49, %v2667_v16  ;;  %v2676_v5 = vsel %vm1198_vm1, %v2674_v2, %v2675_v33  ;;  %v2678_v6 = vsel %vm1198_vm1, %v2675_v33, %v2677_v54  ;;  %v2687_v0 = vrot.slane %v2580_v37, 2 }
 0x236   : > { %v2694_v39 = vrot.slane %v2584_v35, 2  ;;  %6380 = vst [vmem:[#allocation2 + $0x188] sm:$0xff] %v6047_v43   ;;  %v2686_v4 = vsel %vm1198_vm1, %v2684_v42, %v2685_v11  ;;  %v2695_v45 = vrot.slane %v2585_v18, 2  ;;  %v2697_v47 = vrot.slane %v2586_v52, 2 }
 0x237   : > { %v2704_v21 = vrot.slane %v2590_v29, 2  ;;  %v2688_v25 = vsel %vm1198_vm1, %v2685_v11, %v2687_v0  ;;  %v2705_v51 = vrot.slane %v2591_v8, 2  ;;  %v2707_v56 = vrot.slane %v2592_v40, 2 }
 0x238   : > { %v2790_v49 = vadd.f32 %v2666_v58, %v9008_v60  ;;  %v2696_v9 = vsel %vm1198_vm1, %v2694_v39, %v2695_v45  ;;  %v2698_v10 = vsel %vm1198_vm1, %v2695_v45, %v2697_v47  ;;  %v2791_v46 = vadd.f32 %v2668_v12, %v9082_v3 }
 0x239   : > { %v2792_v35 = vadd.f32 %v2667_v16, %v9085_v32  ;;  %v2706_v37 = vsel %vm1198_vm1, %v2704_v21, %v2705_v51  ;;  %v2708_v18 = vsel %vm1198_vm1, %v2705_v51, %v2707_v56  ;;  %v2796_v52 = vadd.f32 %v2676_v5, %v9015_v57  ;;  %v3080_v51 = vld [vmem:[#allocation2 + $0x88] sm:$0x1] }
 0x23a   : > { %v2797_v11 = vadd.f32 %v2678_v6, %v9091_v15  ;;  %v2798_v29 = vadd.f32 %v2677_v54, %v9094_v17  ;;  %v2802_v60 = vadd.f32 %v2686_v4, %v9018_v62  ;;  %v2803_v8 = vadd.f32 %v2688_v25, %v9097_v50  ;;  %v3079_v25 = vld [vmem:[#allocation2 + $0x80] sm:$0xe] }
 0x23b   : > { %v2804_v40 = vadd.f32 %v2687_v0, %v9100_v41  ;;  %v2808_v12 = vadd.f32 %v2696_v9, %v9028_v19  ;;  %v2809_v3 = vadd.f32 %v2698_v10, %v9103_v13  ;;  %v2810_v32 = vadd.f32 %v2697_v47, %v9106_v36 }
 0x23c   : > { %v2814_v61 = vadd.f32 %v2706_v37, %v9031_v44  ;;  %v2815_v57 = vadd.f32 %v2708_v18, %v9109_v22  ;;  %v2816_v15 = vadd.f32 %v2707_v56, %v9112_v34  ;;  %v9182_v17 = vunpack.c.h.bf16 %v9036_v14  ;;  %v3083_v56 = vld [vmem:[#allocation2 + $0xb0] sm:$0xe]  ;;  %v3087_v18 = vld [vmem:[#allocation2 + $0xe0] sm:$0xe] }
 0x23d   : > { %v9185_v62 = vunpack.c.h.bf16 %v9040_v28  ;;  %v5323_v50 = vld [vmem:[#allocation2 + $0x188] sm:$0xff]  ;;  %v9188_v41 = vunpack.c.h.bf16 %v9048_v53  ;;  %v9191_v13 = vunpack.c.h.bf16 %v9056_v23  ;;  %v9194_v36 = vunpack.c.h.bf16 %v9064_v31 }
 0x23e   : > { %v2870_v19 = vmul.f32 %v10243_v26, %v9043_v55  ;;  %v2871_v44 = vmul.f32 %v10243_v26, %v9182_v17  ;;  %v2874_v14 = vmul.f32 %v10243_v26, %v9051_v63  ;;  %v2878_v53 = vmul.f32 %v10243_v26, %v9059_v20  ;;  %4832 = vmatmul.bf16.vlgmr.msra.gmra.mxu3 %v5323_v50  ;;  %v3088_v50 = vld [vmem:[#allocation2 + $0xe8] sm:$0x1] }
 0x23f   : > { %v2875_v28 = vmul.f32 %v10243_v26, %v9185_v62  ;;  %v2879_v23 = vmul.f32 %v10243_v26, %v9188_v41  ;;  %v2882_v31 = vmul.f32 %v10243_v26, %v9067_v7  ;;  %v2883_v55 = vmul.f32 %v10243_v26, %v9191_v13 }
 0x240   : > { %v2886_v22 = vmul.f32 %v10243_v26, %v9073_v59  ;;  %v2887_v63 = vmul.f32 %v10243_v26, %v9194_v36  ;;  %v2936_v34 = vrot.slane %v2870_v19, 4  ;;  %v2937_v16 = vrot.slane %v2871_v44, 4 }
 0x241   : > { %v2942_v58 = vrot.slane %v2874_v14, 4  ;;  %v2943_v20 = vrot.slane %v2875_v28, 4  ;;  %v2948_v2 = vrot.slane %v2878_v53, 4  ;;  %v2949_v33 = vrot.slane %v2879_v23, 4  ;;  %v3091_v14 = vld [vmem:[#allocation2 + $0x110] sm:$0xe] }
 0x242   : > { %v2954_v54 = vrot.slane %v2882_v31, 4  ;;  %v2938_v43 = vsel %vm2932_vm5, %v2936_v34, %v2937_v16  ;;  %v2955_v42 = vrot.slane %v2883_v55, 4  ;;  %v2960_v7 = vrot.slane %v2886_v22, 4  ;;  %v3095_v28 = vld [vmem:[#allocation2 + $0x140] sm:$0xe] }
 0x243   : > { %v2961_v5 = vrot.slane %v2887_v63, 4  ;;  %v2944_v6 = vsel %vm2932_vm5, %v2942_v58, %v2943_v20  ;;  %v2950_v0 = vsel %vm2932_vm5, %v2948_v2, %v2949_v33  ;;  %v9219_v59 = vadd.f32 %v2936_v34, %v2790_v49  ;;  %v3096_v53 = vld [vmem:[#allocation2 + $0x148] sm:$0x1] }
 0x244   : > { %v9221_v39 = vadd.f32 %v2938_v43, %v2791_v46  ;;  %v2956_v4 = vsel %vm2932_vm5, %v2954_v54, %v2955_v42  ;;  %v9225_v47 = vadd.f32 %v2937_v16, %v2792_v35  ;;  %v9227_v21 = vadd.f32 %v2942_v58, %v2796_v52  ;;  %v3084_v46 = vld [vmem:[#allocation2 + $0xb8] sm:$0x1] }
 0x245   : > { %v2962_v45 = vsel %vm2932_vm5, %v2960_v7, %v2961_v5  ;;  %v9229_v9 = vadd.f32 %v2944_v6, %v2797_v11  ;;  %v9231_v10 = vadd.f32 %v2943_v20, %v2798_v29  ;;  %v9233_v37 = vadd.f32 %v2948_v2, %v2802_v60  ;;  %v3092_v11 = vld [vmem:[#allocation2 + $0x118] sm:$0x1] }
 0x246   : > { %v9235_v49 = vadd.f32 %v2950_v0, %v2803_v8  ;;  %v9237_v19 = vadd.f32 %v2949_v33, %v2804_v40  ;;  %v9239_v35 = vadd.f32 %v2954_v54, %v2808_v12  ;;  %v9241_v52 = vadd.f32 %v2956_v4, %v2809_v3 }
 0x247   : > { %v9243_v44 = vadd.f32 %v2955_v42, %v2810_v32  ;;  %v9245_v29 = vadd.f32 %v2960_v7, %v2814_v61  ;;  %v9247_v60 = vadd.f32 %v2962_v45, %v2815_v57  ;;  %v9249_v8 = vadd.f32 %v2961_v5, %v2816_v15 }
 0x248   : > { %v3111_v23 = vunpack.c.l.bf16 %v3079_v25  ;;  %v3112_v31 = vunpack.c.l.bf16 %v3080_v51  ;;  %v3115_v40 = vunpack.c.l.bf16 %v3083_v56  ;;  %v3116_v55 = vunpack.c.l.bf16 %v3084_v46 }
 0x249   : > { %v3119_v12 = vunpack.c.l.bf16 %v3087_v18  ;;  %v3120_v22 = vunpack.c.l.bf16 %v3088_v50  ;;  %v3123_v3 = vunpack.c.l.bf16 %v3091_v14  ;;  %v3124_v63 = vunpack.c.l.bf16 %v3092_v11 }
 0x24a   : > { %v3127_v32 = vunpack.c.l.bf16 %v3095_v28  ;;  %v3128_v34 = vunpack.c.l.bf16 %v3096_v53  ;;  %v3145_v16 = vmul.f32 %v8185_v27, %v3111_v23  ;;  %v3146_v61 = vmul.f32 %v8185_v27, %v9182_v17 }
 0x24b   : > { %v3147_v57 = vmul.f32 %v8185_v27, %v3112_v31  ;;  %v3151_v15 = vmul.f32 %v8185_v27, %v3115_v40  ;;  %v3152_v58 = vmul.f32 %v8185_v27, %v9185_v62  ;;  %v3153_v20 = vmul.f32 %v8185_v27, %v3116_v55 }
 0x24c   : > { %v3157_v2 = vmul.f32 %v8185_v27, %v3119_v12  ;;  %v3158_v33 = vmul.f32 %v8185_v27, %v9188_v41  ;;  %v3159_v54 = vmul.f32 %v8185_v27, %v3120_v22  ;;  %v3163_v43 = vmul.f32 %v8185_v27, %v3123_v3 }
 0x24d   : > { %v3164_v42 = vmul.f32 %v8185_v27, %v9191_v13  ;;  %v3165_v7 = vmul.f32 %v8185_v27, %v3124_v63  ;;  %v3169_v5 = vmul.f32 %v8185_v27, %v3127_v32  ;;  %v3170_v6 = vmul.f32 %v8185_v27, %v9194_v36 }
 0x24e   : > { %v3171_v0 = vmul.f32 %v8185_v27, %v3128_v34  ;;  %v3244_v4 = vrot.slane %v3145_v16, 6  ;;  %v3245_v45 = vrot.slane %v3146_v61, 6  ;;  %v3247_v25 = vrot.slane %v3147_v57, 6 }
 0x24f   : > { %v3254_v51 = vrot.slane %v3151_v15, 6  ;;  %v3255_v56 = vrot.slane %v3152_v58, 6  ;;  %v3257_v46 = vrot.slane %v3153_v20, 6  ;;  %v3264_v18 = vrot.slane %v3157_v2, 6  ;;  %v3417_v2 = vld [vmem:[#allocation2 + $0x80] sm:$0xc] }
 0x250   : > { %v3265_v50 = vrot.slane %v3158_v33, 6  ;;  %v3246_v14 = vsel %vm3238_vm6, %v3244_v4, %v3245_v45  ;;  %v3248_v11 = vsel %vm3238_vm6, %v3245_v45, %v3247_v25  ;;  %v3267_v28 = vrot.slane %v3159_v54, 6  ;;  %v3418_v33 = vld [vmem:[#allocation2 + $0x88] sm:$0x3]  ;;  %v3429_v45 = vld [vmem:[#allocation2 + $0x110] sm:$0xc] }
 0x251   : > { %v3274_v53 = vrot.slane %v3163_v43, 6  ;;  %v3256_v23 = vsel %vm3238_vm6, %v3254_v51, %v3255_v56  ;;  %v3258_v31 = vsel %vm3238_vm6, %v3255_v56, %v3257_v46  ;;  %v3275_v55 = vrot.slane %v3164_v42, 6  ;;  %v3430_v25 = vld [vmem:[#allocation2 + $0x118] sm:$0x3]  ;;  %v3433_v56 = vld [vmem:[#allocation2 + $0x140] sm:$0xc] }
 0x252   : > { %v3266_v40 = vsel %vm3238_vm6, %v3264_v18, %v3265_v50  ;;  %v3268_v12 = vsel %vm3238_vm6, %v3265_v50, %v3267_v28  ;;  %v3277_v22 = vrot.slane %v3165_v7, 6  ;;  %v3284_v3 = vrot.slane %v3169_v5, 6  ;;  %v3421_v7 = vld [vmem:[#allocation2 + $0xb0] sm:$0xc]  ;;  %v3425_v5 = vld [vmem:[#allocation2 + $0xe0] sm:$0xc] }
 0x253   : > { %v3285_v63 = vrot.slane %v3170_v6, 6  ;;  %v3276_v32 = vsel %vm3238_vm6, %v3274_v53, %v3275_v55  ;;  %v3287_v34 = vrot.slane %v3171_v0, 6  ;;  %v3370_v16 = vadd.f32 %v3244_v4, %v9219_v59  ;;  %v3426_v4 = vld [vmem:[#allocation2 + $0xe8] sm:$0x3] }
 0x254   : > { %v3371_v61 = vadd.f32 %v3246_v14, %v9221_v39  ;;  %v3278_v57 = vsel %vm3238_vm6, %v3275_v55, %v3277_v22  ;;  %v3372_v58 = vadd.f32 %v3248_v11, %v9225_v47  ;;  %v3376_v20 = vadd.f32 %v3254_v51, %v9227_v21  ;;  %v3422_v39 = vld [vmem:[#allocation2 + $0xb8] sm:$0x3]  ;;  %v3434_v46 = vld [vmem:[#allocation2 + $0x148] sm:$0x3] }
 0x255   : > { %v3286_v15 = vsel %vm3238_vm6, %v3284_v3, %v3285_v63  ;;  %v3288_v54 = vsel %vm3238_vm6, %v3285_v63, %v3287_v34  ;;  %v3377_v43 = vadd.f32 %v3256_v23, %v9229_v9  ;;  %v3378_v42 = vadd.f32 %v3258_v31, %v9231_v10 }
 0x256   : > { %v3382_v59 = vadd.f32 %v3264_v18, %v9233_v37  ;;  %v3383_v6 = vadd.f32 %v3266_v40, %v9235_v49  ;;  %v3384_v0 = vadd.f32 %v3268_v12, %v9237_v19  ;;  %v3388_v47 = vadd.f32 %v3274_v53, %v9239_v35 }
 0x257   : > { %v3389_v21 = vadd.f32 %v3276_v32, %v9241_v52  ;;  %v3390_v9 = vadd.f32 %v3278_v57, %v9243_v44  ;;  %v3394_v10 = vadd.f32 %v3284_v3, %v9245_v29  ;;  %v3395_v37 = vadd.f32 %v3286_v15, %v9247_v60 }
 0x258   : > { %v3396_v51 = vadd.f32 %v3288_v54, %v9249_v8  ;;  %v3449_v49 = vunpack.c.l.bf16 %v3417_v2  ;;  %v3450_v18 = vunpack.c.l.bf16 %v3418_v33  ;;  %v3453_v19 = vunpack.c.l.bf16 %v3421_v7 }
 0x259   : > { %v3454_v50 = vunpack.c.l.bf16 %v3422_v39  ;;  %v3457_v35 = vunpack.c.l.bf16 %v3425_v5  ;;  %v3458_v14 = vunpack.c.l.bf16 %v3426_v4  ;;  %v3461_v52 = vunpack.c.l.bf16 %v3429_v45 }
 0x25a   : > { %v3462_v11 = vunpack.c.l.bf16 %v3430_v25  ;;  %v3465_v28 = vunpack.c.l.bf16 %v3433_v56  ;;  %v3466_v53 = vunpack.c.l.bf16 %v3434_v46  ;;  %v3483_v44 = vmul.f32 %v8242_v48, %v3449_v49 }
 0x25b   : > { %v3484_v29 = vmul.f32 %v8242_v48, %v9182_v17  ;;  %v3485_v60 = vmul.f32 %v8242_v48, %v3450_v18  ;;  %v3489_v8 = vmul.f32 %v8242_v48, %v3453_v19  ;;  %v3490_v23 = vmul.f32 %v8242_v48, %v9185_v62 }
 0x25c   : > { %v3491_v31 = vmul.f32 %v8242_v48, %v3454_v50  ;;  %v3495_v40 = vmul.f32 %v8242_v48, %v3457_v35  ;;  %v3496_v55 = vmul.f32 %v8242_v48, %v9188_v41  ;;  %v3497_v12 = vmul.f32 %v8242_v48, %v3458_v14 }
 0x25d   : > { %v3501_v22 = vmul.f32 %v8242_v48, %v3461_v52  ;;  %v3502_v17 = vmul.f32 %v8242_v48, %v9191_v13  ;;  %v3503_v3 = vmul.f32 %v8242_v48, %v3462_v11  ;;  %v3507_v63 = vmul.f32 %v8242_v48, %v3465_v28 }
 0x25e   : > { %v3508_v62 = vmul.f32 %v8242_v48, %v9194_v36  ;;  %v3509_v32 = vmul.f32 %v8242_v48, %v3466_v53  ;;  %v3531_v34 = vadd.f32 %v3483_v44, %v3370_v16  ;;  %v3532_v57 = vadd.f32 %v3484_v29, %v3371_v61  ;;  %v6289_v29 = vld [vmem:[#allocation2 + $0x20] sm:$0xff]  }
 0x25f   : > { %v3533_v15 = vadd.f32 %v3485_v60, %v3372_v58  ;;  %v3537_v41 = vadd.f32 %v3489_v8, %v3376_v20  ;;  %v3538_v2 = vadd.f32 %v3490_v23, %v3377_v43  ;;  %v3539_v33 = vadd.f32 %v3491_v31, %v3378_v42 }
 0x260   : > { %v3543_v54 = vadd.f32 %v3495_v40, %v3382_v59  ;;  %v3544_v7 = vadd.f32 %v3496_v55, %v3383_v6  ;;  %v3545_v39 = vadd.f32 %v3497_v12, %v3384_v0  ;;  %v3549_v5 = vadd.f32 %v3501_v22, %v3388_v47  ;;  %v6291_v40 = vld [vmem:[#allocation2 + $0x50] sm:$0xff]  }
 0x261   : > { %v3550_v13 = vadd.f32 %v3502_v17, %v3389_v21  ;;  %v3551_v4 = vadd.f32 %v3503_v3, %v3390_v9  ;;  %v3555_v45 = vadd.f32 %v3507_v63, %v3394_v10  ;;  %v3556_v25 = vadd.f32 %v3508_v62, %v3395_v37 }
 0x262   : > { %v3557_v56 = vadd.f32 %v3509_v32, %v3396_v51  ;;  %v3579_v46 = vpack.c.bf16 %v3531_v34, %v3531_v34  ;;  %v3580_v49 = vpack.c.bf16 %v3532_v57, %v3532_v57  ;;  %v3581_v36 = vpack.c.bf16 %v3533_v15, %v3533_v15 }
 0x263   : > { %v3585_v18 = vpack.c.bf16 %v3537_v41, %v3537_v41  ;;  %v3586_v19 = vpack.c.bf16 %v3538_v2, %v3538_v2  ;;  %v3587_v16 = vpack.c.bf16 %v3539_v33, %v3539_v33  ;;  %v3591_v61 = vpack.c.bf16 %v3543_v54, %v3543_v54  ;;  %v6251_v2 = vld [vmem:[#allocation2 + $0x170] sm:$0xff]  }
 0x264   : > { %v3592_v58 = vpack.c.bf16 %v3544_v7, %v3544_v7  ;;  %v3593_v20 = vpack.c.bf16 %v3545_v39, %v3545_v39  ;;  %v3597_v43 = vpack.c.bf16 %v3549_v5, %v3549_v5  ;;  %v3598_v42 = vpack.c.bf16 %v3550_v13, %v3550_v13  ;;  %v10253_v5 = vld [vmem:[#allocation25_spill] sm:$0xff] }
 0x265   : > { %v3599_v59 = vpack.c.bf16 %v3551_v4, %v3551_v4  ;;  %v3603_v6 = vpack.c.bf16 %v3555_v45, %v3555_v45  ;;  %v3604_v0 = vpack.c.bf16 %v3556_v25, %v3556_v25  ;;  %v3605_v47 = vpack.c.bf16 %v3557_v56, %v3557_v56  ;;  %v10254_v25 = vld [vmem:[#allocation51_spill] sm:$0xff] }
 0x266   : > { %v5186_v21 = vrot.slane %v3579_v46, 10  ;;  %v3684_v9 = vrot.slane %v3580_v49, 6  ;;  %v3687_v10 = vrot.slane %v3581_v36, 6  ;;  %v5188_v37 = vrot.slane %v3585_v18, 10 }
 0x267   : > { %v3698_v51 = vrot.slane %v3586_v19, 6  ;;  %v3701_v50 = vrot.slane %v3587_v16, 6  ;;  %v5190_v35 = vrot.slane %v3591_v61, 10  ;;  %v3712_v14 = vrot.slane %v3592_v58, 6  ;;  %v9342_v19 = vld [vmem:[#allocation2 + $0x16c] sm:$0xc] }
 0x268   : > { %v3715_v52 = vrot.slane %v3593_v20, 6  ;;  %v3685_v11 = vsel %vm8274_vm8, %v5186_v21, %v3684_v9  ;;  %v3686_v28 = vrot.slane %v3684_v9, 4  ;;  %v5192_v23 = vrot.slane %v3597_v43, 10  ;;  %v9344_v16 = vld [vmem:[#allocation2 + $0x19c] sm:$0xc]  ;;  %v10255_v61 = vld [vmem:[#allocation22_spill] sm:$0xff] }
 0x269   : > { %v3699_v53 = vsel %vm8274_vm8, %v5188_v37, %v3698_v51  ;;  %v3700_v44 = vrot.slane %v3698_v51, 4  ;;  %v3713_v60 = vsel %vm8274_vm8, %v5190_v35, %v3712_v14  ;;  %v3714_v8 = vrot.slane %v3712_v14, 4  ;;  %3821 = vst [vmem:[#allocation2 + $0x80] sm:$0xf] %v3685_v11  ;;  %v10256_v58 = vld [vmem:[#allocation39_spill] sm:$0xff]  ;;  %v10257_v43 = vld [vmem:[#allocation32_spill] sm:$0xff] }
 0x26a   : > { %v3726_v31 = vrot.slane %v3598_v42, 6  ;;  %v3688_v55 = vsel %vm8274_vm8, %v3686_v28, %v3687_v10  ;;  %v3729_v22 = vrot.slane %v3599_v59, 6  ;;  %v5194_v17 = vrot.slane %v3603_v6, 10  ;;  %3825 = vst [vmem:[#allocation2 + $0xb0] sm:$0xf] %v3699_v53  ;;  %v10259_v51 = vld [vmem:[#allocation37_spill] sm:$0xff] }
 0x26b   : > { %v3702_v12 = vsel %vm8274_vm8, %v3700_v44, %v3701_v50  ;;  %v3716_v3 = vsel %vm8274_vm8, %v3714_v8, %v3715_v52  ;;  %v3740_v32 = vrot.slane %v3604_v0, 6  ;;  %3822 = vst [vmem:[#allocation2 + $0x84] sm:$0xf] %v3688_v55  ;;  %v3743_v34 = vrot.slane %v3605_v47, 6  ;;  %v9352_v0 = vld [vmem:[#allocation2 + $0x1a0] sm:$0xff]   ;;  %v10258_v47 = vld [vmem:[#allocation63_spill] sm:$0xff] }
 0x26c   : > { %v3727_v63 = vsel %vm8274_vm8, %v5192_v23, %v3726_v31  ;;  %v3728_v62 = vrot.slane %v3726_v31, 4  ;;  %3826 = vst [vmem:[#allocation2 + $0xb4] sm:$0xf] %v3702_v12  ;;  %v5670_v57 = vunpack.c.l.bf16 %v6289_v29  ;;  %v5671_v15 = vunpack.c.h.bf16 %v6289_v29  ;;  %v9361_v9 = vld [vmem:[%s9876_s8] ss:$0 sm:$0xff]  ;;  %v10261_v12 = vld [vmem:[#allocation67_spill] sm:$0xff] }
 0x26d   : > { %v5678_v41 = vunpack.c.l.bf16 %v6291_v40  ;;  %v3741_v54 = vsel %vm8274_vm8, %v5194_v17, %v3740_v32  ;;  %v3742_v7 = vrot.slane %v3740_v32, 4  ;;  %3829 = vst [vmem:[#allocation2 + $0xe0] sm:$0xf] %v3713_v60  ;;  %v5679_v39 = vunpack.c.h.bf16 %v6291_v40  ;;  %v10260_v40 = vld [vmem:[#allocation66_spill] sm:$0xff] }
 0x26e   : > { %v3730_v33 = vsel %vm8274_vm8, %v3728_v62, %v3729_v22  ;;  %3830 = vst [vmem:[#allocation2 + $0xe4] sm:$0xf] %v3716_v3  ;;  %v3920_v13 = vmul.f32 %v5670_v57, %v10253_v5  ;;  %v3921_v4 = vmul.f32 %v5671_v15, %v10253_v5  ;;  %v5502_v18 = vunpack.c.l.bf16 %v6251_v2 }
 0x26f   : > { %v3924_v45 = vmul.f32 %v5678_v41, %v10253_v5  ;;  %v4053_v56 = vmul.f32 %v5678_v41, %v10254_v25  ;;  %v3744_v46 = vsel %vm8274_vm8, %v3742_v7, %v3743_v34  ;;  %3833 = vst [vmem:[#allocation2 + $0x110] sm:$0xf] %v3727_v63  ;;  %v3925_v49 = vmul.f32 %v5679_v39, %v10253_v5 }
 0x270   : > { %v4054_v36 = vmul.f32 %v5679_v39, %v10254_v25  ;;  %v9348_v20 = vmul.f32 %v10256_v58, %v10255_v61  ;;  %3834 = vst [vmem:[#allocation2 + $0x114] sm:$0xf] %v3730_v33  ;;  %v3955_v42 = vadd.f32 %v10257_v43, %v3920_v13  ;;  %v3956_v59 = vadd.f32 %v10257_v43, %v3921_v4  ;;  %v10262_v13 = vld [vmem:[#allocation31_spill] sm:$0xff] }
 0x271   : > { %v5503_v6 = vunpack.c.h.bf16 %v6251_v2  ;;  %v9356_v21 = vmul.f32 %v10258_v47, %v10255_v61  ;;  %3837 = vst [vmem:[#allocation2 + $0x140] sm:$0xf] %v3741_v54  ;;  %v3959_v10 = vadd.f32 %v9361_v9, %v3924_v45  ;;  %v3960_v37 = vadd.f32 %v9361_v9, %v3925_v49 }
 0x272   : > { %v2064_v50 = vmul.f32 %v5502_v18, %v10259_v51  ;;  %3838 = vst [vmem:[#allocation2 + $0x144] sm:$0xf] %v3744_v46  ;;  %v6293_v35 = vld [vmem:[#allocation2 + $0x80] sm:$0xff]   ;;  %v4085_v14 = vadd.f32 %v4053_v56, %v3955_v42  ;;  %v2383_v11 = vunpack.c.l.bf16 %v9342_v19  ;;  %v2389_v28 = vunpack.c.l.bf16 %v9344_v16 }
 0x273   : > { %v2065_v52 = vmul.f32 %v5503_v6, %v10259_v51  ;;  %v5686_v53 = vunpack.c.l.bf16 %v6293_v35  ;;  %v5687_v44 = vunpack.c.h.bf16 %v6293_v35  ;;  %v6309_v29 = vld [vmem:[#allocation2 + $0xb0] sm:$0xff]   ;;  %v4086_v60 = vadd.f32 %v4054_v36, %v3956_v59  ;;  %v10263_v59 = vld [vmem:[#allocation52_spill] sm:$0xff] }
 0x274   : > { %v9370_v8 = vunpack.c.l.bf16 %v9352_v0  ;;  %v5750_v23 = vunpack.c.l.bf16 %v6309_v29  ;;  %v5751_v31 = vunpack.c.h.bf16 %v6309_v29  ;;  %v2096_v55 = vadd.f32 %v2064_v50, %v10260_v40 }
 0x275   : > { %v2097_v22 = vadd.f32 %v2065_v52, %v10261_v12  ;;  %v3928_v17 = vmul.f32 %v5686_v53, %v10253_v5  ;;  %v3929_v3 = vmul.f32 %v5687_v44, %v10253_v5  ;;  %v4057_v63 = vmul.f32 %v5686_v53, %v10254_v25  ;;  %v6325_v32 = vld [vmem:[#allocation2 + $0xe0] sm:$0xff]  }
 0x276   : > { %v4058_v62 = vmul.f32 %v5687_v44, %v10254_v25  ;;  %v4061_v34 = vmul.f32 %v5750_v23, %v10254_v25  ;;  %v4062_v57 = vmul.f32 %v5751_v31, %v10254_v25  ;;  %v9380_v15 = vunpack.c.l.bf16 %v6325_v32  ;;  %v2343_v52 = vld [vmem:[#allocation2 + $0x1a4] sm:$0x3] }
 0x277   : > { %v9382_v41 = vunpack.c.h.bf16 %v6325_v32  ;;  %v3963_v2 = vadd.f32 %v9361_v9, %v3928_v17  ;;  %v3964_v33 = vadd.f32 %v9361_v9, %v3929_v3  ;;  %v9386_v54 = vadd.f32 %v4057_v63, %v3959_v10  ;;  %v6341_v39 = vld [vmem:[#allocation2 + $0x110] sm:$0xff]  }
 0x278   : > { %v9388_v7 = vadd.f32 %v4058_v62, %v3960_v37  ;;  %v4182_v4 = vmul.f32 %v5686_v53, %v10262_v13  ;;  %v4183_v45 = vmul.f32 %v5687_v44, %v10262_v13  ;;  %v4190_v56 = vmul.f32 %v9380_v15, %v10262_v13  ;;  %v10265_v62 = vld [vmem:[#allocation44_spill] sm:$0xff] }
 0x279   : > { %v4191_v46 = vmul.f32 %v9382_v41, %v10262_v13  ;;  %v4093_v49 = vadd.f32 %v4061_v34, %v3963_v2  ;;  %v4094_v36 = vadd.f32 %v4062_v57, %v3964_v33  ;;  %v9396_v18 = vunpack.c.l.bf16 %v6341_v39  ;;  %v6357_v58 = vld [vmem:[#allocation2 + $0x140] sm:$0xff]  }
 0x27a   : > { %v9398_v19 = vunpack.c.h.bf16 %v6341_v39  ;;  %v4214_v43 = vadd.f32 %v4182_v4, %v4085_v14  ;;  %v4215_v42 = vadd.f32 %v4183_v45, %v4086_v60  ;;  %v4312_v6 = vmul.f32 %v5750_v23, %v10263_v59  ;;  %v10264_v23 = vld [vmem:[#allocation53_spill] sm:$0xff]  ;;  %v2520_v39 = vld [vmem:[#allocation2 + $0x16c] sm:$0x8] }
 0x27b   : > { %v4313_v47 = vmul.f32 %v5751_v31, %v10263_v59  ;;  %v4222_v10 = vadd.f32 %v4190_v56, %v4093_v49  ;;  %v4223_v37 = vadd.f32 %v4191_v46, %v4094_v36  ;;  %v4320_v50 = vmul.f32 %v9396_v18, %v10263_v59  ;;  %v2524_v56 = vld [vmem:[#allocation2 + $0x19c] sm:$0x8]  ;;  %v2525_v46 = vld [vmem:[#allocation2 + $0x1a4] sm:$0x7] }
 0x27c   : > { %v4321_v35 = vmul.f32 %v9398_v19, %v10263_v59  ;;  %v4344_v53 = vadd.f32 %v4312_v6, %v4214_v43  ;;  %v9406_v29 = vunpack.c.l.bf16 %v6357_v58  ;;  %v9408_v40 = vunpack.c.h.bf16 %v6357_v58 }
 0x27d   : > { %v4345_v44 = vadd.f32 %v4313_v47, %v4215_v42  ;;  %v4352_v14 = vadd.f32 %v4320_v50, %v4222_v10  ;;  %v4442_v31 = vmul.f32 %v9380_v15, %v10264_v23  ;;  %v4443_v12 = vmul.f32 %v9382_v41, %v10264_v23  ;;  %v10267_v50 = vld [vmem:[#allocation30_spill] sm:$0xff] }
 0x27e   : > { %v4353_v60 = vadd.f32 %v4321_v35, %v4223_v37  ;;  %v4450_v17 = vmul.f32 %v9406_v29, %v10264_v23  ;;  %v4451_v3 = vmul.f32 %v9408_v40, %v10264_v23  ;;  %v2391_v63 = vunpack.c.l.bf16 %v2343_v52  ;;  %v3103_v37 = vld [vmem:[#allocation2 + $0x1a0] sm:$0xe] }
 0x27f   : > { %v2432_v32 = vmul.f32 %v10265_v62, %v2383_v11  ;;  %v4474_v34 = vadd.f32 %v4442_v31, %v4344_v53  ;;  %v4475_v57 = vadd.f32 %v4443_v12, %v4345_v44  ;;  %v2226_v2 = vadd.f32 %v9348_v20, %v2096_v55  ;;  %v10266_v20 = vld [vmem:[#allocation65_spill] sm:$0xff]  ;;  %v3104_v44 = vld [vmem:[#allocation2 + $0x1a8] sm:$0x1] }
 0x280   : > { %v2227_v33 = vadd.f32 %v9356_v21, %v2097_v22  ;;  %v4482_v4 = vadd.f32 %v4450_v17, %v4352_v14  ;;  %v4483_v45 = vadd.f32 %v4451_v3, %v4353_v60  ;;  %v2438_v58 = vmul.f32 %v10265_v62, %v2389_v28  ;;  %v3100_v22 = vld [vmem:[#allocation2 + $0x178] sm:$0x1] }
 0x281   : > { %v5992_v49 = vpack.c.bf16 %v4475_v57, %v4474_v34  ;;  %v2439_v11 = vmul.f32 %v10265_v62, %v9370_v8  ;;  %v2440_v42 = vmul.f32 %v10265_v62, %v2391_v63  ;;  %v9428_v55 = vadd.f32 %v10266_v20, %v2432_v32 }
 0x282   : > { %v5642_v36 = vpack.c.bf16 %v2227_v33, %v2226_v2  ;;  %v6012_v43 = vpack.c.bf16 %v4483_v45, %v4482_v4  ;;  %v2552_v21 = vunpack.c.l.bf16 %v2520_v39  ;;  %v2489_v6 = vadd.f32 %v10266_v20, %v2438_v58  ;;  %v9459_v58 = vld [vmem:[#allocation2 + $0x1a0] sm:$0xc] }
 0x283   : > { %6369 = vst [vmem:[#allocation2 + $0x80] sm:$0xff] %v5992_v49   ;;  %v2490_v47 = vadd.f32 %v10266_v20, %v2439_v11  ;;  %v2556_v10 = vunpack.c.l.bf16 %v2524_v56  ;;  %v2557_v16 = vunpack.c.l.bf16 %v2525_v46  ;;  %v2491_v28 = vadd.f32 %v10266_v20, %v2440_v42 }
 0x284   : > { %6373 = vst [vmem:[#allocation2 + $0xe0] sm:$0xff] %v6012_v43   ;;  %v9434_v35 = vmul.f32 %v10267_v50, %v2552_v21  ;;  %v2603_v52 = vmul.f32 %v10267_v50, %v9370_v8  ;;  %v9439_v53 = vunpack.c.h.bf16 %v9352_v0  ;;  %v2894_v31 = vmul.f32 %v10243_v26, %v9370_v8 }
 0x285   : > { %6283 = vst [vmem:[#allocation2 + $0x170] sm:$0xff] %v5642_v36   ;;  %v2602_v14 = vmul.f32 %v10267_v50, %v2556_v10  ;;  %v2604_v60 = vmul.f32 %v10267_v50, %v2557_v16  ;;  %v3132_v12 = vunpack.c.l.bf16 %v3100_v22  ;;  %v3135_v32 = vunpack.c.l.bf16 %v3103_v37  ;;  %v9457_v36 = vld [vmem:[#allocation2 + $0x178] sm:$0x3] }
 0x286   : > { %v2714_v17 = vrot.slane %v9434_v35, 2  ;;  %v2725_v3 = vrot.slane %v2603_v52, 2  ;;  %v2895_v63 = vmul.f32 %v10243_v26, %v9439_v53  ;;  %v2972_v57 = vrot.slane %v2894_v31, 4 }
 0x287   : > { %v2724_v34 = vrot.slane %v2602_v14, 2  ;;  %v2727_v0 = vrot.slane %v2604_v60, 2  ;;  %v3136_v2 = vunpack.c.l.bf16 %v3104_v44  ;;  %v9449_v39 = vmul.f32 %v8185_v27, %v3132_v12 }
 0x288   : > { %v2973_v33 = vrot.slane %v2895_v63, 4  ;;  %v3181_v4 = vmul.f32 %v8185_v27, %v3135_v32  ;;  %v3182_v8 = vmul.f32 %v8185_v27, %v9439_v53  ;;  %v3470_v12 = vunpack.c.l.bf16 %v9457_v36 }
 0x289   : > { %v2726_v45 = vsel %vm1198_vm1, %v2724_v34, %v2725_v3  ;;  %v2728_v56 = vsel %vm1198_vm1, %v2725_v3, %v2727_v0  ;;  %v2828_v46 = vadd.f32 %v2727_v0, %v2491_v28  ;;  %v3183_v49 = vmul.f32 %v8185_v27, %v3136_v2 }
 0x28a   : > { %v5312_v11 = vld [vmem:[#allocation2 + $0x80] sm:$0xff]  ;;  %v2826_v43 = vadd.f32 %v2726_v45, %v2489_v6  ;;  %v2827_v42 = vadd.f32 %v2728_v56, %v2490_v47  ;;  %v2974_v20 = vsel %vm2932_vm5, %v2972_v57, %v2973_v33  ;;  %v3297_v21 = vrot.slane %v9449_v39, 6 }
 0x28b   : > { %v5316_v22 = vld [vmem:[#allocation2 + $0xe0] sm:$0xff]  ;;  %v3070_v10 = vadd.f32 %v2973_v33, %v2828_v46  ;;  %v3304_v16 = vrot.slane %v3181_v4, 6  ;;  %v3305_v37 = vrot.slane %v3182_v8, 6  ;;  %v3307_v52 = vrot.slane %v3183_v49, 6  ;;  %4777 = vmatmul.bf16.gmra.mxu0 %v5312_v11 }
 0x28c   : > { %v2336_v28 = vld [vmem:[#allocation2 + $0x170] sm:$0xff]   ;;  %v3068_v60 = vadd.f32 %v2972_v57, %v2826_v43  ;;  %v3069_v31 = vadd.f32 %v2974_v20, %v2827_v42  ;;  %v3473_v6 = vunpack.c.l.bf16 %v9459_v58  ;;  %4797 = vmatmul.bf16.gmra.mxu1 %v5316_v22  ;;  %v9478_v58 = vld [vmem:[%s9874_s6] ss:$0 sm:$0xff] }
 0x28d   : > { %v2337_v44 = vld [vmem:[#allocation2 + $0x174] sm:$0x3]  ;;  %v2384_v47 = vunpack.c.l.bf16 %v2336_v28  ;;  %v2862_v32 = vunpack.c.h.bf16 %v2336_v28  ;;  %v3099_v34 = vld [vmem:[#allocation2 + $0x170] sm:$0xe]  ;;  %v3306_v2 = vsel %vm3238_vm6, %v3304_v16, %v3305_v37  ;;  %v3308_v33 = vsel %vm3238_vm6, %v3305_v37, %v3307_v52 }
 0x28e   : > { %v2521_v14 = vld [vmem:[#allocation2 + $0x174] sm:$0x7]  ;;  %v2385_v3 = vunpack.c.l.bf16 %v2337_v44  ;;  %v3131_v0 = vunpack.c.l.bf16 %v3099_v34  ;;  %v3406_v39 = vadd.f32 %v3304_v16, %v3068_v60  ;;  %v3437_v28 = vld [vmem:[#allocation2 + $0x170] sm:$0xc] }
 0x28f   : > { %v2553_v63 = vunpack.c.l.bf16 %v2521_v14  ;;  %v2433_v4 = vmul.f32 %v10265_v62, %v2384_v47  ;;  %v2597_v8 = vmul.f32 %v10267_v50, %v2384_v47  ;;  %v2890_v56 = vmul.f32 %v10243_v26, %v2384_v47 }
 0x290   : > { %v2434_v57 = vmul.f32 %v10265_v62, %v2385_v3  ;;  %v2891_v46 = vmul.f32 %v10243_v26, %v2862_v32  ;;  %v3175_v49 = vmul.f32 %v8185_v27, %v3131_v0  ;;  %v3176_v36 = vmul.f32 %v8185_v27, %v2862_v32  ;;  %v3442_v3 = vld [vmem:[#allocation2 + $0x1a8] sm:$0x3] }
 0x291   : > { %v2598_v45 = vmul.f32 %v10267_v50, %v2553_v63  ;;  %v2484_v11 = vadd.f32 %v9478_v58, %v2433_v4  ;;  %v2715_v42 = vrot.slane %v2597_v8, 2  ;;  %v2966_v22 = vrot.slane %v2890_v56, 4 }
 0x292   : > { %v2485_v43 = vadd.f32 %v9478_v58, %v2434_v57  ;;  %v2967_v16 = vrot.slane %v2891_v46, 4  ;;  %v3294_v37 = vrot.slane %v3175_v49, 6  ;;  %v3295_v52 = vrot.slane %v3176_v36, 6 }
 0x293   : > { %v2717_v20 = vrot.slane %v2598_v45, 2  ;;  %v2716_v44 = vsel %vm1198_vm1, %v2714_v17, %v2715_v42  ;;  %v3407_v47 = vadd.f32 %v3306_v2, %v3069_v31  ;;  %v3408_v45 = vadd.f32 %v3308_v33, %v3070_v10 }
 0x294   : > { %v2820_v63 = vadd.f32 %v2716_v44, %v9428_v55  ;;  %v2968_v0 = vsel %vm2932_vm5, %v2966_v22, %v2967_v16  ;;  %v3296_v4 = vsel %vm3238_vm6, %v3294_v37, %v3295_v52  ;;  %v3298_v8 = vsel %vm3238_vm6, %v3295_v52, %v3297_v21 }
 0x295   : > { %v2718_v14 = vsel %vm1198_vm1, %v2715_v42, %v2717_v20  ;;  %v2822_v60 = vadd.f32 %v2717_v20, %v2485_v43  ;;  %v3469_v56 = vunpack.c.l.bf16 %v3437_v28  ;;  %v3474_v17 = vunpack.c.l.bf16 %v3442_v3  ;;  %v10269_v3 = vld [vmem:[#allocation64_spill] sm:$0xff] }
 0x296   : > { %v2821_v34 = vadd.f32 %v2718_v14, %v2484_v11  ;;  %v3062_v35 = vadd.f32 %v2966_v22, %v2820_v63  ;;  %v3514_v49 = vmul.f32 %v8242_v48, %v2862_v32  ;;  %v3515_v55 = vmul.f32 %v8242_v48, %v3470_v12 }
 0x297   : > { %v3064_v57 = vadd.f32 %v2967_v16, %v2822_v60  ;;  %v3513_v31 = vmul.f32 %v8242_v48, %v3469_v56  ;;  %v3519_v2 = vmul.f32 %v8242_v48, %v3473_v6  ;;  %v3520_v42 = vmul.f32 %v8242_v48, %v9439_v53  ;;  %v10268_v60 = vld [vmem:[#allocation21_spill] sm:$0xff] }
 0x298   : > { %v3063_v46 = vadd.f32 %v2968_v0, %v2821_v34  ;;  %v3400_v11 = vadd.f32 %v3294_v37, %v3062_v35  ;;  %v3521_v21 = vmul.f32 %v8242_v48, %v3474_v17  ;;  %v3936_v52 = vmul.f32 %v9380_v15, %v10253_v5 }
 0x299   : > { %v3402_v36 = vadd.f32 %v3298_v8, %v3064_v57  ;;  %v3567_v33 = vadd.f32 %v3519_v2, %v3406_v39  ;;  %v3568_v16 = vadd.f32 %v3520_v42, %v3407_v47  ;;  %v3937_v12 = vmul.f32 %v9382_v41, %v10253_v5  ;;  %v10270_v39 = vld [vmem:[#allocation29_spill] sm:$0xff]  ;;  %v6255_v2 = vld [vmem:[#allocation2 + $0x1d0] sm:$0xff]  }
 0x29a   : > { %v3401_v43 = vadd.f32 %v3296_v4, %v3063_v46  ;;  %v3561_v20 = vadd.f32 %v3513_v31, %v3400_v11  ;;  %v3569_v32 = vadd.f32 %v3521_v21, %v3408_v45  ;;  %v1940_v63 = vmul.f32 %v10269_v3, %v10268_v60  ;;  %v10271_v11 = vld [vmem:[#allocation61_spill] sm:$0xff] }
 0x29b   : > { %v3563_v10 = vadd.f32 %v3515_v55, %v3402_v36  ;;  %v3615_v37 = vpack.c.bf16 %v3567_v33, %v3567_v33  ;;  %v3616_v14 = vpack.c.bf16 %v3568_v16, %v3568_v16  ;;  %v1941_v34 = vmul.f32 %v10270_v39, %v10268_v60  ;;  %v6552_v33 = vld [vmem:[%s9872_s4] ss:$0 sm:$0xff] }
 0x29c   : > { %v3562_v22 = vadd.f32 %v3514_v49, %v3401_v43  ;;  %v3609_v28 = vpack.c.bf16 %v3561_v20, %v3561_v20  ;;  %v3617_v53 = vpack.c.bf16 %v3569_v32, %v3569_v32  ;;  %v3971_v56 = vadd.f32 %v9361_v9, %v3936_v52  ;;  %v2347_v52 = vld [vmem:[#allocation2 + $0x1cc] sm:$0xc] }
 0x29d   : > { %v3611_v6 = vpack.c.bf16 %v3563_v10, %v3563_v10  ;;  %v5198_v0 = vrot.slane %v3615_v37, 10  ;;  %v3768_v8 = vrot.slane %v3616_v14, 6  ;;  %v3972_v35 = vadd.f32 %v9361_v9, %v3937_v12  ;;  %v2528_v10 = vld [vmem:[#allocation2 + $0x1cc] sm:$0x8]  ;;  %v3108_v12 = vld [vmem:[#allocation2 + $0x1d8] sm:$0x1] }
 0x29e   : > { %v3610_v44 = vpack.c.bf16 %v3562_v22, %v3562_v22  ;;  %v5196_v4 = vrot.slane %v3609_v28, 10  ;;  %v3771_v45 = vrot.slane %v3617_v53, 6  ;;  %v4069_v46 = vmul.f32 %v9396_v18, %v10254_v25  ;;  %v10272_v14 = vld [vmem:[#allocation68_spill] sm:$0xff] }
 0x29f   : > { %v3757_v47 = vrot.slane %v3611_v6, 6  ;;  %v4070_v17 = vmul.f32 %v9398_v19, %v10254_v25  ;;  %v3769_v31 = vsel %vm8274_vm8, %v5198_v0, %v3768_v8  ;;  %v3770_v55 = vrot.slane %v3768_v8, 4 }
 0x2a0   : > { %v3754_v57 = vrot.slane %v3610_v44, 6  ;;  %v9517_v43 = vmul.f32 %v10271_v11, %v10263_v59  ;;  %3845 = vst [vmem:[#allocation2 + $0x1a0] sm:$0xf] %v3769_v31  ;;  %v1975_v20 = vadd.f32 %v6552_v33, %v1940_v63  ;;  %v1976_v22 = vadd.f32 %v6552_v33, %v1941_v34 }
 0x2a1   : > { %v3772_v21 = vsel %vm8274_vm8, %v3770_v55, %v3771_v45  ;;  %v5518_v16 = vunpack.c.l.bf16 %v6255_v2  ;;  %v5519_v32 = vunpack.c.h.bf16 %v6255_v2  ;;  %v4101_v6 = vadd.f32 %v4069_v46, %v3971_v56 }
 0x2a2   : > { %v3755_v49 = vsel %vm8274_vm8, %v5196_v4, %v3754_v57  ;;  %v3756_v36 = vrot.slane %v3754_v57, 4  ;;  %3846 = vst [vmem:[#allocation2 + $0x1a4] sm:$0xf] %v3772_v21  ;;  %v4102_v37 = vadd.f32 %v4070_v17, %v3972_v35  ;;  %v4198_v28 = vmul.f32 %v9406_v29, %v10262_v13 }
 0x2a3   : > { %3841 = vst [vmem:[#allocation2 + $0x170] sm:$0xf] %v3755_v49  ;;  %v4199_v44 = vmul.f32 %v9408_v40, %v10262_v13  ;;  %v10273_v53 = vunpack.c.l.bf16 %v10272_v14  ;;  %v10274_v3 = vunpack.c.h.bf16 %v10272_v14  ;;  %v2072_v39 = vmul.f32 %v5518_v16, %v10259_v51 }
 0x2a4   : > { %v3758_v42 = vsel %vm8274_vm8, %v3756_v36, %v3757_v47  ;;  %v2073_v34 = vmul.f32 %v5519_v32, %v10259_v51  ;;  %v10275_v47 = vld [vmem:[#allocation62_spill] sm:$0xff]  ;;  %v2395_v4 = vunpack.c.l.bf16 %v2347_v52  ;;  %v2560_v57 = vunpack.c.l.bf16 %v2528_v10 }
 0x2a5   : > { %3842 = vst [vmem:[#allocation2 + $0x174] sm:$0xf] %v3758_v42  ;;  %v2202_v60 = vmul.f32 %v10273_v53, %v10255_v61  ;;  %v2203_v63 = vmul.f32 %v10274_v3, %v10255_v61  ;;  %v9540_v0 = vmul.f32 %v10275_v47, %v10263_v59  ;;  %v3140_v8 = vunpack.c.l.bf16 %v3108_v12  ;;  %v3446_v61 = vld [vmem:[#allocation2 + $0x1d8] sm:$0x3] }
 0x2a6   : > { %v3944_v45 = vmul.f32 %v9406_v29, %v10253_v5  ;;  %v3945_v56 = vmul.f32 %v9408_v40, %v10253_v5  ;;  %v2104_v35 = vadd.f32 %v2072_v39, %v1975_v20  ;;  %v2105_v46 = vadd.f32 %v2073_v34, %v1976_v22 }
 0x2a7   : > { %v4073_v17 = vmul.f32 %v9406_v29, %v10254_v25  ;;  %v4074_v51 = vmul.f32 %v9408_v40, %v10254_v25  ;;  %v4230_v49 = vadd.f32 %v4198_v28, %v4101_v6  ;;  %v4231_v36 = vadd.f32 %v4199_v44, %v4102_v37 }
 0x2a8   : > { %v9552_v31 = vmul.f32 %v9406_v29, %v10263_v59  ;;  %v9556_v55 = vmul.f32 %v9408_v40, %v10263_v59  ;;  %v2234_v2 = vadd.f32 %v2202_v60, %v2104_v35  ;;  %v2235_v11 = vadd.f32 %v2203_v63, %v2105_v46 }
 0x2a9   : > { %v2444_v21 = vmul.f32 %v10265_v62, %v2395_v4  ;;  %v9560_v10 = vmul.f32 %v10267_v50, %v2560_v57  ;;  %v9563_v33 = vmul.f32 %v8185_v27, %v3140_v8  ;;  %v3478_v20 = vunpack.c.l.bf16 %v3446_v61  ;;  %v6361_v16 = vld [vmem:[#allocation2 + $0x1a0] sm:$0xff]  }
 0x2aa   : > { %v5662_v32 = vpack.c.bf16 %v2235_v11, %v2234_v2  ;;  %v3940_v40 = vmul.f32 %v9396_v18, %v10253_v5  ;;  %v9571_v52 = vunpack.c.l.bf16 %v6361_v16  ;;  %v9573_v12 = vunpack.c.h.bf16 %v6361_v16 }
 0x2ab   : > { %v3941_v6 = vmul.f32 %v9398_v19, %v10253_v5  ;;  %v3979_v37 = vadd.f32 %v9361_v9, %v3944_v45  ;;  %v3980_v18 = vadd.f32 %v9361_v9, %v3945_v56  ;;  %v2734_v11 = vrot.slane %v9560_v10, 2 }
 0x2ac   : > { %v6345_v42 = vld [vmem:[#allocation2 + $0x170] sm:$0xff]   ;;  %6287 = vst [vmem:[#allocation2 + $0x1d0] sm:$0xff] %v5662_v32   ;;  %v3975_v14 = vadd.f32 %v9361_v9, %v3940_v40  ;;  %v4458_v53 = vmul.f32 %v9571_v52, %v10264_v23  ;;  %v4459_v60 = vmul.f32 %v9573_v12, %v10264_v23  ;;  %v4206_v61 = vmul.f32 %v9571_v52, %v10262_v13 }
 0x2ad   : > { %v9565_v22 = vunpack.c.l.bf16 %v6345_v42  ;;  %v9567_v29 = vunpack.c.h.bf16 %v6345_v42  ;;  %v3976_v19 = vadd.f32 %v9361_v9, %v3941_v6  ;;  %v4332_v42 = vmul.f32 %v9571_v52, %v10263_v59 }
 0x2ae   : > { %v4105_v47 = vadd.f32 %v4073_v17, %v3975_v14  ;;  %v4207_v17 = vmul.f32 %v9573_v12, %v10262_v13  ;;  %v4333_v16 = vmul.f32 %v9573_v12, %v10263_v59  ;;  %v2495_v6 = vadd.f32 %v9478_v58, %v2444_v21 }
 0x2af   : > { %v4328_v28 = vmul.f32 %v9565_v22, %v10263_v59  ;;  %v4329_v44 = vmul.f32 %v9567_v29, %v10263_v59  ;;  %v4077_v3 = vmul.f32 %v9565_v22, %v10254_v25  ;;  %v4078_v34 = vmul.f32 %v9567_v29, %v10254_v25 }
 0x2b0   : > { %v4106_v4 = vadd.f32 %v4074_v51, %v3976_v19  ;;  %v4202_v8 = vmul.f32 %v9565_v22, %v10262_v13  ;;  %v4203_v45 = vmul.f32 %v9567_v29, %v10262_v13 }
 0x2b1   : > { %v4360_v63 = vadd.f32 %v4328_v28, %v4230_v49  ;;  %v4361_v39 = vadd.f32 %v4329_v44, %v4231_v36  ;;  %v4109_v57 = vadd.f32 %v4077_v3, %v3979_v37  ;;  %v4110_v46 = vadd.f32 %v4078_v34, %v3980_v18 }
 0x2b2   : > { %v9600_v49 = vmul.f32 %v8242_v48, %v3478_v20  ;;  %v4234_v51 = vadd.f32 %v4202_v8, %v4105_v47  ;;  %v4235_v36 = vadd.f32 %v4203_v45, %v4106_v4  ;;  %v3317_v37 = vrot.slane %v9563_v33, 6 }
 0x2b3   : > { %v4490_v56 = vadd.f32 %v4458_v53, %v4360_v63  ;;  %v4491_v35 = vadd.f32 %v4459_v60, %v4361_v39  ;;  %v2348_v32 = vld [vmem:[#allocation2 + $0x1d0] sm:$0xff]   ;;  %v9611_v28 = vadd.f32 %v4206_v61, %v4109_v57  ;;  %v9613_v44 = vadd.f32 %v4207_v17, %v4110_v46 }
 0x2b4   : > { %v2349_v40 = vld [vmem:[#allocation2 + $0x1d4] sm:$0x3]  ;;  %v2396_v14 = vunpack.c.l.bf16 %v2348_v32  ;;  %v2866_v53 = vunpack.c.h.bf16 %v2348_v32  ;;  %v3107_v60 = vld [vmem:[#allocation2 + $0x1d0] sm:$0xe]  ;;  %v9615_v39 = vadd.f32 %v4332_v42, %v4234_v51  ;;  %v9617_v34 = vadd.f32 %v4333_v16, %v4235_v36  ;;  %v9629_v42 = vld [vmem:[#allocation2 + $0x200] sm:$0xff]  }
 0x2b5   : > { %v6032_v2 = vpack.c.bf16 %v4491_v35, %v4490_v56  ;;  %v2529_v20 = vld [vmem:[#allocation2 + $0x1d4] sm:$0x7]  ;;  %v2397_v10 = vunpack.c.l.bf16 %v2349_v40  ;;  %v3445_v19 = vld [vmem:[#allocation2 + $0x1d0] sm:$0xc]  ;;  %v3139_v3 = vunpack.c.l.bf16 %v3107_v60 }
 0x2b6   : > { %v2561_v18 = vunpack.c.l.bf16 %v2529_v20  ;;  %v3477_v63 = vunpack.c.l.bf16 %v3445_v19  ;;  %v2445_v21 = vmul.f32 %v10265_v62, %v2396_v14  ;;  %v2609_v47 = vmul.f32 %v10267_v50, %v2396_v14 }
 0x2b7   : > { %6377 = vst [vmem:[#allocation2 + $0x140] sm:$0xff] %v6032_v2   ;;  %v2446_v33 = vmul.f32 %v10265_v62, %v2397_v10  ;;  %v2898_v57 = vmul.f32 %v10243_v26, %v2396_v14  ;;  %v2899_v8 = vmul.f32 %v10243_v26, %v2866_v53  ;;  %v3187_v45 = vmul.f32 %v8185_v27, %v3139_v3 }
 0x2b8   : > { %v2610_v4 = vmul.f32 %v10267_v50, %v2561_v18  ;;  %v3188_v56 = vmul.f32 %v8185_v27, %v2866_v53  ;;  %v2496_v35 = vadd.f32 %v9478_v58, %v2445_v21  ;;  %v2735_v61 = vrot.slane %v2609_v47, 2  ;;  %v6294_v27 = vld [vmem:[#allocation2 + $0x98] sm:$0xff]  }
 0x2b9   : > { %v2497_v46 = vadd.f32 %v9478_v58, %v2446_v33  ;;  %v2978_v51 = vrot.slane %v2898_v57, 4  ;;  %v2979_v62 = vrot.slane %v2899_v8, 4  ;;  %v3314_v36 = vrot.slane %v3187_v45, 6  ;;  %v9636_v18 = vld [vmem:[#allocation2 + $0x158] sm:$0xff]  }
 0x2ba   : > { %v2737_v17 = vrot.slane %v2610_v4, 2  ;;  %v3315_v2 = vrot.slane %v3188_v56, 6  ;;  %v2736_v50 = vsel %vm1198_vm1, %v2734_v11, %v2735_v61  ;;  %v3525_v32 = vmul.f32 %v8242_v48, %v3477_v63  ;;  %6378 = vst [vmem:[#allocation2 + $0x158] sm:$0xff] %v6037_v1   ;;  %v10277_v56 = vld [vmem:[#allocation57_spill] sm:$0xff] }
 0x2bb   : > { %v2832_v20 = vadd.f32 %v2736_v50, %v2495_v6  ;;  %v2980_v58 = vsel %vm2932_vm5, %v2978_v51, %v2979_v62  ;;  %v3526_v11 = vmul.f32 %v8242_v48, %v2866_v53  ;;  %v5974_v3 = vunpack.c.l.bf16 %v9629_v42  ;;  %v10276_v48 = vld [vmem:[#allocation35_spill] sm:$0xff]  ;;  %v10278_v50 = vld [vmem:[#allocation58_spill] sm:$0xff] }
 0x2bc   : > { %v2738_v26 = vsel %vm1198_vm1, %v2735_v61, %v2737_v17  ;;  %v2834_v16 = vadd.f32 %v2737_v17, %v2497_v46  ;;  %v3316_v10 = vsel %vm3238_vm6, %v3314_v36, %v3315_v2  ;;  %v3318_v19 = vsel %vm3238_vm6, %v3315_v2, %v3317_v37 }
 0x2bd   : > { %v2833_v14 = vadd.f32 %v2738_v26, %v2496_v35  ;;  %v3074_v6 = vadd.f32 %v2978_v51, %v2832_v20  ;;  %v5975_v21 = vunpack.c.h.bf16 %v9629_v42  ;;  %v5690_v33 = vunpack.c.l.bf16 %v6294_v27 }
 0x2be   : > { %v5320_v40 = vld [vmem:[#allocation2 + $0x140] sm:$0xff]  ;;  %v3076_v60 = vadd.f32 %v2979_v62, %v2834_v16  ;;  %v9648_v4 = vmul.f32 %v5974_v3, %v10264_v23  ;;  %v5691_v37 = vunpack.c.h.bf16 %v6294_v27  ;;  %v4063_v53 = vmul.f32 %v10276_v48, %v10254_v25  ;;  %v6354_v16 = vld [vmem:[#allocation2 + $0xf8] sm:$0xff]  }
 0x2bf   : > { %4817 = vmatmul.bf16.gmra.mxu2 %v5320_v40  ;;  %v3075_v63 = vadd.f32 %v2980_v58, %v2833_v14  ;;  %v3412_v57 = vadd.f32 %v3314_v36, %v3074_v6  ;;  %v9655_v30 = vmul.f32 %v5975_v21, %v10264_v23  ;;  %v3930_v38 = vmul.f32 %v5690_v33, %v10253_v5  ;;  %v10279_v14 = vld [vmem:[#allocation59_spill] sm:$0xff] }
 0x2c0   : > { %v3414_v47 = vadd.f32 %v3318_v19, %v3076_v60  ;;  %v3931_v45 = vmul.f32 %v5691_v37, %v10253_v5  ;;  %v4064_v35 = vmul.f32 %v10277_v56, %v10254_v25  ;;  %v4184_v46 = vmul.f32 %v5690_v33, %v10262_v13 }
 0x2c1   : > { %v3413_v8 = vadd.f32 %v3316_v10, %v3075_v63  ;;  %v3573_v61 = vadd.f32 %v3525_v32, %v3412_v57  ;;  %v3965_v51 = vadd.f32 %v9361_v9, %v3930_v38  ;;  %v4185_v62 = vmul.f32 %v5691_v37, %v10262_v13  ;;  %v10280_v57 = vld [vmem:[#allocation60_spill] sm:$0xff] }
 0x2c2   : > { %v3575_v1 = vadd.f32 %v9600_v49, %v3414_v47  ;;  %v3966_v2 = vadd.f32 %v9361_v9, %v3931_v45  ;;  %v4216_v26 = vadd.f32 %v4184_v46, %v10278_v50  ;;  %v4314_v49 = vmul.f32 %v10276_v48, %v10263_v59  ;;  %v6350_v50 = vld [vmem:[#allocation2 + $0x1e8] sm:$0xff]  }
 0x2c3   : > { %v3574_v17 = vadd.f32 %v3526_v11, %v3413_v8  ;;  %v3621_v27 = vpack.c.bf16 %v3573_v61, %v3573_v61  ;;  %v4095_v20 = vadd.f32 %v4063_v53, %v3965_v51  ;;  %v4217_v58 = vadd.f32 %v4185_v62, %v10279_v14  ;;  %v6334_v61 = vld [vmem:[#allocation2 + $0x1b8] sm:$0xff]  }
 0x2c4   : > { %v3623_v36 = vpack.c.bf16 %v3575_v1, %v3575_v1  ;;  %v4096_v10 = vadd.f32 %v4064_v35, %v3966_v2  ;;  %v4315_v60 = vmul.f32 %v10277_v56, %v10263_v59  ;;  %v4346_v19 = vadd.f32 %v4314_v49, %v4216_v26 }
 0x2c5   : > { %v3622_v40 = vpack.c.bf16 %v3574_v17, %v3574_v17  ;;  %v5200_v11 = vrot.slane %v3621_v27, 10  ;;  %v5930_v63 = vunpack.c.l.bf16 %v6354_v16  ;;  %v5931_v33 = vunpack.c.h.bf16 %v6354_v16  ;;  %v10281_v27 = vld [vmem:[#allocation49_spill] sm:$0xff] }
 0x2c6   : > { %v3785_v32 = vrot.slane %v3623_v36, 6  ;;  %v4347_v47 = vadd.f32 %v4315_v60, %v4217_v58  ;;  %v5946_v37 = vunpack.c.l.bf16 %v9636_v18  ;;  %v5947_v48 = vunpack.c.h.bf16 %v9636_v18  ;;  %v5321_v36 = vld [vmem:[#allocation2 + $0x158] sm:$0xff] }
 0x2c7   : > { %v3782_v6 = vrot.slane %v3622_v40, 6  ;;  %v4079_v53 = vmul.f32 %v10280_v57, %v10254_v25  ;;  %v4444_v1 = vmul.f32 %v5930_v63, %v10264_v23  ;;  %v4445_v45 = vmul.f32 %v5931_v33, %v10264_v23 }
 0x2c8   : > { %v4192_v56 = vmul.f32 %v5930_v63, %v10262_v13  ;;  %v4193_v35 = vmul.f32 %v5931_v33, %v10262_v13  ;;  %v4452_v46 = vmul.f32 %v5946_v37, %v10264_v23  ;;  %v4453_v18 = vmul.f32 %v5947_v48, %v10264_v23  ;;  %v6366_v63 = vld [vmem:[#allocation2 + $0x218] sm:$0xff]  }
 0x2c9   : > { %v3783_v8 = vsel %vm8274_vm8, %v5200_v11, %v3782_v6  ;;  %v3784_v38 = vrot.slane %v3782_v6, 4  ;;  %v4476_v51 = vadd.f32 %v4444_v1, %v4346_v19  ;;  %v4477_v62 = vadd.f32 %v4445_v45, %v4347_v47 }
 0x2ca   : > { %3849 = vst [vmem:[#allocation2 + $0x1d0] sm:$0xf] %v3783_v8  ;;  %v3946_v2 = vmul.f32 %v5946_v37, %v10253_v5  ;;  %v4224_v26 = vadd.f32 %v4192_v56, %v4095_v20  ;;  %v4225_v49 = vadd.f32 %v4193_v35, %v4096_v10  ;;  %v3947_v16 = vmul.f32 %v5947_v48, %v10253_v5  ;;  %v6295_v37 = vld [vmem:[#allocation2 + $0xb0] sm:$0xff]  }
 0x2cb   : > { %v3786_v17 = vsel %vm8274_vm8, %v3784_v38, %v3785_v32  ;;  %v4080_v40 = vmul.f32 %v10281_v27, %v10254_v25  ;;  %v5997_v14 = vpack.c.bf16 %v4477_v62, %v4476_v51  ;;  %v5850_v60 = vunpack.c.l.bf16 %v6334_v61 }
 0x2cc   : > { %3850 = vst [vmem:[#allocation2 + $0x1d4] sm:$0xf] %v3786_v17  ;;  %v3981_v58 = vadd.f32 %v9361_v9, %v3946_v2  ;;  %v5851_v24 = vunpack.c.h.bf16 %v6334_v61  ;;  %v4354_v32 = vadd.f32 %v9517_v43, %v4224_v26  ;;  %v4355_v19 = vadd.f32 %v9540_v0, %v4225_v49 }
 0x2cd   : > { %v3982_v11 = vadd.f32 %v9361_v9, %v3947_v16  ;;  %v5914_v6 = vunpack.c.l.bf16 %v6350_v50  ;;  %6370 = vst [vmem:[#allocation2 + $0x98] sm:$0xff] %v5997_v14   ;;  %v4208_v10 = vmul.f32 %v5850_v60, %v10262_v13  ;;  %v5915_v47 = vunpack.c.h.bf16 %v6350_v50 }
 0x2ce   : > { %v4111_v20 = vadd.f32 %v4079_v53, %v3981_v58  ;;  %v4209_v33 = vmul.f32 %v5851_v24, %v10262_v13  ;;  %v4484_v48 = vadd.f32 %v4452_v46, %v4354_v32  ;;  %v4485_v57 = vadd.f32 %v4453_v18, %v4355_v19 }
 0x2cf   : > { %4822 = vmatmul.bf16.gmra.mxu2 %v5321_v36  ;;  %v4112_v8 = vadd.f32 %v4080_v40, %v3982_v11  ;;  %v4338_v43 = vmul.f32 %v5914_v6, %v10263_v59  ;;  %v4339_v0 = vmul.f32 %v5915_v47, %v10263_v59  ;;  %v5978_v1 = vunpack.c.l.bf16 %v6366_v63 }
 0x2d0   : > { %v4240_v38 = vadd.f32 %v4208_v10, %v4111_v20  ;;  %v5979_v45 = vunpack.c.h.bf16 %v6366_v63  ;;  %v6017_v56 = vpack.c.bf16 %v4485_v57, %v4484_v48  ;;  %v5694_v61 = vunpack.c.l.bf16 %v6295_v37 }
 0x2d1   : > { %v4241_v35 = vadd.f32 %v4209_v33, %v4112_v8  ;;  %v5695_v53 = vunpack.c.h.bf16 %v6295_v37  ;;  %v4468_v62 = vmul.f32 %v5978_v1, %v10264_v23  ;;  %v4065_v46 = vmul.f32 %v9380_v15, %v10254_v25  ;;  %v6355_v37 = vld [vmem:[#allocation2 + $0x110] sm:$0xff]  }
 0x2d2   : > { %v4370_v51 = vadd.f32 %v4338_v43, %v4240_v38  ;;  %v4469_v36 = vmul.f32 %v5979_v45, %v10264_v23  ;;  %6374 = vst [vmem:[#allocation2 + $0xf8] sm:$0xff] %v6017_v56   ;;  %v3932_v26 = vmul.f32 %v5694_v61, %v10253_v5  ;;  %v4066_v27 = vmul.f32 %v9382_v41, %v10254_v25 }
 0x2d3   : > { %v6349_v17 = vld [vmem:[#allocation2 + $0x1d0] sm:$0xff]   ;;  %v4371_v50 = vadd.f32 %v4339_v0, %v4241_v35  ;;  %v3933_v16 = vmul.f32 %v5695_v53, %v10253_v5  ;;  %v4186_v40 = vmul.f32 %v5694_v61, %v10262_v13  ;;  %v4187_v63 = vmul.f32 %v5695_v53, %v10262_v13 }
 0x2d4   : > { %v5910_v18 = vunpack.c.l.bf16 %v6349_v17  ;;  %v9702_v2 = vunpack.c.h.bf16 %v6349_v17  ;;  %v4500_v49 = vadd.f32 %v4468_v62, %v4370_v51  ;;  %v5313_v32 = vld [vmem:[#allocation2 + $0x98] sm:$0xff]  ;;  %v3967_v11 = vadd.f32 %v9361_v9, %v3932_v26 }
 0x2d5   : > { %v4501_v19 = vadd.f32 %v4469_v36, %v4371_v50  ;;  %v3968_v6 = vadd.f32 %v9361_v9, %v3933_v16  ;;  %4782 = vmatmul.bf16.gmra.mxu0 %v5313_v32  ;;  %v4218_v43 = vadd.f32 %v4186_v40, %v9386_v54  ;;  %v5935_v56 = vunpack.c.h.bf16 %v6355_v37  ;;  %v6367_v40 = vld [vmem:[#allocation2 + $0x230] sm:$0xff]  }
 0x2d6   : > { %v4336_v14 = vmul.f32 %v5910_v18, %v10263_v59  ;;  %v4337_v58 = vmul.f32 %v9702_v2, %v10263_v59  ;;  %v4462_v60 = vmul.f32 %v5910_v18, %v10264_v23  ;;  %v4463_v24 = vmul.f32 %v9702_v2, %v10264_v23 }
 0x2d7   : > { %v6057_v48 = vpack.c.bf16 %v4501_v19, %v4500_v49  ;;  %v4097_v57 = vadd.f32 %v4065_v46, %v3967_v11  ;;  %v4098_v8 = vadd.f32 %v4066_v27, %v3968_v6  ;;  %v4454_v54 = vmul.f32 %v9565_v22, %v10264_v23  ;;  %v4773_v6 = vpop.f32.mrf.mxu0 }
 0x2d8   : > { %v4368_v20 = vadd.f32 %v4336_v14, %v9611_v28  ;;  %v4369_v10 = vadd.f32 %v4337_v58, %v9613_v44  ;;  %v4494_v33 = vadd.f32 %v4462_v60, %v9615_v39  ;;  %v4495_v47 = vadd.f32 %v4463_v24, %v9617_v34 }
 0x2d9   : > { %v4219_v28 = vadd.f32 %v4187_v63, %v9388_v7  ;;  %v5317_v45 = vld [vmem:[#allocation2 + $0xf8] sm:$0xff]  ;;  %6382 = vst [vmem:[#allocation2 + $0x1b8] sm:$0xff] %v6057_v48   ;;  %v4316_v44 = vmul.f32 %v9380_v15, %v10263_v59  ;;  %v4317_v39 = vmul.f32 %v9382_v41, %v10263_v59  ;;  %v5934_v34 = vunpack.c.l.bf16 %v6355_v37  ;;  %v4793_v63 = vpop.f32.mrf.mxu1  ;;  %v6065_v37 = vld [vmem:[%s7012_s1] sm:$0xff]  }
 0x2da   : > { %v4498_v38 = vadd.f32 %v9648_v4, %v4368_v20  ;;  %v4499_v0 = vadd.f32 %v9655_v30, %v4369_v10  ;;  %v6042_v1 = vpack.c.bf16 %v4495_v47, %v4494_v33  ;;  %v4455_v4 = vmul.f32 %v9567_v29, %v10264_v23  ;;  %4802 = vmatmul.bf16.gmra.mxu1 %v5317_v45  ;;  %v9764_v10 = vld [vmem:[%s9878_s10] ss:$0 sm:$0xff]  ;;  %v4813_v33 = vpop.f32.mrf.mxu2  ;;  %v4833_v47 = vpop.f32.mrf.mxu3 }
 0x2db   : > { %v3948_v7 = vmul.f32 %v9565_v22, %v10253_v5  ;;  %v4348_v30 = vadd.f32 %v4316_v44, %v4218_v43  ;;  %v4349_v61 = vadd.f32 %v4317_v39, %v4219_v28  ;;  %v4446_v15 = vmul.f32 %v5934_v34, %v10264_v23  ;;  %v6387_v48 = vld [vmem:[%s7012_s1 + $0x20] sm:$0xff]  }
 0x2dc   : > { %v6052_v35 = vpack.c.bf16 %v4499_v0, %v4498_v38  ;;  %6379 = vst [vmem:[#allocation2 + $0x170] sm:$0xff] %v6042_v1   ;;  %v4447_v41 = vmul.f32 %v5935_v56, %v10264_v23  ;;  %v4194_v53 = vmul.f32 %v5934_v34, %v10262_v13  ;;  %v4195_v17 = vmul.f32 %v5935_v56, %v10262_v13  ;;  %v6395_v28 = vld [vmem:[%s7012_s1 + $0x60] sm:$0xff]  }
 0x2dd   : > { %v3949_v51 = vmul.f32 %v9567_v29, %v10253_v5  ;;  %v3983_v62 = vadd.f32 %v9361_v9, %v3948_v7  ;;  %v4478_v36 = vadd.f32 %v4446_v15, %v4348_v30  ;;  %v4081_v22 = vmul.f32 %v9571_v52, %v10254_v25 }
 0x2de   : > { %6381 = vst [vmem:[#allocation2 + $0x1a0] sm:$0xff] %v6052_v35   ;;  %v4479_v46 = vadd.f32 %v4447_v41, %v4349_v61  ;;  %v4082_v50 = vmul.f32 %v9573_v12, %v10254_v25  ;;  %v4226_v26 = vadd.f32 %v4194_v53, %v4097_v57  ;;  %v4227_v49 = vadd.f32 %v4195_v17, %v4098_v8  ;;  %v6391_v8 = vld [vmem:[%s7012_s1 + $0x40] sm:$0xff]  }
 0x2df   : > { %v3984_v16 = vadd.f32 %v9361_v9, %v3949_v51  ;;  %v4210_v27 = vmul.f32 %v5910_v18, %v10262_v13  ;;  %v4113_v58 = vadd.f32 %v4081_v22, %v3983_v62  ;;  %v4211_v5 = vmul.f32 %v9702_v2, %v10262_v13  ;;  %v4775_v35 = vpop.f32.mrf.mxu0 }
 0x2e0   : > { %v6002_v14 = vpack.c.bf16 %v4479_v46, %v4478_v36  ;;  %v4340_v29 = vmul.f32 %v5974_v3, %v10263_v59  ;;  %v4356_v52 = vadd.f32 %v9552_v31, %v4226_v26  ;;  %v4357_v25 = vadd.f32 %v9556_v55, %v4227_v49  ;;  %v5325_v26 = vld [vmem:[#allocation2 + $0x1b8] sm:$0xff] }
 0x2e1   : > { %v4114_v12 = vadd.f32 %v4082_v50, %v3984_v16  ;;  %v4341_v9 = vmul.f32 %v5975_v21, %v10263_v59  ;;  %v4242_v60 = vadd.f32 %v4210_v27, %v4113_v58  ;;  %v5982_v24 = vunpack.c.l.bf16 %v6367_v40 }
 0x2e2   : > { %6371 = vst [vmem:[#allocation2 + $0xb0] sm:$0xff] %v6002_v14   ;;  %v5983_v32 = vunpack.c.h.bf16 %v6367_v40  ;;  %v4486_v19 = vadd.f32 %v4454_v54, %v4356_v52  ;;  %v4487_v13 = vadd.f32 %v4455_v4, %v4357_v25  ;;  %v4774_v43 = vadd.f32 %v9764_v10, %v4773_v6  ;;  %v4795_v54 = vpop.f32.mrf.mxu1  ;;  %v4815_v51 = vpop.f32.mrf.mxu2 }
 0x2e3   : > { %v5322_v18 = vld [vmem:[#allocation2 + $0x170] sm:$0xff]  ;;  %v4243_v2 = vadd.f32 %v4211_v5, %v4114_v12  ;;  %v4372_v31 = vadd.f32 %v4340_v29, %v4242_v60  ;;  %v4470_v55 = vmul.f32 %v5982_v24, %v10264_v23  ;;  %v6066_v38 = vunpack.c.l.bf16 %v6065_v37  ;;  %v4835_v62 = vpop.f32.mrf.mxu3 }
 0x2e4   : > { %4827 = vmatmul.bf16.gmra.mxu2 %v5322_v18  ;;  %v4471_v3 = vmul.f32 %v5983_v32, %v10264_v23  ;;  %v6022_v42 = vpack.c.bf16 %v4487_v13, %v4486_v19  ;;  %v4794_v0 = vadd.f32 %v9764_v10, %v4793_v63  ;;  %v6082_v1 = vunpack.c.l.bf16 %v6387_v48  ;;  %v6388_v18 = vld [vmem:[%s7012_s1 + $0x28] sm:$0xff]  }
 0x2e5   : > { %v5324_v11 = vld [vmem:[#allocation2 + $0x1a0] sm:$0xff]  ;;  %v4373_v59 = vadd.f32 %v4341_v9, %v4243_v2  ;;  %v4502_v21 = vadd.f32 %v4470_v55, %v4372_v31  ;;  %v6067_v45 = vunpack.c.h.bf16 %v6065_v37  ;;  %v6083_v44 = vunpack.c.h.bf16 %v6387_v48  ;;  %v6384_v9 = vld [vmem:[%s7012_s1 + $0x8] sm:$0xff]  }
 0x2e6   : > { %4837 = vmatmul.bf16.gmra.mxu3 %v5324_v11  ;;  %6375 = vst [vmem:[#allocation2 + $0x110] sm:$0xff] %v6022_v42   ;;  %v4814_v39 = vadd.f32 %v9764_v10, %v4813_v33  ;;  %v6098_v34 = vunpack.c.l.bf16 %v6391_v8  ;;  %v4834_v4 = vadd.f32 %v9764_v10, %v4833_v47  ;;  %v6114_v7 = vunpack.c.l.bf16 %v6395_v28  ;;  %v6392_v47 = vld [vmem:[%s7012_s1 + $0x48] sm:$0xff]  }
 0x2e7   : > { %v4503_v20 = vadd.f32 %v4471_v3, %v4373_v59  ;;  %v6099_v30 = vunpack.c.h.bf16 %v6391_v8  ;;  %v6115_v61 = vunpack.c.h.bf16 %v6395_v28  ;;  %v4917_v15 = vmul.f32 %v6066_v38, %v4774_v43  ;;  %v6385_v28 = vld [vmem:[%s7012_s1 + $0x10] sm:$0xff]  }
 0x2e8   : > { %v4925_v41 = vmul.f32 %v6082_v1, %v4794_v0  ;;  %v4776_v53 = vadd.f32 %v9764_v10, %v4775_v35  ;;  %v4796_v17 = vadd.f32 %v9764_v10, %v4795_v54  ;;  %v4816_v36 = vadd.f32 %v9764_v10, %v4815_v51 }
 0x2e9   : > { %v5314_v23 = vld [vmem:[#allocation2 + $0xb0] sm:$0xff]  ;;  %v6062_v57 = vpack.c.bf16 %v4503_v20, %v4502_v21  ;;  %v4836_v46 = vadd.f32 %v9764_v10, %v4835_v62  ;;  %v4933_v49 = vmul.f32 %v6098_v34, %v4814_v39  ;;  %v4941_v16 = vmul.f32 %v6114_v7, %v4834_v4 }
 0x2ea   : > { %4787 = vmatmul.bf16.gmra.mxu0 %v5314_v23  ;;  %v4918_v22 = vmul.f32 %v6067_v45, %v4776_v53  ;;  %v4926_v50 = vmul.f32 %v6083_v44, %v4796_v17  ;;  %v4934_v27 = vmul.f32 %v6099_v30, %v4816_v36  ;;  %v6070_v24 = vunpack.c.l.bf16 %v6384_v9  ;;  %v6393_v4 = vld [vmem:[%s7012_s1 + $0x50] sm:$0xff]  }
 0x2eb   : > { %6383 = vst [vmem:[#allocation2 + $0x1d0] sm:$0xff] %v6062_v57   ;;  %v4942_v40 = vmul.f32 %v6115_v61, %v4836_v46  ;;  %v6086_v19 = vunpack.c.l.bf16 %v6388_v18  ;;  %v6071_v13 = vunpack.c.h.bf16 %v6384_v9  ;;  %v6087_v11 = vunpack.c.h.bf16 %v6388_v18  ;;  %v6396_v9 = vld [vmem:[%s7012_s1 + $0x68] sm:$0xff]  }
 0x2ec   : > { %v6131_v14 = vpack.c.bf16 %v4918_v22, %v4917_v15  ;;  %v6151_v58 = vpack.c.bf16 %v4926_v50, %v4925_v41  ;;  %v6171_v5 = vpack.c.bf16 %v4934_v27, %v4933_v49  ;;  %v6102_v48 = vunpack.c.l.bf16 %v6392_v47 }
 0x2ed   : > { %v5318_v56 = vld [vmem:[#allocation2 + $0x110] sm:$0xff]  ;;  %v6191_v29 = vpack.c.bf16 %v4942_v40, %v4941_v16  ;;  %v6103_v57 = vunpack.c.h.bf16 %v6392_v47  ;;  %v6074_v39 = vunpack.c.l.bf16 %v6385_v28  ;;  %v6075_v35 = vunpack.c.h.bf16 %v6385_v28 }
 0x2ee   : > { %4807 = vmatmul.bf16.gmra.mxu1 %v5318_v56  ;;  %6132 = vst [vmem:[%s9780_s25] sm:$0xff] %v6131_v14   ;;  %v6389_v56 = vld [vmem:[%s7012_s1 + $0x30] sm:$0xff]   ;;  %v6106_v17 = vunpack.c.l.bf16 %v6393_v4  ;;  %v6107_v51 = vunpack.c.h.bf16 %v6393_v4 }
 0x2ef   : > { %6402 = vst [vmem:[%s9780_s25 + $0x20] sm:$0xff] %v6151_v58   ;;  %v6090_v15 = vunpack.c.l.bf16 %v6389_v56  ;;  %v6091_v62 = vunpack.c.h.bf16 %v6389_v56 }
 0x2f0   : > { %6406 = vst [vmem:[%s9780_s25 + $0x40] sm:$0xff] %v6171_v5  }
 0x2f1   : > { %6410 = vst [vmem:[%s9780_s25 + $0x60] sm:$0xff] %v6191_v29  }
 0x2f2   : > { %v5326_v52 = vld [vmem:[#allocation2 + $0x1d0] sm:$0xff] }
 0x2f6   : > { %4842 = vmatmul.bf16.gmra.mxu3 %v5325_v26 }
 0x306   : > { %4847 = vmatmul.bf16.gmra.mxu3 %v5326_v52 }
 0x308   : > { %v4778_v25 = vpop.f32.mrf.mxu0 }
 0x309   : > { %v4798_v12 = vpop.f32.mrf.mxu1  ;;  %v4779_v60 = vadd.f32 %v9764_v10, %v4778_v25  ;;  %v6386_v25 = vld [vmem:[%s7012_s1 + $0x18] sm:$0xff]  }
 0x30a   : > { %v4799_v32 = vadd.f32 %v9764_v10, %v4798_v12  ;;  %v6394_v12 = vld [vmem:[%s7012_s1 + $0x58] sm:$0xff]  }
 0x30b   : > { %v4919_v31 = vmul.f32 %v6070_v24, %v4779_v60  ;;  %v6078_v60 = vunpack.c.l.bf16 %v6386_v25 }
 0x30c   : > { %v4927_v42 = vmul.f32 %v6086_v19, %v4799_v32  ;;  %v6390_v32 = vld [vmem:[%s7012_s1 + $0x38] sm:$0xff]   ;;  %v6079_v19 = vunpack.c.h.bf16 %v6386_v25 }
 0x310   : > { %v4780_v2 = vpop.f32.mrf.mxu0 }
 0x311   : > { %v4781_v55 = vadd.f32 %v9764_v10, %v4780_v2  ;;  %v4800_v3 = vpop.f32.mrf.mxu1  ;;  %v6110_v2 = vunpack.c.l.bf16 %v6394_v12 }
 0x312   : > { %v4801_v59 = vadd.f32 %v9764_v10, %v4800_v3  ;;  %v6119_v3 = vunpack.c.h.bf16 %v6396_v9 }
 0x313   : > { %v4920_v21 = vmul.f32 %v6071_v13, %v4781_v55  ;;  %v6118_v55 = vunpack.c.l.bf16 %v6396_v9 }
 0x314   : > { %v4928_v6 = vmul.f32 %v6087_v11, %v4801_v59  ;;  %v6111_v11 = vunpack.c.h.bf16 %v6394_v12 }
 0x315   : > { %v6136_v63 = vpack.c.bf16 %v4920_v21, %v4919_v31 }
 0x316   : > { %v6156_v20 = vpack.c.bf16 %v4928_v6, %v4927_v42 }
 0x317   : > { %6399 = vst [vmem:[%s9780_s25 + $0x8] sm:$0xff] %v6136_v63  }
 0x318   : > { %6403 = vst [vmem:[%s9780_s25 + $0x28] sm:$0xff] %v6156_v20  }
 0x342   : > { %v4818_v33 = vpop.f32.mrf.mxu2 }
 0x343   : > { %v4819_v37 = vadd.f32 %v9764_v10, %v4818_v33 }
 0x345   : > { %v4935_v43 = vmul.f32 %v6102_v48, %v4819_v37  ;;  %v6094_v37 = vunpack.c.l.bf16 %v6390_v32 }
 0x34a   : > { %v4820_v23 = vpop.f32.mrf.mxu2 }
 0x34b   : > { %v4821_v8 = vadd.f32 %v9764_v10, %v4820_v23 }
 0x34d   : > { %v4936_v38 = vmul.f32 %v6103_v57, %v4821_v8 }
 0x34f   : > { %v6176_v0 = vpack.c.bf16 %v4936_v38, %v4935_v43  ;;  %v6095_v38 = vunpack.c.h.bf16 %v6390_v32 }
 0x351   : > { %6407 = vst [vmem:[%s9780_s25 + $0x48] sm:$0xff] %v6176_v0  }
 0x352   : > { %v4783_v1 = vpop.f32.mrf.mxu0  ;;  %v4823_v45 = vpop.f32.mrf.mxu2 }
 0x353   : > { %v4784_v44 = vadd.f32 %v9764_v10, %v4783_v1  ;;  %v4824_v53 = vadd.f32 %v9764_v10, %v4823_v45 }
 0x355   : > { %v4921_v7 = vmul.f32 %v6074_v39, %v4784_v44  ;;  %v4937_v16 = vmul.f32 %v6106_v17, %v4824_v53 }
 0x357   : > { %v4803_v34 = vpop.f32.mrf.mxu1 }
 0x358   : > { %v4804_v61 = vadd.f32 %v9764_v10, %v4803_v34 }
 0x35a   : > { %v4785_v54 = vpop.f32.mrf.mxu0  ;;  %v4825_v36 = vpop.f32.mrf.mxu2  ;;  %v4929_v26 = vmul.f32 %v6090_v15, %v4804_v61 }
 0x35b   : > { %v4786_v30 = vadd.f32 %v9764_v10, %v4785_v54  ;;  %v4826_v50 = vadd.f32 %v9764_v10, %v4825_v36  ;;  %v6397_v54 = vld [vmem:[%s7012_s1 + $0x70] sm:$0xff]  }
 0x35d   : > { %v4922_v41 = vmul.f32 %v6075_v35, %v4786_v30  ;;  %v4938_v27 = vmul.f32 %v6107_v51, %v4826_v50  ;;  %v6123_v30 = vunpack.c.h.bf16 %v6397_v54 }
 0x35f   : > { %v6141_v46 = vpack.c.bf16 %v4922_v41, %v4921_v7  ;;  %v4805_v22 = vpop.f32.mrf.mxu1  ;;  %v6181_v14 = vpack.c.bf16 %v4938_v27, %v4937_v16  ;;  %v6122_v7 = vunpack.c.l.bf16 %v6397_v54 }
 0x360   : > { %v4806_v49 = vadd.f32 %v9764_v10, %v4805_v22 }
 0x361   : > { %6400 = vst [vmem:[%s9780_s25 + $0x10] sm:$0xff] %v6141_v46  }
 0x362   : > { %v4930_v40 = vmul.f32 %v6091_v62, %v4806_v49  ;;  %6408 = vst [vmem:[%s9780_s25 + $0x50] sm:$0xff] %v6181_v14   ;;  %v6398_v62 = vld [vmem:[%s7012_s1 + $0x78] sm:$0xff]   ;;  %s6747_s1 = sshra.s32 %s5029_s14, 4  ;;  %s6748_s1 = int_to_ptr.hbm [resolvable:$true] %s6747_s1 }
 0x363   : > { %v6126_v46 = vunpack.c.l.bf16 %v6398_v62  ;;  %v6127_v22 = vunpack.c.h.bf16 %v6398_v62  ;;  %s6749_s29 = scalar_lea.hbm %s6748_s1, 128  ;;  %p6754_p12 = scmp.lt.s32.totalorder %s6748_s1, %s9879_s11 }
 0x364   : > { %v6161_v58 = vpack.c.bf16 %v4930_v40, %v4929_v26  ;;  %p6750_p1 = scmp.ne.s32.totalorder %s6748_s1, %s6749_s29  ;;  %p6755_p8 = scmp.lt.s32.totalorder %s6753_s9, %s6749_s29 }
 0x366   : > { %6404 = vst [vmem:[%s9780_s25 + $0x30] sm:$0xff] %v6161_v58   ;;  %p6751_p3 = pnand %p6750_p1, %p6972_p13  ;;  %p6756_p7 = por %p6755_p8, %p6754_p12 }
 0x367   : > { %v4788_v5 = vpop.f32.mrf.mxu0  ;;  %v4828_v29 = vpop.f32.mrf.mxu2 }
 0x368   : > { %v4789_v18 = vadd.f32 %v9764_v10, %v4788_v5  ;;  %v4829_v13 = vadd.f32 %v9764_v10, %v4828_v29  ;;  %p6752_p4 = pneg %p6751_p3 }
 0x369   : > { %v4838_v52 = vpop.f32.mrf.mxu3 }
 0x36a   : > { %v4839_v31 = vadd.f32 %v9764_v10, %v4838_v52  ;;  %v4923_v6 = vmul.f32 %v6078_v60, %v4789_v18  ;;  %v4939_v23 = vmul.f32 %v6110_v2, %v4829_v13  ;;  %p6757_p9 = pnand %p6756_p7, %p6752_p4 }
 0x36b   : > { %v4808_v24 = vpop.f32.mrf.mxu1 }
 0x36c   : > { %v4809_v47 = vadd.f32 %v9764_v10, %v4808_v24  ;;  %v4943_v8 = vmul.f32 %v6118_v55, %v4839_v31 }
 0x36e   : > { %v4931_v44 = vmul.f32 %v6094_v37, %v4809_v47 }
 0x36f   : > { %v4790_v42 = vpop.f32.mrf.mxu0  ;;  %v4830_v59 = vpop.f32.mrf.mxu2 }
 0x370   : > { %v4791_v63 = vadd.f32 %v9764_v10, %v4790_v42  ;;  %v4831_v20 = vadd.f32 %v9764_v10, %v4830_v59 }
 0x371   : > { %v4840_v21 = vpop.f32.mrf.mxu3 }
 0x372   : > { %v4841_v33 = vadd.f32 %v9764_v10, %v4840_v21  ;;  %v4924_v48 = vmul.f32 %v6079_v19, %v4791_v63  ;;  %v4940_v57 = vmul.f32 %v6111_v11, %v4831_v20 }
 0x373   : > { %v4810_v1 = vpop.f32.mrf.mxu1 }
 0x374   : > { %v4944_v43 = vmul.f32 %v6119_v3, %v4841_v33  ;;  %v6146_v0 = vpack.c.bf16 %v4924_v48, %v4923_v6  ;;  %v6186_v28 = vpack.c.bf16 %v4940_v57, %v4939_v23  ;;  %v4811_v39 = vadd.f32 %v9764_v10, %v4810_v1 }
 0x376   : > { %v6196_v45 = vpack.c.bf16 %v4944_v43, %v4943_v8  ;;  %6401 = vst [vmem:[%s9780_s25 + $0x18] sm:$0xff] %v6146_v0   ;;  %v4932_v34 = vmul.f32 %v6095_v38, %v4811_v39 }
 0x377   : > { %6409 = vst [vmem:[%s9780_s25 + $0x58] sm:$0xff] %v6186_v28  }
 0x378   : > { %6411 = vst [vmem:[%s9780_s25 + $0x68] sm:$0xff] %v6196_v45   ;;  %v6166_v35 = vpack.c.bf16 %v4932_v34, %v4931_v44 }
 0x379   : > { %v4843_v56 = vpop.f32.mrf.mxu3 }
 0x37a   : > { %6405 = vst [vmem:[%s9780_s25 + $0x38] sm:$0xff] %v6166_v35   ;;  %v4844_v4 = vadd.f32 %v9764_v10, %v4843_v56 }
 0x37c   : > { %v4945_v41 = vmul.f32 %v6122_v7, %v4844_v4 }
 0x381   : > { %v4845_v61 = vpop.f32.mrf.mxu3 }
 0x382   : > { %v4846_v15 = vadd.f32 %v9764_v10, %v4845_v61 }
 0x384   : > { %v4946_v53 = vmul.f32 %v6123_v30, %v4846_v15 }
 0x386   : > { %v6201_v17 = vpack.c.bf16 %v4946_v53, %v4945_v41 }
 0x388   : > { %6412 = vst [vmem:[%s9780_s25 + $0x70] sm:$0xff] %v6201_v17  }
 0x389   : > { %v4848_v51 = vpop.f32.mrf.mxu3 }
 0x38a   : > { %v4849_v36 = vadd.f32 %v9764_v10, %v4848_v51 }
 0x38c   : > { %v4947_v49 = vmul.f32 %v6126_v46, %v4849_v36 }
 0x391   : > { %v4850_v50 = vpop.f32.mrf.mxu3 }
 0x392   : > { %v4851_v26 = vadd.f32 %v9764_v10, %v4850_v50 }
 0x394   : > { %v4948_v16 = vmul.f32 %v6127_v22, %v4851_v26 }
 0x396   : > { %v6206_v27 = vpack.c.bf16 %v4948_v16, %v4947_v49 }
 0x398   : > { %6413 = vst [vmem:[%s9780_s25 + $0x78] sm:$0xff] %v6206_v27  }
 0x399   : > { %6760 = shalt.err (!%p6757_p9)
}
 0x39a   : > { %s6821_s15 = smov 64   ;;  %s6822_s25 = smov 4  }
 0x39b   : > { %6460 = dma.vmem_to_hbm [thread:$0]  (%p6972_p13), %s5027_s21, 2048, %s5029_s14, %s5014_s24, %s6821_s15, %s6821_s15, %s6822_s25  }
 0x39c PF: > { %s5043_s7 = sand.u32 1, %s6799_s17   ;;  %p10282_p10 = scmp.ge.s32.totalorder %s6811_s20, 2 }
 0x39d   : > { %s5044_s16 = scalar_lea.sflag [#allocation5], %s5043_s7 }
 0x39e   : > { %p6483_p11 = pnand %p10282_p10, %p6977_p5 }
 0x3a0   : > { %p6484_p0 = pneg %p6483_p11 }
 0x3a2   : > { %6794 = dma.done.wait (%p6484_p0), %s5044_s16, 2048  }
 0x3a3   : > { %6796 = vsyncadd (%p6484_p0), %s5044_s16, 4294965248  ;;  %p27_p2 = scmp.ge.s32.totalorder %s6952_s26, 4   ;;  %s10283_s17 = smov %s6803_s18 }
 0x3a4   : > { %s10284_s18 = smov %s6807_s19  ;;  %s10285_s19 = smov %s6964_s13 }
 0x3a5   : > { %s10286_s20 = smov %s6952_s26  ;;  %29 = sbr.rel (!%p27_p2) target bundleno = 14 (0xe), region = 136 }
 0x3aa   :  { %5050 = vsyncpa [#allocation4], 1 }
 0x3ab   :  { %5052 = vsyncpa [#allocation4 + $0x1], 1 }
 0x3ac   :  { %5053 = vsyncpa [#allocation7], 1 }
 0x3ad   :  { %5054 = vsyncpa [#allocation10], 1 }
 0x3ae   :  { %5055 = vsyncpa [#allocation13], 1 }
 0x3af   :  { %5056 = vsyncpa [#allocation5], 1 }
 0x3b0   :  { %5058 = vsyncpa [#allocation5 + $0x1], 1 }

</bundles_post_ra>
